<compile_context>
chip_gen: v7x
topology: tpu7x:2x2x1
jax: 0.10.0
libtpu: 0.0.40
codegen_flags: <defaults>
</compile_context>

<pallas_src>
import functools

import numpy as np
import jax
import jax.numpy as jnp
from jax import lax
from jax.experimental import pallas as pl
from jax.experimental.pallas import tpu as pltpu

_LN_EPS = 1e-5
_LANE = 128          # vreg lane width
_BATCH_ALIGN = 16    # sublane tile of bf16 scratch (also satisfies the f32 (8, 128) tile)


def _round_up(n: int, m: int) -> int:
    return ((n + m - 1) // m) * m


# ----------------------------------------------------------------------------
# Fused kernel: 3 x (LSTM + LayerNorm [+ identity dropout]) + Linear head.
# ----------------------------------------------------------------------------
def _fused_lstm_kernel(x_ref, *refs, num_layers, hidden_size, gate_width, tt, tb,
                       mxu_dtype, unroll):
    """grid = (batch_blocks, time_chunks); time is the inner, sequential axis.

    x_ref     : (TT*TB, Din)  timestep-major rows of the current chunk (row = t*TB + b)
    per layer : wih (Din_l, G), whh (H, G), b (1, G), gamma (1, H), beta (1, H)
                gates packed PyTorch-style [i | f | g | o]; G = round_up(4*H, 128)
    fc        : wfc (H, Op), bfc (1, Op)
    out_ref   : (TB, Op)  written only on the last time chunk
    scratch   : xg_buf (TT*TB, G)  hoisted input projections for the current layer/chunk
                y_buf  (TT*TB, H)  inter-layer activations (LayerNorm output)
                h_scr / c_scr (L, TB, H)  recurrent state carried across time chunks
    """
    L, H, G, TT, TB = num_layers, hidden_size, gate_width, tt, tb

    layer_refs = [refs[5 * l:5 * (l + 1)] for l in range(L)]
    wfc_ref, bfc_ref = refs[5 * L], refs[5 * L + 1]
    out_ref = refs[5 * L + 2]
    xg_buf, y_buf, h_scr, c_scr = refs[5 * L + 3:5 * L + 7]

    t_ax = 1
    is_first_chunk = pl.program_id(t_ax) == 0
    is_last_chunk = pl.program_id(t_ax) == pl.num_programs(t_ax) - 1

    # State carries across time chunks; program_id(time) restarts at 0 whenever the batch
    # block advances, so the zero-init runs exactly once per batch block.
    @pl.when(is_first_chunk)
    def _():
        h_scr[...] = jnp.zeros_like(h_scr)
        c_scr[...] = jnp.zeros_like(c_scr)

    # Lane constants, built once per kernel invocation (hoisted out of every loop).
    # tanh(x) = 2*sigmoid(2x) - 1  -> one EUP sigmoid covers i/f/o (sigmoid) and g (tanh).
    lane = lax.broadcasted_iota(jnp.int32, (1, G), 1)
    is_g = jnp.logical_and(lane >= 2 * H, lane < 3 * H)
    act_scale = jnp.where(is_g, 2.0, 1.0).astype(jnp.float32)   # pre- and post-scale
    act_shift = jnp.where(is_g, -1.0, 0.0).astype(jnp.float32)

    for l in range(L):
        wih_ref, whh_ref, b_ref, gamma_ref, beta_ref = layer_refs[l]
        last_layer = l == L - 1

        # ---- Hoisted input projection: ONE MXU matmul per layer per chunk, bias folded in.
        # Layer 0 reads the streamed input chunk; deeper layers read the previous layer's
        # LayerNorm output (already resident in VMEM, already in MXU dtype).
        inp = x_ref[...] if l == 0 else y_buf[...]
        xg_buf[...] = (jnp.dot(inp, wih_ref[...], preferred_element_type=jnp.float32)
                       + b_ref[...]).astype(xg_buf.dtype)

        gamma = gamma_ref[...]
        beta = beta_ref[...]

        def layer_norm(hv):
            mean = jnp.mean(hv, axis=-1, keepdims=True)
            ctr = hv - mean
            var = jnp.mean(ctr * ctr, axis=-1, keepdims=True)
            return ctr * lax.rsqrt(var + _LN_EPS) * gamma + beta

        def step(t, carry):
            h_prev, c_prev = carry                                  # (TB, H) f32
            row = pl.multiple_of(t * TB, TB)                        # tile-aligned row block
            # Serial path carries a single (TB, H) @ (H, G) matmul per timestep.
            gates = (xg_buf[pl.ds(row, TB), :].astype(jnp.float32)
                     + jnp.dot(h_prev.astype(mxu_dtype), whh_ref[...],
                               preferred_element_type=jnp.float32))
            act = jax.nn.sigmoid(gates * act_scale) * act_scale + act_shift
            i_g = act[:, 0 * H:1 * H]
            f_g = act[:, 1 * H:2 * H]
            g_g = act[:, 2 * H:3 * H]
            o_g = act[:, 3 * H:4 * H]
            c_new = f_g * c_prev + i_g * g_g
            h_new = o_g * jnp.tanh(c_new)
            if not last_layer:
                # LayerNorm (+ identity dropout at inference) feeds the next layer.
                y_buf[pl.ds(row, TB), :] = layer_norm(h_new).astype(y_buf.dtype)
            return h_new, c_new

        h_fin, c_fin = lax.fori_loop(0, TT, step, (h_scr[l], c_scr[l]),
                                     unroll=min(TT, unroll))
        h_scr[l] = h_fin
        c_scr[l] = c_fin

        if last_layer:
            @pl.when(is_last_chunk)
            def _():
                # Only the final hidden state reaches the FC head -> LayerNorm it once.
                h_norm = layer_norm(h_fin)
                out_ref[...] = (jnp.dot(h_norm.astype(mxu_dtype), wfc_ref[...],
                                        preferred_element_type=jnp.float32)
                                + bfc_ref[...]).astype(out_ref.dtype)


# ----------------------------------------------------------------------------
# Host-side parameter packing (native [i|f|g|o] gate packing, lane-tail padding only).
# ----------------------------------------------------------------------------
def _pad_to(a, shape):
    return jnp.pad(a, [(0, s - d) for d, s in zip(a.shape, shape)])


def _prepare_params(layer_params, fc_params, H, G, Op, mxu_dtype):
    layers = []
    for p in layer_params:
        din_l = p["wih_t"].shape[0]
        wih = _pad_to(p["wih_t"], (din_l, G)).astype(mxu_dtype)   # (Din_l, G)
        whh = _pad_to(p["whh_t"], (H, G)).astype(mxu_dtype)       # (H, G)
        b = _pad_to(p["b"], (1, G)).astype(jnp.float32)           # (1, G)
        gamma = p["gamma"].astype(jnp.float32)                    # (1, H)
        beta = p["beta"].astype(jnp.float32)                      # (1, H)
        layers.append((wih, whh, b, gamma, beta))
    wfc = _pad_to(fc_params["w_t"], (H, Op)).astype(mxu_dtype)    # (H, Op) lane-dense head
    bfc = _pad_to(fc_params["b"], (1, Op)).astype(jnp.float32)    # (1, Op)
    return layers, wfc, bfc


# ----------------------------------------------------------------------------
# Public forward (matches PretrainingLSTM.forward; dropout = identity / eval mode).
# ----------------------------------------------------------------------------
def pretraining_lstm_forward(x_btd, layer_params, fc_params, *,
                             time_chunk=None, batch_block=None,
                             mxu_dtype=jnp.bfloat16, unroll=8,
                             vmem_limit_bytes=None):
    """x_btd: (B, T, input_size) batch-first (PyTorch).  Returns (B, output_size).

    VMEM sizing rule of thumb: the dominant scratch is ~TT*TB*(G + H) elements, so pick the
    largest time_chunk x batch_block that fits the chip's VMEM budget (prefer time_chunk = T
    so the recurrence never crosses a grid boundary; on v7x use >= 2 batch blocks so the
    'parallel' axis shards across both TensorCores).
    """
    x = jnp.asarray(x_btd, jnp.float32)
    B, T, Din = x.shape
    L = len(layer_params)
    hidden = {p["whh_t"].shape[0] for p in layer_params}
    assert len(hidden) == 1, "fused kernel assumes equal hidden sizes per layer"
    H = hidden.pop()
    G = _round_up(4 * H, _LANE)                 # packed gate width [i|f|g|o] (+ lane-tail pad)
    O = fc_params["w_t"].shape[1]
    Op = _round_up(O, _LANE)                    # lane-dense FC output, sliced on the host

    Bp = _round_up(B, _BATCH_ALIGN)
    TB = Bp if batch_block is None else batch_block
    TT = T if time_chunk is None else time_chunk
    assert T % TT == 0 and Bp % TB == 0 and TB % _BATCH_ALIGN == 0
    NB = Bp // TB

    # One host-side XLA pass over x: pad the batch, group it into batch blocks, and lay each
    # block out timestep-major + flat so every in-kernel access is a tile-aligned 2-D slab
    # (the flattening also lets the whole-chunk projection be a single 2-D matmul).
    x_p = jnp.pad(x, ((0, Bp - B), (0, 0), (0, 0)))
    x_blk = (x_p.reshape(NB, TB, T, Din).transpose(0, 2, 1, 3)
             .reshape(NB, T * TB, Din).astype(mxu_dtype))

    padded_layers, wfc, bfc = _prepare_params(layer_params, fc_params, H, G, Op, mxu_dtype)

    if vmem_limit_bytes is None:
        # Size for the actual chip: ~75% of physical VMEM (v5e/v6e 128 MiB -> 96 MiB,
        # v7x 64 MiB -> 48 MiB), capped at 100 MiB.
        try:
            phys = pltpu.get_tpu_info().vmem_capacity_bytes
        except Exception:
            phys = 64 * 1024 * 1024
        vmem_limit_bytes = min(int(phys) * 3 // 4, 100 * 1024 * 1024)

    const2 = lambda b, t: (0, 0)
    in_specs = [pl.BlockSpec((None, TT * TB, Din), lambda b, t: (b, t, 0))]   # streamed input
    flat = []
    for layer in padded_layers:
        for arr in layer:
            flat.append(arr)
            # Constant index map -> fetched once and kept resident.  (On v7x,
            # pipeline_mode=pl.Buffered(1) would additionally reclaim the second buffer.)
            in_specs.append(pl.BlockSpec(arr.shape, const2))
    for arr in (wfc, bfc):
        flat.append(arr)
        in_specs.append(pl.BlockSpec(arr.shape, const2))

    kernel = functools.partial(
        _fused_lstm_kernel, num_layers=L, hidden_size=H, gate_width=G,
        tt=TT, tb=TB, mxu_dtype=mxu_dtype, unroll=max(1, unroll))

    out = pl.pallas_call(
        kernel,
        out_shape=jax.ShapeDtypeStruct((Bp, Op), jnp.float32),
        grid_spec=pltpu.PrefetchScalarGridSpec(
            num_scalar_prefetch=0,
            grid=(NB, T // TT),        # (parallel batch blocks, sequential time chunks)
            in_specs=in_specs,
            out_specs=pl.BlockSpec((TB, Op), lambda b, t: (b, 0)),
            scratch_shapes=[
                pltpu.VMEM((TT * TB, G), mxu_dtype),      # hoisted input projections
                pltpu.VMEM((TT * TB, H), mxu_dtype),      # inter-layer activations
                pltpu.VMEM((L, TB, H), jnp.float32),      # h state per layer
                pltpu.VMEM((L, TB, H), jnp.float32),      # c state per layer
            ]),
        compiler_params=pltpu.CompilerParams(
            dimension_semantics=("parallel", "arbitrary"),
            vmem_limit_bytes=vmem_limit_bytes),
    )(x_blk, *flat)

    return out[:B, :O]


# ----------------------------------------------------------------------------
# Parameter construction (deterministic, PyTorch-like uniform init) — unpadded.
# ----------------------------------------------------------------------------
def init_params(key, input_size, hidden_sizes, output_size=1):
    params = []
    cur = input_size
    for hs in hidden_sizes:
        key, k1, k2, k3, k4 = jax.random.split(key, 5)
        bound = 1.0 / np.sqrt(hs)
        wih = jax.random.uniform(k1, (4 * hs, cur), jnp.float32, -bound, bound)
        whh = jax.random.uniform(k2, (4 * hs, hs), jnp.float32, -bound, bound)
        bih = jax.random.uniform(k3, (4 * hs,), jnp.float32, -bound, bound)
        bhh = jax.random.uniform(k4, (4 * hs,), jnp.float32, -bound, bound)
        params.append(dict(
            wih_t=wih.T,                          # (Din, 4H)
            whh_t=whh.T,                          # (H, 4H)
            b=(bih + bhh).reshape(1, 4 * hs),     # (1, 4H)
            gamma=jnp.ones((1, hs), jnp.float32),
            beta=jnp.zeros((1, hs), jnp.float32),
        ))
        cur = hs
    key, k5, k6 = jax.random.split(key, 3)
    bound = 1.0 / np.sqrt(cur)
    w_fc = jax.random.uniform(k5, (output_size, cur), jnp.float32, -bound, bound)
    b_fc = jax.random.uniform(k6, (output_size,), jnp.float32, -bound, bound)
    fc = dict(w_t=w_fc.T, b=b_fc.reshape(1, output_size))
    return params, fc


# ----------------------------------------------------------------------------
# Pure-JAX reference.  mxu_dtype mirrors the kernel's MXU-operand quantization so the bf16
# path can be checked tightly; mxu_dtype=float32 is the plain f32 PyTorch semantics.
# ----------------------------------------------------------------------------
def reference_forward(x_btd, layer_params, fc_params, mxu_dtype=jnp.float32):
    def q(a):
        return a.astype(mxu_dtype)

    hi = jax.lax.Precision.HIGHEST
    h = jnp.asarray(x_btd, jnp.float32)
    for p in layer_params:
        B, T, _ = h.shape
        H = p["whh_t"].shape[0]
        wih, whh = q(p["wih_t"]), q(p["whh_t"])

        def cell(carry, x_t):
            h_prev, c_prev = carry
            xg = jnp.dot(q(x_t), wih, preferred_element_type=jnp.float32, precision=hi) + p["b"]
            xg = q(xg).astype(jnp.float32)        # mirrors the kernel's xg_buf storage dtype
            gates = xg + jnp.dot(q(h_prev), whh, preferred_element_type=jnp.float32, precision=hi)
            i = jax.nn.sigmoid(gates[:, 0 * H:1 * H])
            f = jax.nn.sigmoid(gates[:, 1 * H:2 * H])
            g = jnp.tanh(gates[:, 2 * H:3 * H])
            o = jax.nn.sigmoid(gates[:, 3 * H:4 * H])
            c = f * c_prev + i * g
            hh = o * jnp.tanh(c)
            return (hh, c), hh

        init = (jnp.zeros((B, H), jnp.float32), jnp.zeros((B, H), jnp.float32))
        _, ys = lax.scan(cell, init, jnp.transpose(h, (1, 0, 2)))
        ys = jnp.transpose(ys, (1, 0, 2))                          # (B, T, H)
        mean = jnp.mean(ys, axis=-1, keepdims=True)
        var = jnp.mean((ys - mean) ** 2, axis=-1, keepdims=True)
        h = (ys - mean) * lax.rsqrt(var + _LN_EPS) * p["gamma"] + p["beta"]
    last = h[:, -1, :]
    return (jnp.dot(q(last), q(fc_params["w_t"]),
                    preferred_element_type=jnp.float32, precision=hi) + fc_params["b"])


# ----------------------------------------------------------------------------
if __name__ == "__main__":
    INPUT_SIZE = 4
    HIDDEN_SIZES = [32, 32, 32]
    OUTPUT_SIZE = 1
    BATCH = 2
    SEQ = 8

    key = jax.random.PRNGKey(0)
    key, xk = jax.random.split(key)
    x = jax.random.normal(xk, (BATCH, SEQ, INPUT_SIZE), jnp.float32)

    layer_params, fc_params = init_params(key, INPUT_SIZE, HIDDEN_SIZES, OUTPUT_SIZE)

    # (1) f32 MXU path, time streamed in 2 chunks of 4 (exercises state carry across chunks).
    #     Tolerance allows for XLA's default reduced-precision f32 matmuls in the reference.
    out_f32 = jax.block_until_ready(
        pretraining_lstm_forward(x, layer_params, fc_params,
                                 time_chunk=4, mxu_dtype=jnp.float32))
    ref_f32 = jax.block_until_ready(reference_forward(x, layer_params, fc_params))
    np.testing.assert_allclose(np.asarray(out_f32), np.asarray(ref_f32), rtol=2e-2, atol=2e-2)

    # (2) Default fast path: bf16 MXU operands / bf16 activation scratch, whole sequence as
    #     one chunk; checked against a reference applying the same operand quantization.
    out_bf16 = jax.block_until_ready(
        pretraining_lstm_forward(x, layer_params, fc_params))
    ref_bf16 = jax.block_until_ready(
        reference_forward(x, layer_params, fc_params, mxu_dtype=jnp.bfloat16))
    np.testing.assert_allclose(np.asarray(out_bf16), np.asarray(ref_bf16), rtol=5e-3, atol=5e-3)

    assert out_bf16.shape == (BATCH, OUTPUT_SIZE)
    print("KERNEL_OK")
</pallas_src>

<mosaic_0001>
module attributes {stable_mosaic.version = 11 : i64} {
  func.func @_fused_lstm_kernel(%arg0: i32, %arg1: i32, %arg2: memref<1x64x4xf32, #tpu.memory_space<vmem>>, %arg3: memref<4x128xf32, #tpu.memory_space<vmem>>, %arg4: memref<32x128xf32, #tpu.memory_space<vmem>>, %arg5: memref<1x128xf32, #tpu.memory_space<vmem>>, %arg6: memref<1x32xf32, #tpu.memory_space<vmem>>, %arg7: memref<1x32xf32, #tpu.memory_space<vmem>>, %arg8: memref<32x128xf32, #tpu.memory_space<vmem>>, %arg9: memref<32x128xf32, #tpu.memory_space<vmem>>, %arg10: memref<1x128xf32, #tpu.memory_space<vmem>>, %arg11: memref<1x32xf32, #tpu.memory_space<vmem>>, %arg12: memref<1x32xf32, #tpu.memory_space<vmem>>, %arg13: memref<32x128xf32, #tpu.memory_space<vmem>>, %arg14: memref<32x128xf32, #tpu.memory_space<vmem>>, %arg15: memref<1x128xf32, #tpu.memory_space<vmem>>, %arg16: memref<1x32xf32, #tpu.memory_space<vmem>>, %arg17: memref<1x32xf32, #tpu.memory_space<vmem>>, %arg18: memref<32x128xf32, #tpu.memory_space<vmem>>, %arg19: memref<1x128xf32, #tpu.memory_space<vmem>>, %arg20: memref<16x128xf32, #tpu.memory_space<vmem>>, %arg21: memref<64x128xf32, #tpu.memory_space<vmem>>, %arg22: memref<64x32xf32, #tpu.memory_space<vmem>>, %arg23: memref<3x16x32xf32, #tpu.memory_space<vmem>>, %arg24: memref<3x16x32xf32, #tpu.memory_space<vmem>>) attributes {dimension_semantics = [#tpu.dimension_semantics<parallel>, #tpu.dimension_semantics<arbitrary>], iteration_bounds = array<i64: 1, 2>, scalar_prefetch = 0 : i64, scratch_operands = 4 : i64, tpu.core_type = #tpu.core_type<tc>, window_params = [{transform_indices = @transform_0, window_bounds = array<i64: 1, 64, 4>}, {pipeline_mode = #tpu.pipeline_mode<synchronous>, transform_indices = @transform_1, window_bounds = array<i64: 4, 128>}, {pipeline_mode = #tpu.pipeline_mode<synchronous>, transform_indices = @transform_2, window_bounds = array<i64: 32, 128>}, {pipeline_mode = #tpu.pipeline_mode<synchronous>, transform_indices = @transform_3, window_bounds = array<i64: 1, 128>}, {pipeline_mode = #tpu.pipeline_mode<synchronous>, transform_indices = @transform_4, window_bounds = array<i64: 1, 32>}, {pipeline_mode = #tpu.pipeline_mode<synchronous>, transform_indices = @transform_5, window_bounds = array<i64: 1, 32>}, {pipeline_mode = #tpu.pipeline_mode<synchronous>, transform_indices = @transform_6, window_bounds = array<i64: 32, 128>}, {pipeline_mode = #tpu.pipeline_mode<synchronous>, transform_indices = @transform_7, window_bounds = array<i64: 32, 128>}, {pipeline_mode = #tpu.pipeline_mode<synchronous>, transform_indices = @transform_8, window_bounds = array<i64: 1, 128>}, {pipeline_mode = #tpu.pipeline_mode<synchronous>, transform_indices = @transform_9, window_bounds = array<i64: 1, 32>}, {pipeline_mode = #tpu.pipeline_mode<synchronous>, transform_indices = @transform_10, window_bounds = array<i64: 1, 32>}, {pipeline_mode = #tpu.pipeline_mode<synchronous>, transform_indices = @transform_11, window_bounds = array<i64: 32, 128>}, {pipeline_mode = #tpu.pipeline_mode<synchronous>, transform_indices = @transform_12, window_bounds = array<i64: 32, 128>}, {pipeline_mode = #tpu.pipeline_mode<synchronous>, transform_indices = @transform_13, window_bounds = array<i64: 1, 128>}, {pipeline_mode = #tpu.pipeline_mode<synchronous>, transform_indices = @transform_14, window_bounds = array<i64: 1, 32>}, {pipeline_mode = #tpu.pipeline_mode<synchronous>, transform_indices = @transform_15, window_bounds = array<i64: 1, 32>}, {pipeline_mode = #tpu.pipeline_mode<synchronous>, transform_indices = @transform_16, window_bounds = array<i64: 32, 128>}, {pipeline_mode = #tpu.pipeline_mode<synchronous>, transform_indices = @transform_17, window_bounds = array<i64: 1, 128>}, {transform_indices = @transform_18, window_bounds = array<i64: 16, 128>}]} {
    %c0_i32 = arith.constant 0 : i32
    %0 = arith.cmpi eq, %arg1, %c0_i32 : i32
    %c1_i32 = arith.constant 1 : i32
    %1 = arith.cmpi eq, %arg1, %c1_i32 : i32
    %2 = arith.extui %0 : i1 to i32
    %c0_i32_0 = arith.constant 0 : i32
    %3 = arith.cmpi ne, %2, %c0_i32_0 : i32
    scf.if %3 {
      %cst_209 = arith.constant 0.000000e+00 : f32
      %576 = vector.broadcast %cst_209 : f32 to vector<3x16x32xf32>
      %c0_210 = arith.constant 0 : index
      %c0_211 = arith.constant 0 : index
      %c0_212 = arith.constant 0 : index
      %577 = vector.load %arg23[%c0_210, %c0_211, %c0_212] : memref<3x16x32xf32, #tpu.memory_space<vmem>>, vector<3x16x32xf32>
      tpu.vector_store %arg23[%c0_210, %c0_211, %c0_212], %576 {strides = array<i32>} : memref<3x16x32xf32, #tpu.memory_space<vmem>>, vector<3x16x32xf32>,
      %cst_213 = arith.constant 0.000000e+00 : f32
      %578 = vector.broadcast %cst_213 : f32 to vector<3x16x32xf32>
      %c0_214 = arith.constant 0 : index
      %c0_215 = arith.constant 0 : index
      %c0_216 = arith.constant 0 : index
      %579 = vector.load %arg24[%c0_214, %c0_215, %c0_216] : memref<3x16x32xf32, #tpu.memory_space<vmem>>, vector<3x16x32xf32>
      tpu.vector_store %arg24[%c0_214, %c0_215, %c0_216], %578 {strides = array<i32>} : memref<3x16x32xf32, #tpu.memory_space<vmem>>, vector<3x16x32xf32>,
    } else {
    }
    %4 = tpu.iota {dimensions = array<i32: 1>} : vector<1x128xi32>
    %c64_i32 = arith.constant 64 : i32
    %5 = vector.broadcast %c64_i32 : i32 to vector<1x128xi32>
    %6 = arith.cmpi sge, %4, %5 : vector<1x128xi32>
    %c96_i32 = arith.constant 96 : i32
    %7 = vector.broadcast %c96_i32 : i32 to vector<1x128xi32>
    %8 = arith.cmpi slt, %4, %7 : vector<1x128xi32>
    %9 = arith.andi %6, %8 : vector<1x128xi1>
    %cst = arith.constant 2.000000e+00 : f32
    %cst_1 = arith.constant 1.000000e+00 : f32
    %10 = vector.broadcast %cst : f32 to vector<1x128xf32>
    %11 = vector.broadcast %cst_1 : f32 to vector<1x128xf32>
    %12 = arith.select %9, %10, %11 : vector<1x128xi1>, vector<1x128xf32>
    %cst_2 = arith.constant -1.000000e+00 : f32
    %cst_3 = arith.constant 0.000000e+00 : f32
    %13 = vector.broadcast %cst_2 : f32 to vector<1x128xf32>
    %14 = vector.broadcast %cst_3 : f32 to vector<1x128xf32>
    %15 = arith.select %9, %13, %14 : vector<1x128xi1>, vector<1x128xf32>
    %c0 = arith.constant 0 : index
    %c0_4 = arith.constant 0 : index
    %c0_5 = arith.constant 0 : index
    %16 = vector.load %arg2[%c0, %c0_4, %c0_5] : memref<1x64x4xf32, #tpu.memory_space<vmem>>, vector<1x64x4xf32>
    %17 = vector.shape_cast %16 : vector<1x64x4xf32> to vector<64x4xf32>
    %c0_6 = arith.constant 0 : index
    %c0_7 = arith.constant 0 : index
    %18 = vector.load %arg3[%c0_6, %c0_7] : memref<4x128xf32, #tpu.memory_space<vmem>>, vector<4x128xf32>
    %cst_8 = arith.constant dense<0.000000e+00> : vector<64x128xf32>
    %19 = tpu.matmul %17, %18, %cst_8 {dimension_numbers = #tpu.dot_dimension_numbers<[1], [0], [0], [1], [0, 0, 1, 1], [], []>} : vector<64x4xf32>, vector<4x128xf32>, vector<64x128xf32> -> vector<64x128xf32>
    %c0_9 = arith.constant 0 : index
    %c0_10 = arith.constant 0 : index
    %20 = vector.load %arg5[%c0_9, %c0_10] : memref<1x128xf32, #tpu.memory_space<vmem>>, vector<1x128xf32>
    %21 = vector.broadcast %20 : vector<1x128xf32> to vector<64x128xf32>
    %22 = arith.addf %19, %21 : vector<64x128xf32>
    %c0_11 = arith.constant 0 : index
    %c0_12 = arith.constant 0 : index
    %23 = vector.load %arg21[%c0_11, %c0_12] : memref<64x128xf32, #tpu.memory_space<vmem>>, vector<64x128xf32>
    tpu.vector_store %arg21[%c0_11, %c0_12], %22 {strides = array<i32>} : memref<64x128xf32, #tpu.memory_space<vmem>>, vector<64x128xf32>,
    %c0_13 = arith.constant 0 : index
    %c0_14 = arith.constant 0 : index
    %24 = vector.load %arg6[%c0_13, %c0_14] : memref<1x32xf32, #tpu.memory_space<vmem>>, vector<1x32xf32>
    %c0_15 = arith.constant 0 : index
    %c0_16 = arith.constant 0 : index
    %25 = vector.load %arg7[%c0_15, %c0_16] : memref<1x32xf32, #tpu.memory_space<vmem>>, vector<1x32xf32>
    %c0_17 = arith.constant 0 : index
    %c0_18 = arith.constant 0 : index
    %c0_19 = arith.constant 0 : index
    %26 = vector.load %arg23[%c0_17, %c0_18, %c0_19] : memref<3x16x32xf32, #tpu.memory_space<vmem>>, vector<1x16x32xf32>
    %27 = vector.shape_cast %26 : vector<1x16x32xf32> to vector<16x32xf32>
    %c0_20 = arith.constant 0 : index
    %c0_21 = arith.constant 0 : index
    %c0_22 = arith.constant 0 : index
    %28 = vector.load %arg24[%c0_20, %c0_21, %c0_22] : memref<3x16x32xf32, #tpu.memory_space<vmem>>, vector<1x16x32xf32>
    %29 = vector.shape_cast %28 : vector<1x16x32xf32> to vector<16x32xf32>
    %c0_i32_23 = arith.constant 0 : i32
    %c16_i32 = arith.constant 16 : i32
    %30 = arith.muli %c0_i32_23, %c16_i32 : i32
    %31 = tpu.assume_multiple %30, 16 : i32
    %32 = arith.index_cast %31 : i32 to index
    %c0_24 = arith.constant 0 : index
    %33 = vector.load %arg21[%32, %c0_24] : memref<64x128xf32, #tpu.memory_space<vmem>>, vector<16x128xf32>
    %c0_25 = arith.constant 0 : index
    %c0_26 = arith.constant 0 : index
    %34 = vector.load %arg4[%c0_25, %c0_26] : memref<32x128xf32, #tpu.memory_space<vmem>>, vector<32x128xf32>
    %cst_27 = arith.constant dense<0.000000e+00> : vector<16x128xf32>
    %35 = tpu.matmul %27, %34, %cst_27 {dimension_numbers = #tpu.dot_dimension_numbers<[1], [0], [0], [1], [0, 0, 1, 1], [], []>} : vector<16x32xf32>, vector<32x128xf32>, vector<16x128xf32> -> vector<16x128xf32>
    %36 = arith.addf %33, %35 : vector<16x128xf32>
    %37 = vector.broadcast %12 : vector<1x128xf32> to vector<16x128xf32>
    %38 = arith.mulf %36, %37 : vector<16x128xf32>
    %39 = arith.negf %38 : vector<16x128xf32>
    %40 = math.exp %39 : vector<16x128xf32>
    %cst_28 = arith.constant 1.000000e+00 : f32
    %41 = vector.broadcast %cst_28 : f32 to vector<16x128xf32>
    %42 = arith.addf %41, %40 : vector<16x128xf32>
    %43 = arith.divf %41, %42 : vector<16x128xf32>
    %44 = vector.broadcast %12 : vector<1x128xf32> to vector<16x128xf32>
    %45 = arith.mulf %43, %44 : vector<16x128xf32>
    %46 = vector.broadcast %15 : vector<1x128xf32> to vector<16x128xf32>
    %47 = arith.addf %45, %46 : vector<16x128xf32>
    %48 = vector.extract_strided_slice %47 {offsets = [0, 0], sizes = [16, 32], strides = [1, 1]} : vector<16x128xf32> to vector<16x32xf32>
    %49 = vector.extract_strided_slice %47 {offsets = [0, 32], sizes = [16, 32], strides = [1, 1]} : vector<16x128xf32> to vector<16x32xf32>
    %50 = vector.extract_strided_slice %47 {offsets = [0, 64], sizes = [16, 32], strides = [1, 1]} : vector<16x128xf32> to vector<16x32xf32>
    %51 = vector.extract_strided_slice %47 {offsets = [0, 96], sizes = [16, 32], strides = [1, 1]} : vector<16x128xf32> to vector<16x32xf32>
    %52 = arith.mulf %49, %29 : vector<16x32xf32>
    %53 = arith.mulf %48, %50 : vector<16x32xf32>
    %54 = arith.addf %52, %53 : vector<16x32xf32>
    %55 = math.tanh %54 : vector<16x32xf32>
    %56 = arith.mulf %51, %55 : vector<16x32xf32>
    %cst_29 = arith.constant dense<0.000000e+00> : vector<16xf32>
    %57 = vector.multi_reduction <add>, %56, %cst_29 [1] : vector<16x32xf32> to vector<16xf32>
    %58 = vector.shape_cast %57 : vector<16xf32> to vector<16x1xf32>
    %cst_30 = arith.constant 3.200000e+01 : f32
    %59 = vector.broadcast %cst_30 : f32 to vector<16x1xf32>
    %60 = arith.divf %58, %59 : vector<16x1xf32>
    %61 = vector.broadcast %60 : vector<16x1xf32> to vector<16x32xf32>
    %62 = arith.subf %56, %61 : vector<16x32xf32>
    %63 = arith.mulf %62, %62 : vector<16x32xf32>
    %cst_31 = arith.constant dense<0.000000e+00> : vector<16xf32>
    %64 = vector.multi_reduction <add>, %63, %cst_31 [1] : vector<16x32xf32> to vector<16xf32>
    %65 = vector.shape_cast %64 : vector<16xf32> to vector<16x1xf32>
    %cst_32 = arith.constant 3.200000e+01 : f32
    %66 = vector.broadcast %cst_32 : f32 to vector<16x1xf32>
    %67 = arith.divf %65, %66 : vector<16x1xf32>
    %cst_33 = arith.constant 9.99999974E-6 : f32
    %68 = vector.broadcast %cst_33 : f32 to vector<16x1xf32>
    %69 = arith.addf %67, %68 : vector<16x1xf32>
    %70 = math.rsqrt %69 : vector<16x1xf32>
    %71 = vector.broadcast %70 : vector<16x1xf32> to vector<16x32xf32>
    %72 = arith.mulf %62, %71 : vector<16x32xf32>
    %73 = vector.broadcast %24 : vector<1x32xf32> to vector<16x32xf32>
    %74 = arith.mulf %72, %73 : vector<16x32xf32>
    %75 = vector.broadcast %25 : vector<1x32xf32> to vector<16x32xf32>
    %76 = arith.addf %74, %75 : vector<16x32xf32>
    %77 = arith.index_cast %31 : i32 to index
    %c0_34 = arith.constant 0 : index
    %78 = vector.load %arg22[%77, %c0_34] : memref<64x32xf32, #tpu.memory_space<vmem>>, vector<16x32xf32>
    tpu.vector_store %arg22[%77, %c0_34], %76 {strides = array<i32>} : memref<64x32xf32, #tpu.memory_space<vmem>>, vector<16x32xf32>,
    %c1_i32_35 = arith.constant 1 : i32
    %c16_i32_36 = arith.constant 16 : i32
    %79 = arith.muli %c1_i32_35, %c16_i32_36 : i32
    %80 = tpu.assume_multiple %79, 16 : i32
    %81 = arith.index_cast %80 : i32 to index
    %c0_37 = arith.constant 0 : index
    %82 = vector.load %arg21[%81, %c0_37] : memref<64x128xf32, #tpu.memory_space<vmem>>, vector<16x128xf32>
    %c0_38 = arith.constant 0 : index
    %c0_39 = arith.constant 0 : index
    %83 = vector.load %arg4[%c0_38, %c0_39] : memref<32x128xf32, #tpu.memory_space<vmem>>, vector<32x128xf32>
    %cst_40 = arith.constant dense<0.000000e+00> : vector<16x128xf32>
    %84 = tpu.matmul %56, %83, %cst_40 {dimension_numbers = #tpu.dot_dimension_numbers<[1], [0], [0], [1], [0, 0, 1, 1], [], []>} : vector<16x32xf32>, vector<32x128xf32>, vector<16x128xf32> -> vector<16x128xf32>
    %85 = arith.addf %82, %84 : vector<16x128xf32>
    %86 = vector.broadcast %12 : vector<1x128xf32> to vector<16x128xf32>
    %87 = arith.mulf %85, %86 : vector<16x128xf32>
    %88 = arith.negf %87 : vector<16x128xf32>
    %89 = math.exp %88 : vector<16x128xf32>
    %cst_41 = arith.constant 1.000000e+00 : f32
    %90 = vector.broadcast %cst_41 : f32 to vector<16x128xf32>
    %91 = arith.addf %90, %89 : vector<16x128xf32>
    %92 = arith.divf %90, %91 : vector<16x128xf32>
    %93 = vector.broadcast %12 : vector<1x128xf32> to vector<16x128xf32>
    %94 = arith.mulf %92, %93 : vector<16x128xf32>
    %95 = vector.broadcast %15 : vector<1x128xf32> to vector<16x128xf32>
    %96 = arith.addf %94, %95 : vector<16x128xf32>
    %97 = vector.extract_strided_slice %96 {offsets = [0, 0], sizes = [16, 32], strides = [1, 1]} : vector<16x128xf32> to vector<16x32xf32>
    %98 = vector.extract_strided_slice %96 {offsets = [0, 32], sizes = [16, 32], strides = [1, 1]} : vector<16x128xf32> to vector<16x32xf32>
    %99 = vector.extract_strided_slice %96 {offsets = [0, 64], sizes = [16, 32], strides = [1, 1]} : vector<16x128xf32> to vector<16x32xf32>
    %100 = vector.extract_strided_slice %96 {offsets = [0, 96], sizes = [16, 32], strides = [1, 1]} : vector<16x128xf32> to vector<16x32xf32>
    %101 = arith.mulf %98, %54 : vector<16x32xf32>
    %102 = arith.mulf %97, %99 : vector<16x32xf32>
    %103 = arith.addf %101, %102 : vector<16x32xf32>
    %104 = math.tanh %103 : vector<16x32xf32>
    %105 = arith.mulf %100, %104 : vector<16x32xf32>
    %cst_42 = arith.constant dense<0.000000e+00> : vector<16xf32>
    %106 = vector.multi_reduction <add>, %105, %cst_42 [1] : vector<16x32xf32> to vector<16xf32>
    %107 = vector.shape_cast %106 : vector<16xf32> to vector<16x1xf32>
    %cst_43 = arith.constant 3.200000e+01 : f32
    %108 = vector.broadcast %cst_43 : f32 to vector<16x1xf32>
    %109 = arith.divf %107, %108 : vector<16x1xf32>
    %110 = vector.broadcast %109 : vector<16x1xf32> to vector<16x32xf32>
    %111 = arith.subf %105, %110 : vector<16x32xf32>
    %112 = arith.mulf %111, %111 : vector<16x32xf32>
    %cst_44 = arith.constant dense<0.000000e+00> : vector<16xf32>
    %113 = vector.multi_reduction <add>, %112, %cst_44 [1] : vector<16x32xf32> to vector<16xf32>
    %114 = vector.shape_cast %113 : vector<16xf32> to vector<16x1xf32>
    %cst_45 = arith.constant 3.200000e+01 : f32
    %115 = vector.broadcast %cst_45 : f32 to vector<16x1xf32>
    %116 = arith.divf %114, %115 : vector<16x1xf32>
    %cst_46 = arith.constant 9.99999974E-6 : f32
    %117 = vector.broadcast %cst_46 : f32 to vector<16x1xf32>
    %118 = arith.addf %116, %117 : vector<16x1xf32>
    %119 = math.rsqrt %118 : vector<16x1xf32>
    %120 = vector.broadcast %119 : vector<16x1xf32> to vector<16x32xf32>
    %121 = arith.mulf %111, %120 : vector<16x32xf32>
    %122 = vector.broadcast %24 : vector<1x32xf32> to vector<16x32xf32>
    %123 = arith.mulf %121, %122 : vector<16x32xf32>
    %124 = vector.broadcast %25 : vector<1x32xf32> to vector<16x32xf32>
    %125 = arith.addf %123, %124 : vector<16x32xf32>
    %126 = arith.index_cast %80 : i32 to index
    %c0_47 = arith.constant 0 : index
    %127 = vector.load %arg22[%126, %c0_47] : memref<64x32xf32, #tpu.memory_space<vmem>>, vector<16x32xf32>
    tpu.vector_store %arg22[%126, %c0_47], %125 {strides = array<i32>} : memref<64x32xf32, #tpu.memory_space<vmem>>, vector<16x32xf32>,
    %c2_i32 = arith.constant 2 : i32
    %c16_i32_48 = arith.constant 16 : i32
    %128 = arith.muli %c2_i32, %c16_i32_48 : i32
    %129 = tpu.assume_multiple %128, 16 : i32
    %130 = arith.index_cast %129 : i32 to index
    %c0_49 = arith.constant 0 : index
    %131 = vector.load %arg21[%130, %c0_49] : memref<64x128xf32, #tpu.memory_space<vmem>>, vector<16x128xf32>
    %c0_50 = arith.constant 0 : index
    %c0_51 = arith.constant 0 : index
    %132 = vector.load %arg4[%c0_50, %c0_51] : memref<32x128xf32, #tpu.memory_space<vmem>>, vector<32x128xf32>
    %cst_52 = arith.constant dense<0.000000e+00> : vector<16x128xf32>
    %133 = tpu.matmul %105, %132, %cst_52 {dimension_numbers = #tpu.dot_dimension_numbers<[1], [0], [0], [1], [0, 0, 1, 1], [], []>} : vector<16x32xf32>, vector<32x128xf32>, vector<16x128xf32> -> vector<16x128xf32>
    %134 = arith.addf %131, %133 : vector<16x128xf32>
    %135 = vector.broadcast %12 : vector<1x128xf32> to vector<16x128xf32>
    %136 = arith.mulf %134, %135 : vector<16x128xf32>
    %137 = arith.negf %136 : vector<16x128xf32>
    %138 = math.exp %137 : vector<16x128xf32>
    %cst_53 = arith.constant 1.000000e+00 : f32
    %139 = vector.broadcast %cst_53 : f32 to vector<16x128xf32>
    %140 = arith.addf %139, %138 : vector<16x128xf32>
    %141 = arith.divf %139, %140 : vector<16x128xf32>
    %142 = vector.broadcast %12 : vector<1x128xf32> to vector<16x128xf32>
    %143 = arith.mulf %141, %142 : vector<16x128xf32>
    %144 = vector.broadcast %15 : vector<1x128xf32> to vector<16x128xf32>
    %145 = arith.addf %143, %144 : vector<16x128xf32>
    %146 = vector.extract_strided_slice %145 {offsets = [0, 0], sizes = [16, 32], strides = [1, 1]} : vector<16x128xf32> to vector<16x32xf32>
    %147 = vector.extract_strided_slice %145 {offsets = [0, 32], sizes = [16, 32], strides = [1, 1]} : vector<16x128xf32> to vector<16x32xf32>
    %148 = vector.extract_strided_slice %145 {offsets = [0, 64], sizes = [16, 32], strides = [1, 1]} : vector<16x128xf32> to vector<16x32xf32>
    %149 = vector.extract_strided_slice %145 {offsets = [0, 96], sizes = [16, 32], strides = [1, 1]} : vector<16x128xf32> to vector<16x32xf32>
    %150 = arith.mulf %147, %103 : vector<16x32xf32>
    %151 = arith.mulf %146, %148 : vector<16x32xf32>
    %152 = arith.addf %150, %151 : vector<16x32xf32>
    %153 = math.tanh %152 : vector<16x32xf32>
    %154 = arith.mulf %149, %153 : vector<16x32xf32>
    %cst_54 = arith.constant dense<0.000000e+00> : vector<16xf32>
    %155 = vector.multi_reduction <add>, %154, %cst_54 [1] : vector<16x32xf32> to vector<16xf32>
    %156 = vector.shape_cast %155 : vector<16xf32> to vector<16x1xf32>
    %cst_55 = arith.constant 3.200000e+01 : f32
    %157 = vector.broadcast %cst_55 : f32 to vector<16x1xf32>
    %158 = arith.divf %156, %157 : vector<16x1xf32>
    %159 = vector.broadcast %158 : vector<16x1xf32> to vector<16x32xf32>
    %160 = arith.subf %154, %159 : vector<16x32xf32>
    %161 = arith.mulf %160, %160 : vector<16x32xf32>
    %cst_56 = arith.constant dense<0.000000e+00> : vector<16xf32>
    %162 = vector.multi_reduction <add>, %161, %cst_56 [1] : vector<16x32xf32> to vector<16xf32>
    %163 = vector.shape_cast %162 : vector<16xf32> to vector<16x1xf32>
    %cst_57 = arith.constant 3.200000e+01 : f32
    %164 = vector.broadcast %cst_57 : f32 to vector<16x1xf32>
    %165 = arith.divf %163, %164 : vector<16x1xf32>
    %cst_58 = arith.constant 9.99999974E-6 : f32
    %166 = vector.broadcast %cst_58 : f32 to vector<16x1xf32>
    %167 = arith.addf %165, %166 : vector<16x1xf32>
    %168 = math.rsqrt %167 : vector<16x1xf32>
    %169 = vector.broadcast %168 : vector<16x1xf32> to vector<16x32xf32>
    %170 = arith.mulf %160, %169 : vector<16x32xf32>
    %171 = vector.broadcast %24 : vector<1x32xf32> to vector<16x32xf32>
    %172 = arith.mulf %170, %171 : vector<16x32xf32>
    %173 = vector.broadcast %25 : vector<1x32xf32> to vector<16x32xf32>
    %174 = arith.addf %172, %173 : vector<16x32xf32>
    %175 = arith.index_cast %129 : i32 to index
    %c0_59 = arith.constant 0 : index
    %176 = vector.load %arg22[%175, %c0_59] : memref<64x32xf32, #tpu.memory_space<vmem>>, vector<16x32xf32>
    tpu.vector_store %arg22[%175, %c0_59], %174 {strides = array<i32>} : memref<64x32xf32, #tpu.memory_space<vmem>>, vector<16x32xf32>,
    %c3_i32 = arith.constant 3 : i32
    %c16_i32_60 = arith.constant 16 : i32
    %177 = arith.muli %c3_i32, %c16_i32_60 : i32
    %178 = tpu.assume_multiple %177, 16 : i32
    %179 = arith.index_cast %178 : i32 to index
    %c0_61 = arith.constant 0 : index
    %180 = vector.load %arg21[%179, %c0_61] : memref<64x128xf32, #tpu.memory_space<vmem>>, vector<16x128xf32>
    %c0_62 = arith.constant 0 : index
    %c0_63 = arith.constant 0 : index
    %181 = vector.load %arg4[%c0_62, %c0_63] : memref<32x128xf32, #tpu.memory_space<vmem>>, vector<32x128xf32>
    %cst_64 = arith.constant dense<0.000000e+00> : vector<16x128xf32>
    %182 = tpu.matmul %154, %181, %cst_64 {dimension_numbers = #tpu.dot_dimension_numbers<[1], [0], [0], [1], [0, 0, 1, 1], [], []>} : vector<16x32xf32>, vector<32x128xf32>, vector<16x128xf32> -> vector<16x128xf32>
    %183 = arith.addf %180, %182 : vector<16x128xf32>
    %184 = vector.broadcast %12 : vector<1x128xf32> to vector<16x128xf32>
    %185 = arith.mulf %183, %184 : vector<16x128xf32>
    %186 = arith.negf %185 : vector<16x128xf32>
    %187 = math.exp %186 : vector<16x128xf32>
    %cst_65 = arith.constant 1.000000e+00 : f32
    %188 = vector.broadcast %cst_65 : f32 to vector<16x128xf32>
    %189 = arith.addf %188, %187 : vector<16x128xf32>
    %190 = arith.divf %188, %189 : vector<16x128xf32>
    %191 = vector.broadcast %12 : vector<1x128xf32> to vector<16x128xf32>
    %192 = arith.mulf %190, %191 : vector<16x128xf32>
    %193 = vector.broadcast %15 : vector<1x128xf32> to vector<16x128xf32>
    %194 = arith.addf %192, %193 : vector<16x128xf32>
    %195 = vector.extract_strided_slice %194 {offsets = [0, 0], sizes = [16, 32], strides = [1, 1]} : vector<16x128xf32> to vector<16x32xf32>
    %196 = vector.extract_strided_slice %194 {offsets = [0, 32], sizes = [16, 32], strides = [1, 1]} : vector<16x128xf32> to vector<16x32xf32>
    %197 = vector.extract_strided_slice %194 {offsets = [0, 64], sizes = [16, 32], strides = [1, 1]} : vector<16x128xf32> to vector<16x32xf32>
    %198 = vector.extract_strided_slice %194 {offsets = [0, 96], sizes = [16, 32], strides = [1, 1]} : vector<16x128xf32> to vector<16x32xf32>
    %199 = arith.mulf %196, %152 : vector<16x32xf32>
    %200 = arith.mulf %195, %197 : vector<16x32xf32>
    %201 = arith.addf %199, %200 : vector<16x32xf32>
    %202 = math.tanh %201 : vector<16x32xf32>
    %203 = arith.mulf %198, %202 : vector<16x32xf32>
    %cst_66 = arith.constant dense<0.000000e+00> : vector<16xf32>
    %204 = vector.multi_reduction <add>, %203, %cst_66 [1] : vector<16x32xf32> to vector<16xf32>
    %205 = vector.shape_cast %204 : vector<16xf32> to vector<16x1xf32>
    %cst_67 = arith.constant 3.200000e+01 : f32
    %206 = vector.broadcast %cst_67 : f32 to vector<16x1xf32>
    %207 = arith.divf %205, %206 : vector<16x1xf32>
    %208 = vector.broadcast %207 : vector<16x1xf32> to vector<16x32xf32>
    %209 = arith.subf %203, %208 : vector<16x32xf32>
    %210 = arith.mulf %209, %209 : vector<16x32xf32>
    %cst_68 = arith.constant dense<0.000000e+00> : vector<16xf32>
    %211 = vector.multi_reduction <add>, %210, %cst_68 [1] : vector<16x32xf32> to vector<16xf32>
    %212 = vector.shape_cast %211 : vector<16xf32> to vector<16x1xf32>
    %cst_69 = arith.constant 3.200000e+01 : f32
    %213 = vector.broadcast %cst_69 : f32 to vector<16x1xf32>
    %214 = arith.divf %212, %213 : vector<16x1xf32>
    %cst_70 = arith.constant 9.99999974E-6 : f32
    %215 = vector.broadcast %cst_70 : f32 to vector<16x1xf32>
    %216 = arith.addf %214, %215 : vector<16x1xf32>
    %217 = math.rsqrt %216 : vector<16x1xf32>
    %218 = vector.broadcast %217 : vector<16x1xf32> to vector<16x32xf32>
    %219 = arith.mulf %209, %218 : vector<16x32xf32>
    %220 = vector.broadcast %24 : vector<1x32xf32> to vector<16x32xf32>
    %221 = arith.mulf %219, %220 : vector<16x32xf32>
    %222 = vector.broadcast %25 : vector<1x32xf32> to vector<16x32xf32>
    %223 = arith.addf %221, %222 : vector<16x32xf32>
    %224 = arith.index_cast %178 : i32 to index
    %c0_71 = arith.constant 0 : index
    %225 = vector.load %arg22[%224, %c0_71] : memref<64x32xf32, #tpu.memory_space<vmem>>, vector<16x32xf32>
    tpu.vector_store %arg22[%224, %c0_71], %223 {strides = array<i32>} : memref<64x32xf32, #tpu.memory_space<vmem>>, vector<16x32xf32>,
    %c4_i32 = arith.constant 4 : i32
    %c0_72 = arith.constant 0 : index
    %c0_73 = arith.constant 0 : index
    %c0_74 = arith.constant 0 : index
    %226 = vector.load %arg23[%c0_72, %c0_73, %c0_74] : memref<3x16x32xf32, #tpu.memory_space<vmem>>, vector<1x16x32xf32>
    %227 = vector.shape_cast %226 : vector<1x16x32xf32> to vector<16x32xf32>
    %228 = vector.shape_cast %203 : vector<16x32xf32> to vector<1x16x32xf32>
    tpu.vector_store %arg23[%c0_72, %c0_73, %c0_74], %228 {strides = array<i32>} : memref<3x16x32xf32, #tpu.memory_space<vmem>>, vector<1x16x32xf32>,
    %c0_75 = arith.constant 0 : index
    %c0_76 = arith.constant 0 : index
    %c0_77 = arith.constant 0 : index
    %229 = vector.load %arg24[%c0_75, %c0_76, %c0_77] : memref<3x16x32xf32, #tpu.memory_space<vmem>>, vector<1x16x32xf32>
    %230 = vector.shape_cast %229 : vector<1x16x32xf32> to vector<16x32xf32>
    %231 = vector.shape_cast %201 : vector<16x32xf32> to vector<1x16x32xf32>
    tpu.vector_store %arg24[%c0_75, %c0_76, %c0_77], %231 {strides = array<i32>} : memref<3x16x32xf32, #tpu.memory_space<vmem>>, vector<1x16x32xf32>,
    %c0_78 = arith.constant 0 : index
    %c0_79 = arith.constant 0 : index
    %232 = vector.load %arg22[%c0_78, %c0_79] : memref<64x32xf32, #tpu.memory_space<vmem>>, vector<64x32xf32>
    %c0_80 = arith.constant 0 : index
    %c0_81 = arith.constant 0 : index
    %233 = vector.load %arg8[%c0_80, %c0_81] : memref<32x128xf32, #tpu.memory_space<vmem>>, vector<32x128xf32>
    %cst_82 = arith.constant dense<0.000000e+00> : vector<64x128xf32>
    %234 = tpu.matmul %232, %233, %cst_82 {dimension_numbers = #tpu.dot_dimension_numbers<[1], [0], [0], [1], [0, 0, 1, 1], [], []>} : vector<64x32xf32>, vector<32x128xf32>, vector<64x128xf32> -> vector<64x128xf32>
    %c0_83 = arith.constant 0 : index
    %c0_84 = arith.constant 0 : index
    %235 = vector.load %arg10[%c0_83, %c0_84] : memref<1x128xf32, #tpu.memory_space<vmem>>, vector<1x128xf32>
    %236 = vector.broadcast %235 : vector<1x128xf32> to vector<64x128xf32>
    %237 = arith.addf %234, %236 : vector<64x128xf32>
    %c0_85 = arith.constant 0 : index
    %c0_86 = arith.constant 0 : index
    %238 = vector.load %arg21[%c0_85, %c0_86] : memref<64x128xf32, #tpu.memory_space<vmem>>, vector<64x128xf32>
    tpu.vector_store %arg21[%c0_85, %c0_86], %237 {strides = array<i32>} : memref<64x128xf32, #tpu.memory_space<vmem>>, vector<64x128xf32>,
    %c0_87 = arith.constant 0 : index
    %c0_88 = arith.constant 0 : index
    %239 = vector.load %arg11[%c0_87, %c0_88] : memref<1x32xf32, #tpu.memory_space<vmem>>, vector<1x32xf32>
    %c0_89 = arith.constant 0 : index
    %c0_90 = arith.constant 0 : index
    %240 = vector.load %arg12[%c0_89, %c0_90] : memref<1x32xf32, #tpu.memory_space<vmem>>, vector<1x32xf32>
    %c1 = arith.constant 1 : index
    %c0_91 = arith.constant 0 : index
    %c0_92 = arith.constant 0 : index
    %241 = vector.load %arg23[%c1, %c0_91, %c0_92] : memref<3x16x32xf32, #tpu.memory_space<vmem>>, vector<1x16x32xf32>
    %242 = vector.shape_cast %241 : vector<1x16x32xf32> to vector<16x32xf32>
    %c1_93 = arith.constant 1 : index
    %c0_94 = arith.constant 0 : index
    %c0_95 = arith.constant 0 : index
    %243 = vector.load %arg24[%c1_93, %c0_94, %c0_95] : memref<3x16x32xf32, #tpu.memory_space<vmem>>, vector<1x16x32xf32>
    %244 = vector.shape_cast %243 : vector<1x16x32xf32> to vector<16x32xf32>
    %c0_i32_96 = arith.constant 0 : i32
    %c16_i32_97 = arith.constant 16 : i32
    %245 = arith.muli %c0_i32_96, %c16_i32_97 : i32
    %246 = tpu.assume_multiple %245, 16 : i32
    %247 = arith.index_cast %246 : i32 to index
    %c0_98 = arith.constant 0 : index
    %248 = vector.load %arg21[%247, %c0_98] : memref<64x128xf32, #tpu.memory_space<vmem>>, vector<16x128xf32>
    %c0_99 = arith.constant 0 : index
    %c0_100 = arith.constant 0 : index
    %249 = vector.load %arg9[%c0_99, %c0_100] : memref<32x128xf32, #tpu.memory_space<vmem>>, vector<32x128xf32>
    %cst_101 = arith.constant dense<0.000000e+00> : vector<16x128xf32>
    %250 = tpu.matmul %242, %249, %cst_101 {dimension_numbers = #tpu.dot_dimension_numbers<[1], [0], [0], [1], [0, 0, 1, 1], [], []>} : vector<16x32xf32>, vector<32x128xf32>, vector<16x128xf32> -> vector<16x128xf32>
    %251 = arith.addf %248, %250 : vector<16x128xf32>
    %252 = vector.broadcast %12 : vector<1x128xf32> to vector<16x128xf32>
    %253 = arith.mulf %251, %252 : vector<16x128xf32>
    %254 = arith.negf %253 : vector<16x128xf32>
    %255 = math.exp %254 : vector<16x128xf32>
    %cst_102 = arith.constant 1.000000e+00 : f32
    %256 = vector.broadcast %cst_102 : f32 to vector<16x128xf32>
    %257 = arith.addf %256, %255 : vector<16x128xf32>
    %258 = arith.divf %256, %257 : vector<16x128xf32>
    %259 = vector.broadcast %12 : vector<1x128xf32> to vector<16x128xf32>
    %260 = arith.mulf %258, %259 : vector<16x128xf32>
    %261 = vector.broadcast %15 : vector<1x128xf32> to vector<16x128xf32>
    %262 = arith.addf %260, %261 : vector<16x128xf32>
    %263 = vector.extract_strided_slice %262 {offsets = [0, 0], sizes = [16, 32], strides = [1, 1]} : vector<16x128xf32> to vector<16x32xf32>
    %264 = vector.extract_strided_slice %262 {offsets = [0, 32], sizes = [16, 32], strides = [1, 1]} : vector<16x128xf32> to vector<16x32xf32>
    %265 = vector.extract_strided_slice %262 {offsets = [0, 64], sizes = [16, 32], strides = [1, 1]} : vector<16x128xf32> to vector<16x32xf32>
    %266 = vector.extract_strided_slice %262 {offsets = [0, 96], sizes = [16, 32], strides = [1, 1]} : vector<16x128xf32> to vector<16x32xf32>
    %267 = arith.mulf %264, %244 : vector<16x32xf32>
    %268 = arith.mulf %263, %265 : vector<16x32xf32>
    %269 = arith.addf %267, %268 : vector<16x32xf32>
    %270 = math.tanh %269 : vector<16x32xf32>
    %271 = arith.mulf %266, %270 : vector<16x32xf32>
    %cst_103 = arith.constant dense<0.000000e+00> : vector<16xf32>
    %272 = vector.multi_reduction <add>, %271, %cst_103 [1] : vector<16x32xf32> to vector<16xf32>
    %273 = vector.shape_cast %272 : vector<16xf32> to vector<16x1xf32>
    %cst_104 = arith.constant 3.200000e+01 : f32
    %274 = vector.broadcast %cst_104 : f32 to vector<16x1xf32>
    %275 = arith.divf %273, %274 : vector<16x1xf32>
    %276 = vector.broadcast %275 : vector<16x1xf32> to vector<16x32xf32>
    %277 = arith.subf %271, %276 : vector<16x32xf32>
    %278 = arith.mulf %277, %277 : vector<16x32xf32>
    %cst_105 = arith.constant dense<0.000000e+00> : vector<16xf32>
    %279 = vector.multi_reduction <add>, %278, %cst_105 [1] : vector<16x32xf32> to vector<16xf32>
    %280 = vector.shape_cast %279 : vector<16xf32> to vector<16x1xf32>
    %cst_106 = arith.constant 3.200000e+01 : f32
    %281 = vector.broadcast %cst_106 : f32 to vector<16x1xf32>
    %282 = arith.divf %280, %281 : vector<16x1xf32>
    %cst_107 = arith.constant 9.99999974E-6 : f32
    %283 = vector.broadcast %cst_107 : f32 to vector<16x1xf32>
    %284 = arith.addf %282, %283 : vector<16x1xf32>
    %285 = math.rsqrt %284 : vector<16x1xf32>
    %286 = vector.broadcast %285 : vector<16x1xf32> to vector<16x32xf32>
    %287 = arith.mulf %277, %286 : vector<16x32xf32>
    %288 = vector.broadcast %239 : vector<1x32xf32> to vector<16x32xf32>
    %289 = arith.mulf %287, %288 : vector<16x32xf32>
    %290 = vector.broadcast %240 : vector<1x32xf32> to vector<16x32xf32>
    %291 = arith.addf %289, %290 : vector<16x32xf32>
    %292 = arith.index_cast %246 : i32 to index
    %c0_108 = arith.constant 0 : index
    %293 = vector.load %arg22[%292, %c0_108] : memref<64x32xf32, #tpu.memory_space<vmem>>, vector<16x32xf32>
    tpu.vector_store %arg22[%292, %c0_108], %291 {strides = array<i32>} : memref<64x32xf32, #tpu.memory_space<vmem>>, vector<16x32xf32>,
    %c1_i32_109 = arith.constant 1 : i32
    %c16_i32_110 = arith.constant 16 : i32
    %294 = arith.muli %c1_i32_109, %c16_i32_110 : i32
    %295 = tpu.assume_multiple %294, 16 : i32
    %296 = arith.index_cast %295 : i32 to index
    %c0_111 = arith.constant 0 : index
    %297 = vector.load %arg21[%296, %c0_111] : memref<64x128xf32, #tpu.memory_space<vmem>>, vector<16x128xf32>
    %c0_112 = arith.constant 0 : index
    %c0_113 = arith.constant 0 : index
    %298 = vector.load %arg9[%c0_112, %c0_113] : memref<32x128xf32, #tpu.memory_space<vmem>>, vector<32x128xf32>
    %cst_114 = arith.constant dense<0.000000e+00> : vector<16x128xf32>
    %299 = tpu.matmul %271, %298, %cst_114 {dimension_numbers = #tpu.dot_dimension_numbers<[1], [0], [0], [1], [0, 0, 1, 1], [], []>} : vector<16x32xf32>, vector<32x128xf32>, vector<16x128xf32> -> vector<16x128xf32>
    %300 = arith.addf %297, %299 : vector<16x128xf32>
    %301 = vector.broadcast %12 : vector<1x128xf32> to vector<16x128xf32>
    %302 = arith.mulf %300, %301 : vector<16x128xf32>
    %303 = arith.negf %302 : vector<16x128xf32>
    %304 = math.exp %303 : vector<16x128xf32>
    %cst_115 = arith.constant 1.000000e+00 : f32
    %305 = vector.broadcast %cst_115 : f32 to vector<16x128xf32>
    %306 = arith.addf %305, %304 : vector<16x128xf32>
    %307 = arith.divf %305, %306 : vector<16x128xf32>
    %308 = vector.broadcast %12 : vector<1x128xf32> to vector<16x128xf32>
    %309 = arith.mulf %307, %308 : vector<16x128xf32>
    %310 = vector.broadcast %15 : vector<1x128xf32> to vector<16x128xf32>
    %311 = arith.addf %309, %310 : vector<16x128xf32>
    %312 = vector.extract_strided_slice %311 {offsets = [0, 0], sizes = [16, 32], strides = [1, 1]} : vector<16x128xf32> to vector<16x32xf32>
    %313 = vector.extract_strided_slice %311 {offsets = [0, 32], sizes = [16, 32], strides = [1, 1]} : vector<16x128xf32> to vector<16x32xf32>
    %314 = vector.extract_strided_slice %311 {offsets = [0, 64], sizes = [16, 32], strides = [1, 1]} : vector<16x128xf32> to vector<16x32xf32>
    %315 = vector.extract_strided_slice %311 {offsets = [0, 96], sizes = [16, 32], strides = [1, 1]} : vector<16x128xf32> to vector<16x32xf32>
    %316 = arith.mulf %313, %269 : vector<16x32xf32>
    %317 = arith.mulf %312, %314 : vector<16x32xf32>
    %318 = arith.addf %316, %317 : vector<16x32xf32>
    %319 = math.tanh %318 : vector<16x32xf32>
    %320 = arith.mulf %315, %319 : vector<16x32xf32>
    %cst_116 = arith.constant dense<0.000000e+00> : vector<16xf32>
    %321 = vector.multi_reduction <add>, %320, %cst_116 [1] : vector<16x32xf32> to vector<16xf32>
    %322 = vector.shape_cast %321 : vector<16xf32> to vector<16x1xf32>
    %cst_117 = arith.constant 3.200000e+01 : f32
    %323 = vector.broadcast %cst_117 : f32 to vector<16x1xf32>
    %324 = arith.divf %322, %323 : vector<16x1xf32>
    %325 = vector.broadcast %324 : vector<16x1xf32> to vector<16x32xf32>
    %326 = arith.subf %320, %325 : vector<16x32xf32>
    %327 = arith.mulf %326, %326 : vector<16x32xf32>
    %cst_118 = arith.constant dense<0.000000e+00> : vector<16xf32>
    %328 = vector.multi_reduction <add>, %327, %cst_118 [1] : vector<16x32xf32> to vector<16xf32>
    %329 = vector.shape_cast %328 : vector<16xf32> to vector<16x1xf32>
    %cst_119 = arith.constant 3.200000e+01 : f32
    %330 = vector.broadcast %cst_119 : f32 to vector<16x1xf32>
    %331 = arith.divf %329, %330 : vector<16x1xf32>
    %cst_120 = arith.constant 9.99999974E-6 : f32
    %332 = vector.broadcast %cst_120 : f32 to vector<16x1xf32>
    %333 = arith.addf %331, %332 : vector<16x1xf32>
    %334 = math.rsqrt %333 : vector<16x1xf32>
    %335 = vector.broadcast %334 : vector<16x1xf32> to vector<16x32xf32>
    %336 = arith.mulf %326, %335 : vector<16x32xf32>
    %337 = vector.broadcast %239 : vector<1x32xf32> to vector<16x32xf32>
    %338 = arith.mulf %336, %337 : vector<16x32xf32>
    %339 = vector.broadcast %240 : vector<1x32xf32> to vector<16x32xf32>
    %340 = arith.addf %338, %339 : vector<16x32xf32>
    %341 = arith.index_cast %295 : i32 to index
    %c0_121 = arith.constant 0 : index
    %342 = vector.load %arg22[%341, %c0_121] : memref<64x32xf32, #tpu.memory_space<vmem>>, vector<16x32xf32>
    tpu.vector_store %arg22[%341, %c0_121], %340 {strides = array<i32>} : memref<64x32xf32, #tpu.memory_space<vmem>>, vector<16x32xf32>,
    %c2_i32_122 = arith.constant 2 : i32
    %c16_i32_123 = arith.constant 16 : i32
    %343 = arith.muli %c2_i32_122, %c16_i32_123 : i32
    %344 = tpu.assume_multiple %343, 16 : i32
    %345 = arith.index_cast %344 : i32 to index
    %c0_124 = arith.constant 0 : index
    %346 = vector.load %arg21[%345, %c0_124] : memref<64x128xf32, #tpu.memory_space<vmem>>, vector<16x128xf32>
    %c0_125 = arith.constant 0 : index
    %c0_126 = arith.constant 0 : index
    %347 = vector.load %arg9[%c0_125, %c0_126] : memref<32x128xf32, #tpu.memory_space<vmem>>, vector<32x128xf32>
    %cst_127 = arith.constant dense<0.000000e+00> : vector<16x128xf32>
    %348 = tpu.matmul %320, %347, %cst_127 {dimension_numbers = #tpu.dot_dimension_numbers<[1], [0], [0], [1], [0, 0, 1, 1], [], []>} : vector<16x32xf32>, vector<32x128xf32>, vector<16x128xf32> -> vector<16x128xf32>
    %349 = arith.addf %346, %348 : vector<16x128xf32>
    %350 = vector.broadcast %12 : vector<1x128xf32> to vector<16x128xf32>
    %351 = arith.mulf %349, %350 : vector<16x128xf32>
    %352 = arith.negf %351 : vector<16x128xf32>
    %353 = math.exp %352 : vector<16x128xf32>
    %cst_128 = arith.constant 1.000000e+00 : f32
    %354 = vector.broadcast %cst_128 : f32 to vector<16x128xf32>
    %355 = arith.addf %354, %353 : vector<16x128xf32>
    %356 = arith.divf %354, %355 : vector<16x128xf32>
    %357 = vector.broadcast %12 : vector<1x128xf32> to vector<16x128xf32>
    %358 = arith.mulf %356, %357 : vector<16x128xf32>
    %359 = vector.broadcast %15 : vector<1x128xf32> to vector<16x128xf32>
    %360 = arith.addf %358, %359 : vector<16x128xf32>
    %361 = vector.extract_strided_slice %360 {offsets = [0, 0], sizes = [16, 32], strides = [1, 1]} : vector<16x128xf32> to vector<16x32xf32>
    %362 = vector.extract_strided_slice %360 {offsets = [0, 32], sizes = [16, 32], strides = [1, 1]} : vector<16x128xf32> to vector<16x32xf32>
    %363 = vector.extract_strided_slice %360 {offsets = [0, 64], sizes = [16, 32], strides = [1, 1]} : vector<16x128xf32> to vector<16x32xf32>
    %364 = vector.extract_strided_slice %360 {offsets = [0, 96], sizes = [16, 32], strides = [1, 1]} : vector<16x128xf32> to vector<16x32xf32>
    %365 = arith.mulf %362, %318 : vector<16x32xf32>
    %366 = arith.mulf %361, %363 : vector<16x32xf32>
    %367 = arith.addf %365, %366 : vector<16x32xf32>
    %368 = math.tanh %367 : vector<16x32xf32>
    %369 = arith.mulf %364, %368 : vector<16x32xf32>
    %cst_129 = arith.constant dense<0.000000e+00> : vector<16xf32>
    %370 = vector.multi_reduction <add>, %369, %cst_129 [1] : vector<16x32xf32> to vector<16xf32>
    %371 = vector.shape_cast %370 : vector<16xf32> to vector<16x1xf32>
    %cst_130 = arith.constant 3.200000e+01 : f32
    %372 = vector.broadcast %cst_130 : f32 to vector<16x1xf32>
    %373 = arith.divf %371, %372 : vector<16x1xf32>
    %374 = vector.broadcast %373 : vector<16x1xf32> to vector<16x32xf32>
    %375 = arith.subf %369, %374 : vector<16x32xf32>
    %376 = arith.mulf %375, %375 : vector<16x32xf32>
    %cst_131 = arith.constant dense<0.000000e+00> : vector<16xf32>
    %377 = vector.multi_reduction <add>, %376, %cst_131 [1] : vector<16x32xf32> to vector<16xf32>
    %378 = vector.shape_cast %377 : vector<16xf32> to vector<16x1xf32>
    %cst_132 = arith.constant 3.200000e+01 : f32
    %379 = vector.broadcast %cst_132 : f32 to vector<16x1xf32>
    %380 = arith.divf %378, %379 : vector<16x1xf32>
    %cst_133 = arith.constant 9.99999974E-6 : f32
    %381 = vector.broadcast %cst_133 : f32 to vector<16x1xf32>
    %382 = arith.addf %380, %381 : vector<16x1xf32>
    %383 = math.rsqrt %382 : vector<16x1xf32>
    %384 = vector.broadcast %383 : vector<16x1xf32> to vector<16x32xf32>
    %385 = arith.mulf %375, %384 : vector<16x32xf32>
    %386 = vector.broadcast %239 : vector<1x32xf32> to vector<16x32xf32>
    %387 = arith.mulf %385, %386 : vector<16x32xf32>
    %388 = vector.broadcast %240 : vector<1x32xf32> to vector<16x32xf32>
    %389 = arith.addf %387, %388 : vector<16x32xf32>
    %390 = arith.index_cast %344 : i32 to index
    %c0_134 = arith.constant 0 : index
    %391 = vector.load %arg22[%390, %c0_134] : memref<64x32xf32, #tpu.memory_space<vmem>>, vector<16x32xf32>
    tpu.vector_store %arg22[%390, %c0_134], %389 {strides = array<i32>} : memref<64x32xf32, #tpu.memory_space<vmem>>, vector<16x32xf32>,
    %c3_i32_135 = arith.constant 3 : i32
    %c16_i32_136 = arith.constant 16 : i32
    %392 = arith.muli %c3_i32_135, %c16_i32_136 : i32
    %393 = tpu.assume_multiple %392, 16 : i32
    %394 = arith.index_cast %393 : i32 to index
    %c0_137 = arith.constant 0 : index
    %395 = vector.load %arg21[%394, %c0_137] : memref<64x128xf32, #tpu.memory_space<vmem>>, vector<16x128xf32>
    %c0_138 = arith.constant 0 : index
    %c0_139 = arith.constant 0 : index
    %396 = vector.load %arg9[%c0_138, %c0_139] : memref<32x128xf32, #tpu.memory_space<vmem>>, vector<32x128xf32>
    %cst_140 = arith.constant dense<0.000000e+00> : vector<16x128xf32>
    %397 = tpu.matmul %369, %396, %cst_140 {dimension_numbers = #tpu.dot_dimension_numbers<[1], [0], [0], [1], [0, 0, 1, 1], [], []>} : vector<16x32xf32>, vector<32x128xf32>, vector<16x128xf32> -> vector<16x128xf32>
    %398 = arith.addf %395, %397 : vector<16x128xf32>
    %399 = vector.broadcast %12 : vector<1x128xf32> to vector<16x128xf32>
    %400 = arith.mulf %398, %399 : vector<16x128xf32>
    %401 = arith.negf %400 : vector<16x128xf32>
    %402 = math.exp %401 : vector<16x128xf32>
    %cst_141 = arith.constant 1.000000e+00 : f32
    %403 = vector.broadcast %cst_141 : f32 to vector<16x128xf32>
    %404 = arith.addf %403, %402 : vector<16x128xf32>
    %405 = arith.divf %403, %404 : vector<16x128xf32>
    %406 = vector.broadcast %12 : vector<1x128xf32> to vector<16x128xf32>
    %407 = arith.mulf %405, %406 : vector<16x128xf32>
    %408 = vector.broadcast %15 : vector<1x128xf32> to vector<16x128xf32>
    %409 = arith.addf %407, %408 : vector<16x128xf32>
    %410 = vector.extract_strided_slice %409 {offsets = [0, 0], sizes = [16, 32], strides = [1, 1]} : vector<16x128xf32> to vector<16x32xf32>
    %411 = vector.extract_strided_slice %409 {offsets = [0, 32], sizes = [16, 32], strides = [1, 1]} : vector<16x128xf32> to vector<16x32xf32>
    %412 = vector.extract_strided_slice %409 {offsets = [0, 64], sizes = [16, 32], strides = [1, 1]} : vector<16x128xf32> to vector<16x32xf32>
    %413 = vector.extract_strided_slice %409 {offsets = [0, 96], sizes = [16, 32], strides = [1, 1]} : vector<16x128xf32> to vector<16x32xf32>
    %414 = arith.mulf %411, %367 : vector<16x32xf32>
    %415 = arith.mulf %410, %412 : vector<16x32xf32>
    %416 = arith.addf %414, %415 : vector<16x32xf32>
    %417 = math.tanh %416 : vector<16x32xf32>
    %418 = arith.mulf %413, %417 : vector<16x32xf32>
    %cst_142 = arith.constant dense<0.000000e+00> : vector<16xf32>
    %419 = vector.multi_reduction <add>, %418, %cst_142 [1] : vector<16x32xf32> to vector<16xf32>
    %420 = vector.shape_cast %419 : vector<16xf32> to vector<16x1xf32>
    %cst_143 = arith.constant 3.200000e+01 : f32
    %421 = vector.broadcast %cst_143 : f32 to vector<16x1xf32>
    %422 = arith.divf %420, %421 : vector<16x1xf32>
    %423 = vector.broadcast %422 : vector<16x1xf32> to vector<16x32xf32>
    %424 = arith.subf %418, %423 : vector<16x32xf32>
    %425 = arith.mulf %424, %424 : vector<16x32xf32>
    %cst_144 = arith.constant dense<0.000000e+00> : vector<16xf32>
    %426 = vector.multi_reduction <add>, %425, %cst_144 [1] : vector<16x32xf32> to vector<16xf32>
    %427 = vector.shape_cast %426 : vector<16xf32> to vector<16x1xf32>
    %cst_145 = arith.constant 3.200000e+01 : f32
    %428 = vector.broadcast %cst_145 : f32 to vector<16x1xf32>
    %429 = arith.divf %427, %428 : vector<16x1xf32>
    %cst_146 = arith.constant 9.99999974E-6 : f32
    %430 = vector.broadcast %cst_146 : f32 to vector<16x1xf32>
    %431 = arith.addf %429, %430 : vector<16x1xf32>
    %432 = math.rsqrt %431 : vector<16x1xf32>
    %433 = vector.broadcast %432 : vector<16x1xf32> to vector<16x32xf32>
    %434 = arith.mulf %424, %433 : vector<16x32xf32>
    %435 = vector.broadcast %239 : vector<1x32xf32> to vector<16x32xf32>
    %436 = arith.mulf %434, %435 : vector<16x32xf32>
    %437 = vector.broadcast %240 : vector<1x32xf32> to vector<16x32xf32>
    %438 = arith.addf %436, %437 : vector<16x32xf32>
    %439 = arith.index_cast %393 : i32 to index
    %c0_147 = arith.constant 0 : index
    %440 = vector.load %arg22[%439, %c0_147] : memref<64x32xf32, #tpu.memory_space<vmem>>, vector<16x32xf32>
    tpu.vector_store %arg22[%439, %c0_147], %438 {strides = array<i32>} : memref<64x32xf32, #tpu.memory_space<vmem>>, vector<16x32xf32>,
    %c4_i32_148 = arith.constant 4 : i32
    %c1_149 = arith.constant 1 : index
    %c0_150 = arith.constant 0 : index
    %c0_151 = arith.constant 0 : index
    %441 = vector.load %arg23[%c1_149, %c0_150, %c0_151] : memref<3x16x32xf32, #tpu.memory_space<vmem>>, vector<1x16x32xf32>
    %442 = vector.shape_cast %441 : vector<1x16x32xf32> to vector<16x32xf32>
    %443 = vector.shape_cast %418 : vector<16x32xf32> to vector<1x16x32xf32>
    tpu.vector_store %arg23[%c1_149, %c0_150, %c0_151], %443 {strides = array<i32>} : memref<3x16x32xf32, #tpu.memory_space<vmem>>, vector<1x16x32xf32>,
    %c1_152 = arith.constant 1 : index
    %c0_153 = arith.constant 0 : index
    %c0_154 = arith.constant 0 : index
    %444 = vector.load %arg24[%c1_152, %c0_153, %c0_154] : memref<3x16x32xf32, #tpu.memory_space<vmem>>, vector<1x16x32xf32>
    %445 = vector.shape_cast %444 : vector<1x16x32xf32> to vector<16x32xf32>
    %446 = vector.shape_cast %416 : vector<16x32xf32> to vector<1x16x32xf32>
    tpu.vector_store %arg24[%c1_152, %c0_153, %c0_154], %446 {strides = array<i32>} : memref<3x16x32xf32, #tpu.memory_space<vmem>>, vector<1x16x32xf32>,
    %c0_155 = arith.constant 0 : index
    %c0_156 = arith.constant 0 : index
    %447 = vector.load %arg22[%c0_155, %c0_156] : memref<64x32xf32, #tpu.memory_space<vmem>>, vector<64x32xf32>
    %c0_157 = arith.constant 0 : index
    %c0_158 = arith.constant 0 : index
    %448 = vector.load %arg13[%c0_157, %c0_158] : memref<32x128xf32, #tpu.memory_space<vmem>>, vector<32x128xf32>
    %cst_159 = arith.constant dense<0.000000e+00> : vector<64x128xf32>
    %449 = tpu.matmul %447, %448, %cst_159 {dimension_numbers = #tpu.dot_dimension_numbers<[1], [0], [0], [1], [0, 0, 1, 1], [], []>} : vector<64x32xf32>, vector<32x128xf32>, vector<64x128xf32> -> vector<64x128xf32>
    %c0_160 = arith.constant 0 : index
    %c0_161 = arith.constant 0 : index
    %450 = vector.load %arg15[%c0_160, %c0_161] : memref<1x128xf32, #tpu.memory_space<vmem>>, vector<1x128xf32>
    %451 = vector.broadcast %450 : vector<1x128xf32> to vector<64x128xf32>
    %452 = arith.addf %449, %451 : vector<64x128xf32>
    %c0_162 = arith.constant 0 : index
    %c0_163 = arith.constant 0 : index
    %453 = vector.load %arg21[%c0_162, %c0_163] : memref<64x128xf32, #tpu.memory_space<vmem>>, vector<64x128xf32>
    tpu.vector_store %arg21[%c0_162, %c0_163], %452 {strides = array<i32>} : memref<64x128xf32, #tpu.memory_space<vmem>>, vector<64x128xf32>,
    %c0_164 = arith.constant 0 : index
    %c0_165 = arith.constant 0 : index
    %454 = vector.load %arg16[%c0_164, %c0_165] : memref<1x32xf32, #tpu.memory_space<vmem>>, vector<1x32xf32>
    %c0_166 = arith.constant 0 : index
    %c0_167 = arith.constant 0 : index
    %455 = vector.load %arg17[%c0_166, %c0_167] : memref<1x32xf32, #tpu.memory_space<vmem>>, vector<1x32xf32>
    %c2 = arith.constant 2 : index
    %c0_168 = arith.constant 0 : index
    %c0_169 = arith.constant 0 : index
    %456 = vector.load %arg23[%c2, %c0_168, %c0_169] : memref<3x16x32xf32, #tpu.memory_space<vmem>>, vector<1x16x32xf32>
    %457 = vector.shape_cast %456 : vector<1x16x32xf32> to vector<16x32xf32>
    %c2_170 = arith.constant 2 : index
    %c0_171 = arith.constant 0 : index
    %c0_172 = arith.constant 0 : index
    %458 = vector.load %arg24[%c2_170, %c0_171, %c0_172] : memref<3x16x32xf32, #tpu.memory_space<vmem>>, vector<1x16x32xf32>
    %459 = vector.shape_cast %458 : vector<1x16x32xf32> to vector<16x32xf32>
    %c0_i32_173 = arith.constant 0 : i32
    %c16_i32_174 = arith.constant 16 : i32
    %460 = arith.muli %c0_i32_173, %c16_i32_174 : i32
    %461 = tpu.assume_multiple %460, 16 : i32
    %462 = arith.index_cast %461 : i32 to index
    %c0_175 = arith.constant 0 : index
    %463 = vector.load %arg21[%462, %c0_175] : memref<64x128xf32, #tpu.memory_space<vmem>>, vector<16x128xf32>
    %c0_176 = arith.constant 0 : index
    %c0_177 = arith.constant 0 : index
    %464 = vector.load %arg14[%c0_176, %c0_177] : memref<32x128xf32, #tpu.memory_space<vmem>>, vector<32x128xf32>
    %cst_178 = arith.constant dense<0.000000e+00> : vector<16x128xf32>
    %465 = tpu.matmul %457, %464, %cst_178 {dimension_numbers = #tpu.dot_dimension_numbers<[1], [0], [0], [1], [0, 0, 1, 1], [], []>} : vector<16x32xf32>, vector<32x128xf32>, vector<16x128xf32> -> vector<16x128xf32>
    %466 = arith.addf %463, %465 : vector<16x128xf32>
    %467 = vector.broadcast %12 : vector<1x128xf32> to vector<16x128xf32>
    %468 = arith.mulf %466, %467 : vector<16x128xf32>
    %469 = arith.negf %468 : vector<16x128xf32>
    %470 = math.exp %469 : vector<16x128xf32>
    %cst_179 = arith.constant 1.000000e+00 : f32
    %471 = vector.broadcast %cst_179 : f32 to vector<16x128xf32>
    %472 = arith.addf %471, %470 : vector<16x128xf32>
    %473 = arith.divf %471, %472 : vector<16x128xf32>
    %474 = vector.broadcast %12 : vector<1x128xf32> to vector<16x128xf32>
    %475 = arith.mulf %473, %474 : vector<16x128xf32>
    %476 = vector.broadcast %15 : vector<1x128xf32> to vector<16x128xf32>
    %477 = arith.addf %475, %476 : vector<16x128xf32>
    %478 = vector.extract_strided_slice %477 {offsets = [0, 0], sizes = [16, 32], strides = [1, 1]} : vector<16x128xf32> to vector<16x32xf32>
    %479 = vector.extract_strided_slice %477 {offsets = [0, 32], sizes = [16, 32], strides = [1, 1]} : vector<16x128xf32> to vector<16x32xf32>
    %480 = vector.extract_strided_slice %477 {offsets = [0, 64], sizes = [16, 32], strides = [1, 1]} : vector<16x128xf32> to vector<16x32xf32>
    %481 = vector.extract_strided_slice %477 {offsets = [0, 96], sizes = [16, 32], strides = [1, 1]} : vector<16x128xf32> to vector<16x32xf32>
    %482 = arith.mulf %479, %459 : vector<16x32xf32>
    %483 = arith.mulf %478, %480 : vector<16x32xf32>
    %484 = arith.addf %482, %483 : vector<16x32xf32>
    %485 = math.tanh %484 : vector<16x32xf32>
    %486 = arith.mulf %481, %485 : vector<16x32xf32>
    %c1_i32_180 = arith.constant 1 : i32
    %c16_i32_181 = arith.constant 16 : i32
    %487 = arith.muli %c1_i32_180, %c16_i32_181 : i32
    %488 = tpu.assume_multiple %487, 16 : i32
    %489 = arith.index_cast %488 : i32 to index
    %c0_182 = arith.constant 0 : index
    %490 = vector.load %arg21[%489, %c0_182] : memref<64x128xf32, #tpu.memory_space<vmem>>, vector<16x128xf32>
    %c0_183 = arith.constant 0 : index
    %c0_184 = arith.constant 0 : index
    %491 = vector.load %arg14[%c0_183, %c0_184] : memref<32x128xf32, #tpu.memory_space<vmem>>, vector<32x128xf32>
    %cst_185 = arith.constant dense<0.000000e+00> : vector<16x128xf32>
    %492 = tpu.matmul %486, %491, %cst_185 {dimension_numbers = #tpu.dot_dimension_numbers<[1], [0], [0], [1], [0, 0, 1, 1], [], []>} : vector<16x32xf32>, vector<32x128xf32>, vector<16x128xf32> -> vector<16x128xf32>
    %493 = arith.addf %490, %492 : vector<16x128xf32>
    %494 = vector.broadcast %12 : vector<1x128xf32> to vector<16x128xf32>
    %495 = arith.mulf %493, %494 : vector<16x128xf32>
    %496 = arith.negf %495 : vector<16x128xf32>
    %497 = math.exp %496 : vector<16x128xf32>
    %cst_186 = arith.constant 1.000000e+00 : f32
    %498 = vector.broadcast %cst_186 : f32 to vector<16x128xf32>
    %499 = arith.addf %498, %497 : vector<16x128xf32>
    %500 = arith.divf %498, %499 : vector<16x128xf32>
    %501 = vector.broadcast %12 : vector<1x128xf32> to vector<16x128xf32>
    %502 = arith.mulf %500, %501 : vector<16x128xf32>
    %503 = vector.broadcast %15 : vector<1x128xf32> to vector<16x128xf32>
    %504 = arith.addf %502, %503 : vector<16x128xf32>
    %505 = vector.extract_strided_slice %504 {offsets = [0, 0], sizes = [16, 32], strides = [1, 1]} : vector<16x128xf32> to vector<16x32xf32>
    %506 = vector.extract_strided_slice %504 {offsets = [0, 32], sizes = [16, 32], strides = [1, 1]} : vector<16x128xf32> to vector<16x32xf32>
    %507 = vector.extract_strided_slice %504 {offsets = [0, 64], sizes = [16, 32], strides = [1, 1]} : vector<16x128xf32> to vector<16x32xf32>
    %508 = vector.extract_strided_slice %504 {offsets = [0, 96], sizes = [16, 32], strides = [1, 1]} : vector<16x128xf32> to vector<16x32xf32>
    %509 = arith.mulf %506, %484 : vector<16x32xf32>
    %510 = arith.mulf %505, %507 : vector<16x32xf32>
    %511 = arith.addf %509, %510 : vector<16x32xf32>
    %512 = math.tanh %511 : vector<16x32xf32>
    %513 = arith.mulf %508, %512 : vector<16x32xf32>
    %c2_i32_187 = arith.constant 2 : i32
    %c16_i32_188 = arith.constant 16 : i32
    %514 = arith.muli %c2_i32_187, %c16_i32_188 : i32
    %515 = tpu.assume_multiple %514, 16 : i32
    %516 = arith.index_cast %515 : i32 to index
    %c0_189 = arith.constant 0 : index
    %517 = vector.load %arg21[%516, %c0_189] : memref<64x128xf32, #tpu.memory_space<vmem>>, vector<16x128xf32>
    %c0_190 = arith.constant 0 : index
    %c0_191 = arith.constant 0 : index
    %518 = vector.load %arg14[%c0_190, %c0_191] : memref<32x128xf32, #tpu.memory_space<vmem>>, vector<32x128xf32>
    %cst_192 = arith.constant dense<0.000000e+00> : vector<16x128xf32>
    %519 = tpu.matmul %513, %518, %cst_192 {dimension_numbers = #tpu.dot_dimension_numbers<[1], [0], [0], [1], [0, 0, 1, 1], [], []>} : vector<16x32xf32>, vector<32x128xf32>, vector<16x128xf32> -> vector<16x128xf32>
    %520 = arith.addf %517, %519 : vector<16x128xf32>
    %521 = vector.broadcast %12 : vector<1x128xf32> to vector<16x128xf32>
    %522 = arith.mulf %520, %521 : vector<16x128xf32>
    %523 = arith.negf %522 : vector<16x128xf32>
    %524 = math.exp %523 : vector<16x128xf32>
    %cst_193 = arith.constant 1.000000e+00 : f32
    %525 = vector.broadcast %cst_193 : f32 to vector<16x128xf32>
    %526 = arith.addf %525, %524 : vector<16x128xf32>
    %527 = arith.divf %525, %526 : vector<16x128xf32>
    %528 = vector.broadcast %12 : vector<1x128xf32> to vector<16x128xf32>
    %529 = arith.mulf %527, %528 : vector<16x128xf32>
    %530 = vector.broadcast %15 : vector<1x128xf32> to vector<16x128xf32>
    %531 = arith.addf %529, %530 : vector<16x128xf32>
    %532 = vector.extract_strided_slice %531 {offsets = [0, 0], sizes = [16, 32], strides = [1, 1]} : vector<16x128xf32> to vector<16x32xf32>
    %533 = vector.extract_strided_slice %531 {offsets = [0, 32], sizes = [16, 32], strides = [1, 1]} : vector<16x128xf32> to vector<16x32xf32>
    %534 = vector.extract_strided_slice %531 {offsets = [0, 64], sizes = [16, 32], strides = [1, 1]} : vector<16x128xf32> to vector<16x32xf32>
    %535 = vector.extract_strided_slice %531 {offsets = [0, 96], sizes = [16, 32], strides = [1, 1]} : vector<16x128xf32> to vector<16x32xf32>
    %536 = arith.mulf %533, %511 : vector<16x32xf32>
    %537 = arith.mulf %532, %534 : vector<16x32xf32>
    %538 = arith.addf %536, %537 : vector<16x32xf32>
    %539 = math.tanh %538 : vector<16x32xf32>
    %540 = arith.mulf %535, %539 : vector<16x32xf32>
    %c3_i32_194 = arith.constant 3 : i32
    %c16_i32_195 = arith.constant 16 : i32
    %541 = arith.muli %c3_i32_194, %c16_i32_195 : i32
    %542 = tpu.assume_multiple %541, 16 : i32
    %543 = arith.index_cast %542 : i32 to index
    %c0_196 = arith.constant 0 : index
    %544 = vector.load %arg21[%543, %c0_196] : memref<64x128xf32, #tpu.memory_space<vmem>>, vector<16x128xf32>
    %c0_197 = arith.constant 0 : index
    %c0_198 = arith.constant 0 : index
    %545 = vector.load %arg14[%c0_197, %c0_198] : memref<32x128xf32, #tpu.memory_space<vmem>>, vector<32x128xf32>
    %cst_199 = arith.constant dense<0.000000e+00> : vector<16x128xf32>
    %546 = tpu.matmul %540, %545, %cst_199 {dimension_numbers = #tpu.dot_dimension_numbers<[1], [0], [0], [1], [0, 0, 1, 1], [], []>} : vector<16x32xf32>, vector<32x128xf32>, vector<16x128xf32> -> vector<16x128xf32>
    %547 = arith.addf %544, %546 : vector<16x128xf32>
    %548 = vector.broadcast %12 : vector<1x128xf32> to vector<16x128xf32>
    %549 = arith.mulf %547, %548 : vector<16x128xf32>
    %550 = arith.negf %549 : vector<16x128xf32>
    %551 = math.exp %550 : vector<16x128xf32>
    %cst_200 = arith.constant 1.000000e+00 : f32
    %552 = vector.broadcast %cst_200 : f32 to vector<16x128xf32>
    %553 = arith.addf %552, %551 : vector<16x128xf32>
    %554 = arith.divf %552, %553 : vector<16x128xf32>
    %555 = vector.broadcast %12 : vector<1x128xf32> to vector<16x128xf32>
    %556 = arith.mulf %554, %555 : vector<16x128xf32>
    %557 = vector.broadcast %15 : vector<1x128xf32> to vector<16x128xf32>
    %558 = arith.addf %556, %557 : vector<16x128xf32>
    %559 = vector.extract_strided_slice %558 {offsets = [0, 0], sizes = [16, 32], strides = [1, 1]} : vector<16x128xf32> to vector<16x32xf32>
    %560 = vector.extract_strided_slice %558 {offsets = [0, 32], sizes = [16, 32], strides = [1, 1]} : vector<16x128xf32> to vector<16x32xf32>
    %561 = vector.extract_strided_slice %558 {offsets = [0, 64], sizes = [16, 32], strides = [1, 1]} : vector<16x128xf32> to vector<16x32xf32>
    %562 = vector.extract_strided_slice %558 {offsets = [0, 96], sizes = [16, 32], strides = [1, 1]} : vector<16x128xf32> to vector<16x32xf32>
    %563 = arith.mulf %560, %538 : vector<16x32xf32>
    %564 = arith.mulf %559, %561 : vector<16x32xf32>
    %565 = arith.addf %563, %564 : vector<16x32xf32>
    %566 = math.tanh %565 : vector<16x32xf32>
    %567 = arith.mulf %562, %566 : vector<16x32xf32>
    %c4_i32_201 = arith.constant 4 : i32
    %c2_202 = arith.constant 2 : index
    %c0_203 = arith.constant 0 : index
    %c0_204 = arith.constant 0 : index
    %568 = vector.load %arg23[%c2_202, %c0_203, %c0_204] : memref<3x16x32xf32, #tpu.memory_space<vmem>>, vector<1x16x32xf32>
    %569 = vector.shape_cast %568 : vector<1x16x32xf32> to vector<16x32xf32>
    %570 = vector.shape_cast %567 : vector<16x32xf32> to vector<1x16x32xf32>
    tpu.vector_store %arg23[%c2_202, %c0_203, %c0_204], %570 {strides = array<i32>} : memref<3x16x32xf32, #tpu.memory_space<vmem>>, vector<1x16x32xf32>,
    %c2_205 = arith.constant 2 : index
    %c0_206 = arith.constant 0 : index
    %c0_207 = arith.constant 0 : index
    %571 = vector.load %arg24[%c2_205, %c0_206, %c0_207] : memref<3x16x32xf32, #tpu.memory_space<vmem>>, vector<1x16x32xf32>
    %572 = vector.shape_cast %571 : vector<1x16x32xf32> to vector<16x32xf32>
    %573 = vector.shape_cast %565 : vector<16x32xf32> to vector<1x16x32xf32>
    tpu.vector_store %arg24[%c2_205, %c0_206, %c0_207], %573 {strides = array<i32>} : memref<3x16x32xf32, #tpu.memory_space<vmem>>, vector<1x16x32xf32>,
    %574 = arith.extui %1 : i1 to i32
    %c0_i32_208 = arith.constant 0 : i32
    %575 = arith.cmpi ne, %574, %c0_i32_208 : i32
    scf.if %575 {
      %cst_209 = arith.constant dense<0.000000e+00> : vector<16xf32>
      %576 = vector.multi_reduction <add>, %567, %cst_209 [1] : vector<16x32xf32> to vector<16xf32>
      %577 = vector.shape_cast %576 : vector<16xf32> to vector<16x1xf32>
      %cst_210 = arith.constant 3.200000e+01 : f32
      %578 = vector.broadcast %cst_210 : f32 to vector<16x1xf32>
      %579 = arith.divf %577, %578 : vector<16x1xf32>
      %580 = vector.broadcast %579 : vector<16x1xf32> to vector<16x32xf32>
      %581 = arith.subf %567, %580 : vector<16x32xf32>
      %582 = arith.mulf %581, %581 : vector<16x32xf32>
      %cst_211 = arith.constant dense<0.000000e+00> : vector<16xf32>
      %583 = vector.multi_reduction <add>, %582, %cst_211 [1] : vector<16x32xf32> to vector<16xf32>
      %584 = vector.shape_cast %583 : vector<16xf32> to vector<16x1xf32>
      %cst_212 = arith.constant 3.200000e+01 : f32
      %585 = vector.broadcast %cst_212 : f32 to vector<16x1xf32>
      %586 = arith.divf %584, %585 : vector<16x1xf32>
      %cst_213 = arith.constant 9.99999974E-6 : f32
      %587 = vector.broadcast %cst_213 : f32 to vector<16x1xf32>
      %588 = arith.addf %586, %587 : vector<16x1xf32>
      %589 = math.rsqrt %588 : vector<16x1xf32>
      %590 = vector.broadcast %589 : vector<16x1xf32> to vector<16x32xf32>
      %591 = arith.mulf %581, %590 : vector<16x32xf32>
      %592 = vector.broadcast %454 : vector<1x32xf32> to vector<16x32xf32>
      %593 = arith.mulf %591, %592 : vector<16x32xf32>
      %594 = vector.broadcast %455 : vector<1x32xf32> to vector<16x32xf32>
      %595 = arith.addf %593, %594 : vector<16x32xf32>
      %c0_214 = arith.constant 0 : index
      %c0_215 = arith.constant 0 : index
      %596 = vector.load %arg18[%c0_214, %c0_215] : memref<32x128xf32, #tpu.memory_space<vmem>>, vector<32x128xf32>
      %cst_216 = arith.constant dense<0.000000e+00> : vector<16x128xf32>
      %597 = tpu.matmul %595, %596, %cst_216 {dimension_numbers = #tpu.dot_dimension_numbers<[1], [0], [0], [1], [0, 0, 1, 1], [], []>} : vector<16x32xf32>, vector<32x128xf32>, vector<16x128xf32> -> vector<16x128xf32>
      %c0_217 = arith.constant 0 : index
      %c0_218 = arith.constant 0 : index
      %598 = vector.load %arg19[%c0_217, %c0_218] : memref<1x128xf32, #tpu.memory_space<vmem>>, vector<1x128xf32>
      %599 = vector.broadcast %598 : vector<1x128xf32> to vector<16x128xf32>
      %600 = arith.addf %597, %599 : vector<16x128xf32>
      %c0_219 = arith.constant 0 : index
      %c0_220 = arith.constant 0 : index
      %601 = vector.load %arg20[%c0_219, %c0_220] : memref<16x128xf32, #tpu.memory_space<vmem>>, vector<16x128xf32>
      tpu.vector_store %arg20[%c0_219, %c0_220], %600 {strides = array<i32>} : memref<16x128xf32, #tpu.memory_space<vmem>>, vector<16x128xf32>,
    } else {
    }
    return
  }
  func.func @transform_0(%arg0: i32, %arg1: i32) -> (i32, i32, i32) {
    %c0_i32 = arith.constant 0 : i32
    %c0_i32_0 = arith.constant 0 : i32
    return %arg0, %arg1, %c0_i32 : i32, i32, i32
  }
  func.func @transform_1(%arg0: i32, %arg1: i32) -> (i32, i32) {
    %c0_i32 = arith.constant 0 : i32
    %c0_i32_0 = arith.constant 0 : i32
    %c0_i32_1 = arith.constant 0 : i32
    return %c0_i32, %c0_i32_0 : i32, i32
  }
  func.func @transform_2(%arg0: i32, %arg1: i32) -> (i32, i32) {
    %c0_i32 = arith.constant 0 : i32
    %c0_i32_0 = arith.constant 0 : i32
    %c0_i32_1 = arith.constant 0 : i32
    return %c0_i32, %c0_i32_0 : i32, i32
  }
  func.func @transform_3(%arg0: i32, %arg1: i32) -> (i32, i32) {
    %c0_i32 = arith.constant 0 : i32
    %c0_i32_0 = arith.constant 0 : i32
    %c0_i32_1 = arith.constant 0 : i32
    return %c0_i32, %c0_i32_0 : i32, i32
  }
  func.func @transform_4(%arg0: i32, %arg1: i32) -> (i32, i32) {
    %c0_i32 = arith.constant 0 : i32
    %c0_i32_0 = arith.constant 0 : i32
    %c0_i32_1 = arith.constant 0 : i32
    return %c0_i32, %c0_i32_0 : i32, i32
  }
  func.func @transform_5(%arg0: i32, %arg1: i32) -> (i32, i32) {
    %c0_i32 = arith.constant 0 : i32
    %c0_i32_0 = arith.constant 0 : i32
    %c0_i32_1 = arith.constant 0 : i32
    return %c0_i32, %c0_i32_0 : i32, i32
  }
  func.func @transform_6(%arg0: i32, %arg1: i32) -> (i32, i32) {
    %c0_i32 = arith.constant 0 : i32
    %c0_i32_0 = arith.constant 0 : i32
    %c0_i32_1 = arith.constant 0 : i32
    return %c0_i32, %c0_i32_0 : i32, i32
  }
  func.func @transform_7(%arg0: i32, %arg1: i32) -> (i32, i32) {
    %c0_i32 = arith.constant 0 : i32
    %c0_i32_0 = arith.constant 0 : i32
    %c0_i32_1 = arith.constant 0 : i32
    return %c0_i32, %c0_i32_0 : i32, i32
  }
  func.func @transform_8(%arg0: i32, %arg1: i32) -> (i32, i32) {
    %c0_i32 = arith.constant 0 : i32
    %c0_i32_0 = arith.constant 0 : i32
    %c0_i32_1 = arith.constant 0 : i32
    return %c0_i32, %c0_i32_0 : i32, i32
  }
  func.func @transform_9(%arg0: i32, %arg1: i32) -> (i32, i32) {
    %c0_i32 = arith.constant 0 : i32
    %c0_i32_0 = arith.constant 0 : i32
    %c0_i32_1 = arith.constant 0 : i32
    return %c0_i32, %c0_i32_0 : i32, i32
  }
  func.func @transform_10(%arg0: i32, %arg1: i32) -> (i32, i32) {
    %c0_i32 = arith.constant 0 : i32
    %c0_i32_0 = arith.constant 0 : i32
    %c0_i32_1 = arith.constant 0 : i32
    return %c0_i32, %c0_i32_0 : i32, i32
  }
  func.func @transform_11(%arg0: i32, %arg1: i32) -> (i32, i32) {
    %c0_i32 = arith.constant 0 : i32
    %c0_i32_0 = arith.constant 0 : i32
    %c0_i32_1 = arith.constant 0 : i32
    return %c0_i32, %c0_i32_0 : i32, i32
  }
  func.func @transform_12(%arg0: i32, %arg1: i32) -> (i32, i32) {
    %c0_i32 = arith.constant 0 : i32
    %c0_i32_0 = arith.constant 0 : i32
    %c0_i32_1 = arith.constant 0 : i32
    return %c0_i32, %c0_i32_0 : i32, i32
  }
  func.func @transform_13(%arg0: i32, %arg1: i32) -> (i32, i32) {
    %c0_i32 = arith.constant 0 : i32
    %c0_i32_0 = arith.constant 0 : i32
    %c0_i32_1 = arith.constant 0 : i32
    return %c0_i32, %c0_i32_0 : i32, i32
  }
  func.func @transform_14(%arg0: i32, %arg1: i32) -> (i32, i32) {
    %c0_i32 = arith.constant 0 : i32
    %c0_i32_0 = arith.constant 0 : i32
    %c0_i32_1 = arith.constant 0 : i32
    return %c0_i32, %c0_i32_0 : i32, i32
  }
  func.func @transform_15(%arg0: i32, %arg1: i32) -> (i32, i32) {
    %c0_i32 = arith.constant 0 : i32
    %c0_i32_0 = arith.constant 0 : i32
    %c0_i32_1 = arith.constant 0 : i32
    return %c0_i32, %c0_i32_0 : i32, i32
  }
  func.func @transform_16(%arg0: i32, %arg1: i32) -> (i32, i32) {
    %c0_i32 = arith.constant 0 : i32
    %c0_i32_0 = arith.constant 0 : i32
    %c0_i32_1 = arith.constant 0 : i32
    return %c0_i32, %c0_i32_0 : i32, i32
  }
  func.func @transform_17(%arg0: i32, %arg1: i32) -> (i32, i32) {
    %c0_i32 = arith.constant 0 : i32
    %c0_i32_0 = arith.constant 0 : i32
    %c0_i32_1 = arith.constant 0 : i32
    return %c0_i32, %c0_i32_0 : i32, i32
  }
  func.func @transform_18(%arg0: i32, %arg1: i32) -> (i32, i32) {
    %c0_i32 = arith.constant 0 : i32
    %c0_i32_0 = arith.constant 0 : i32
    return %arg0, %c0_i32 : i32, i32
  }
}

</mosaic_0001>

<bundles_post_ra>
// kernel: tpu_custom_call.1
= control target key start
LH: loop header
LB: loop body
LE: loop exit
PB: predicated region body
PF: predicated region fallthrough
CT: control target
= control target key end

     0   :  { %s6296_s0 = inlined_call_operand.vmem [shape: f32[1,128,4], index: 0, kind: input, shape index: {}]   ;;  %s6297_s1 = inlined_call_operand.hbm [shape: f32[4,128], index: 1, kind: input, shape index: {}]   ;;  %s6298_s2 = inlined_call_operand.vmem [shape: f32[32,128], index: 2, kind: input, shape index: {}]   ;;  %s6299_s3 = inlined_call_operand.hbm [shape: f32[1,128], index: 3, kind: input, shape index: {}]   ;;  %s6300_s4 = inlined_call_operand.hbm [shape: f32[1,32], index: 4, kind: input, shape index: {}]   ;;  %s6301_s5 = inlined_call_operand.hbm [shape: f32[1,32], index: 5, kind: input, shape index: {}]   ;;  %s6302_s6 = inlined_call_operand.vmem [shape: f32[32,128], index: 6, kind: input, shape index: {}]   ;;  %s6303_s7 = inlined_call_operand.vmem [shape: f32[32,128], index: 7, kind: input, shape index: {}]   ;;  %s6304_s8 = inlined_call_operand.hbm [shape: f32[1,128], index: 8, kind: input, shape index: {}]   ;;  %s6305_s9 = inlined_call_operand.hbm [shape: f32[1,32], index: 9, kind: input, shape index: {}]   ;;  %s6306_s10 = inlined_call_operand.hbm [shape: f32[1,32], index: 10, kind: input, shape index: {}]   ;;  %s6307_s11 = inlined_call_operand.vmem [shape: f32[32,128], index: 11, kind: input, shape index: {}]   ;;  %s6308_s12 = inlined_call_operand.vmem [shape: f32[32,128], index: 12, kind: input, shape index: {}]   ;;  %s6309_s13 = inlined_call_operand.hbm [shape: f32[1,128], index: 13, kind: input, shape index: {}]   ;;  %s6310_s14 = inlined_call_operand.hbm [shape: f32[1,32], index: 14, kind: input, shape index: {}]   ;;  %s6311_s15 = inlined_call_operand.hbm [shape: f32[1,32], index: 15, kind: input, shape index: {}]   ;;  %s6312_s16 = inlined_call_operand.vmem [shape: f32[32,128], index: 16, kind: input, shape index: {}]   ;;  %s6313_s17 = inlined_call_operand.vmem [shape: f32[1,128], index: 17, kind: input, shape index: {}]   ;;  %s6314_s18 = inlined_call_operand.hbm [shape: f32[16,128], index: 18, kind: output, shape index: {}]  }
   0x1   :  { %6325 = sst [smem:[#allocation32_spill]] %s6296_s0 }
   0x2   :  { %6326 = sst [smem:[#allocation33_spill]] %s6297_s1 }
   0x3   :  { %6327 = sst [smem:[#allocation34_spill]] %s6298_s2 }
   0x4   :  { %6328 = sst [smem:[#allocation35_spill]] %s6299_s3 }
   0x5   :  { %6329 = sst [smem:[#allocation36_spill]] %s6301_s5 }
   0x6   :  { %6330 = sst [smem:[#allocation37_spill]] %s6308_s12 }
   0x7   :  { %6331 = sst [smem:[#allocation38_spill]] %s6312_s16 }
   0x8   :  { %6332 = sst [smem:[#allocation39_spill]] %s6313_s17 }
   0x9   :  { %6333 = sst [smem:[#allocation40_spill]] %s6314_s18 }
   0xa   :  { %23 = vsyncpa [#allocation7], 0 }
   0xb   :  { %24 = vsyncpa [#allocation10], 0 }
   0xc   :  { %25 = vsyncpa [#allocation13], 0 }
   0xd   :  { %26 = vsyncpa [#allocation16], 0 }
   0xe   :  { %27 = vsyncpa [#allocation19], 0 }
   0xf   :  { %28 = vsyncpa [#allocation22], 0 }
  0x10   :  { %29 = vsyncpa [#allocation8], 0  ;;  %s5187_s27 = smov 0   ;;  %s5189_s28 = smov 0  }
  0x11   :  { %s5191_s29 = smov 0  }
  0x12 LB: > { %6334 = sst [smem:[#allocation31_spill]] %s5069_s29  ;;  %s5071_s30 = smov [#allocation9]   ;;  %s5069_s29 = sphi %s5191_s29, %s35_s29   ;;  %s5065_s28 = sphi %s5189_s28, %s6360_s28   ;;  %s5061_s27 = sphi %s5187_s27, %s6359_s27  }
  0x13   : > { %s490_s0 = sshll.u32 %s5071_s30, 4  ;;  %s6317_s19 = sadd.s32 4294967295, %s5069_s29   ;;  %s5211_s0 = int_to_ptr.vmem [resolvable:$true] %s490_s0 }
  0x14   : > { %p3797_p0 = scmp.ge.s32.totalorder %s5069_s29, 1  ;;  %p463_p1 = scmp.lt.s32.totalorder %s5069_s29, 3 }
  0x15   : > { %p5207_p2 = scmp.eq.s32.totalorder %s6317_s19, 0  ;;  %s5072_s21 = smov [#allocation12]  }
  0x16   : > { %p5213_p3 = pnand %p3797_p0, %p463_p1  ;;  %s512_s22 = sshll.u32 %s5072_s21, 4  ;;  %s5219_s22 = int_to_ptr.vmem [resolvable:$true] %s512_s22 }
  0x17   : > { %s6335_s1 = scalar_select %p5207_p2, 1, 0 }
  0x18   : > { %s6336_s20 = scalar_select %p5213_p3, 1, 0 }
  0x19   : > { %p4435_p4 = pneg %p5213_p3  ;;  %s5073_s2 = smov [#allocation15]  }
  0x1a   : > { %s540_s23 = sshll.u32 %s5073_s2, 4  ;;  %s5074_s25 = smov [#allocation18]   ;;  %s5227_s23 = int_to_ptr.vmem [resolvable:$true] %s540_s23 }
  0x1b   : > { %p5223_p5 = pnand %p5207_p2, %p4435_p4  ;;  %s568_s26 = sshll.u32 %s5074_s25, 4  ;;  %s5229_s26 = int_to_ptr.vmem [resolvable:$true] %s568_s26 }
  0x1c   : > { %s6338_s3 = sld [smem:[#allocation35_spill]] }
  0x1d   : > { %p5239_p7 = pneg %p5223_p5 }
  0x22   : > { %s4713_s19 = scalar_lea.hbm %s6338_s3, 16 }
  0x23   : > { %p4714_p6 = scmp.ne.s32.totalorder %s6338_s3, %s4713_s19  ;;  %p4720_p10 = scmp.lt.u32.totalorder %s4713_s19, %s6338_s3 }
  0x25   : > { %p4716_p8 = pnand %p5239_p7, %p4714_p6 }
  0x27   : > { %p4717_p9 = pneg %p4716_p8 }
  0x29   : > { %p4722_p11 = pnand %p4720_p10, %p4717_p9 }
  0x2b   : > { %4725 = shalt.err (!%p4722_p11)
}
  0x2c   : > { %s4726_s18 = scalar_lea.vmem %s5211_s0, 16  ;;  %s4733_s29 = scalar_lea.vmem %s5211_s0, 32 }
  0x2d   : > { %p4727_p12 = scmp.ne.s32.totalorder %s5211_s0, %s4726_s18  ;;  %p4734_p1 = scmp.lt.s32.totalorder %s5211_s0, %s5211_s0 }
  0x2e   : > { %p4735_p4 = scmp.lt.s32.totalorder %s4733_s29, %s4726_s18 }
  0x2f   : > { %p4729_p13 = pnand %p4727_p12, %p5239_p7 }
  0x30   : > { %p4736_p6 = por %p4735_p4, %p4734_p1 }
  0x31   : > { %p4730_p0 = pneg %p4729_p13 }
  0x33   : > { %p4737_p8 = pnand %p4736_p6, %p4730_p0 }
  0x35   : > { %4740 = shalt.err (!%p4737_p8)
}
  0x36   : > { %4441 = dma.hbm_to_vmem [thread:$0]  (!%p5223_p5), %s6338_s3, 16, %s5211_s0, [#allocation10]  }
  0x37   : > { %s6340_s5 = sld [smem:[#allocation36_spill]] }
  0x3d   : > { %s4741_s25 = scalar_lea.hbm %s6340_s5, 16 }
  0x3e   : > { %p4742_p9 = scmp.ne.s32.totalorder %s6340_s5, %s4741_s25  ;;  %p4748_p12 = scmp.lt.u32.totalorder %s4741_s25, %s6340_s5 }
  0x40   : > { %p4744_p10 = pnand %p4742_p9, %p5239_p7 }
  0x42   : > { %p4745_p11 = pneg %p4744_p10 }
  0x44   : > { %p4750_p13 = pnand %p4748_p12, %p4745_p11 }
  0x46   : > { %4753 = shalt.err (!%p4750_p13)
}
  0x47   : > { %s4754_s0 = scalar_lea.vmem %s5219_s22, 16  ;;  %s4761_s12 = scalar_lea.vmem %s5219_s22, 32 }
  0x48   : > { %p4755_p0 = scmp.ne.s32.totalorder %s5219_s22, %s4754_s0  ;;  %p4762_p6 = scmp.lt.s32.totalorder %s5219_s22, %s5219_s22 }
  0x49   : > { %p4763_p8 = scmp.lt.s32.totalorder %s4761_s12, %s4754_s0 }
  0x4a   : > { %p4757_p1 = pnand %p4755_p0, %p5239_p7 }
  0x4b   : > { %p4764_p9 = por %p4763_p8, %p4762_p6 }
  0x4c   : > { %p4758_p4 = pneg %p4757_p1 }
  0x4e   : > { %p4765_p10 = pnand %p4764_p9, %p4758_p4 }
  0x50   : > { %4768 = shalt.err (!%p4765_p10)
}
  0x51   : > { %4447 = dma.hbm_to_vmem [thread:$0]  (!%p5223_p5), %s6340_s5, 16, %s5219_s22, [#allocation13]  }
  0x52   : > { %s4769_s21 = scalar_lea.hbm %s6305_s9, 16 }
  0x53   : > { %p4770_p11 = scmp.ne.s32.totalorder %s6305_s9, %s4769_s21  ;;  %p4776_p0 = scmp.lt.u32.totalorder %s4769_s21, %s6305_s9 }
  0x55   : > { %p4772_p12 = pnand %p4770_p11, %p5239_p7 }
  0x57   : > { %p4773_p13 = pneg %p4772_p12 }
  0x59   : > { %p4778_p1 = pnand %p4776_p0, %p4773_p13 }
  0x5b   : > { %4781 = shalt.err (!%p4778_p1)
}
  0x5c   : > { %s4782_s22 = scalar_lea.vmem %s5227_s23, 16  ;;  %s4789_s12 = scalar_lea.vmem %s5227_s23, 32 }
  0x5d   : > { %p4783_p4 = scmp.ne.s32.totalorder %s5227_s23, %s4782_s22  ;;  %p4790_p9 = scmp.lt.s32.totalorder %s5227_s23, %s5227_s23 }
  0x5e   : > { %p4791_p10 = scmp.lt.s32.totalorder %s4789_s12, %s4782_s22 }
  0x5f   : > { %p4785_p6 = pnand %p4783_p4, %p5239_p7 }
  0x60   : > { %p4792_p11 = por %p4791_p10, %p4790_p9 }
  0x61   : > { %p4786_p8 = pneg %p4785_p6 }
  0x63   : > { %p4793_p12 = pnand %p4792_p11, %p4786_p8 }
  0x65   : > { %4796 = shalt.err (!%p4793_p12)
}
  0x66   : > { %4453 = dma.hbm_to_vmem [thread:$0]  (!%p5223_p5), %s6305_s9, 16, %s5227_s23, [#allocation16]  }
  0x67   : > { %s4797_s21 = scalar_lea.hbm %s6309_s13, 16 }
  0x68   : > { %p4798_p13 = scmp.ne.s32.totalorder %s6309_s13, %s4797_s21  ;;  %p4804_p4 = scmp.lt.u32.totalorder %s4797_s21, %s6309_s13 }
  0x6a   : > { %p4800_p0 = pnand %p4798_p13, %p5239_p7 }
  0x6c   : > { %p4801_p1 = pneg %p4800_p0 }
  0x6e   : > { %p4806_p6 = pnand %p4804_p4, %p4801_p1 }
  0x70   : > { %4809 = shalt.err (!%p4806_p6)
}
  0x71   : > { %s4810_s23 = scalar_lea.vmem %s5229_s26, 16  ;;  %s4817_s22 = scalar_lea.vmem %s5229_s26, 32 }
  0x72   : > { %p4811_p8 = scmp.ne.s32.totalorder %s5229_s26, %s4810_s23  ;;  %p4818_p11 = scmp.lt.s32.totalorder %s5229_s26, %s5229_s26 }
  0x73   : > { %p4819_p12 = scmp.lt.s32.totalorder %s4817_s22, %s4810_s23 }
  0x74   : > { %p4813_p9 = pnand %p4811_p8, %p5239_p7 }
  0x75   : > { %p4820_p13 = por %p4819_p12, %p4818_p11 }
  0x76   : > { %p4814_p10 = pneg %p4813_p9 }
  0x78   : > { %p4821_p0 = pnand %p4820_p13, %p4814_p10 }
  0x7a   : > { %4824 = shalt.err (!%p4821_p0)
}
  0x7b   : > { %4459 = dma.hbm_to_vmem [thread:$0]  (!%p5223_p5), %s6309_s13, 16, %s5229_s26, [#allocation19]  }
  0x7c   : > { %s44_s17 = sadd.s32 1, %s5065_s28  ;;  %s5075_s19 = smov [#allocation6]  }
  0x7d   : > { %s476_s30 = sshll.u32 %s5075_s19, 4  ;;  %p5334_p1 = scmp.ge.s32.totalorder %s44_s17, 2  ;;  %s477_s30 = int_to_ptr.vmem [resolvable:$true] %s476_s30 }
  0x7e   : > { %s6342_s29 = sld [smem:[#allocation33_spill]] }
  0x7f   : > { %s6341_s21 = scalar_select %p5334_p1, 1, 0 }
  0x84   : > { %s6343_s0 = smov %s6342_s29  ;;  %s4825_s23 = scalar_lea.hbm %s6342_s29, 64 }
  0x85   : > { %p4826_p4 = scmp.ne.s32.totalorder %s6343_s0, %s4825_s23  ;;  %p4832_p9 = scmp.lt.u32.totalorder %s4825_s23, %s6343_s0 }
  0x87   : > { %p4828_p6 = pnand %p4826_p4, %p5239_p7 }
  0x89   : > { %p4829_p8 = pneg %p4828_p6 }
  0x8b   : > { %p4834_p10 = pnand %p4832_p9, %p4829_p8 }
  0x8d   : > { %4837 = shalt.err (!%p4834_p10)
}
  0x8e   : > { %s4838_s16 = scalar_lea.vmem %s477_s30, 64  ;;  %p4846_p0 = scmp.lt.s32.totalorder %s477_s30, %s477_s30 }
  0x8f   : > { %p4839_p11 = scmp.ne.s32.totalorder %s477_s30, %s4838_s16  ;;  %p4847_p2 = scmp.lt.s32.totalorder %s4838_s16, %s4838_s16 }
  0x91   : > { %p4841_p12 = pnand %p4839_p11, %p5239_p7  ;;  %p4848_p3 = por %p4847_p2, %p4846_p0 }
  0x93   : > { %p4842_p13 = pneg %p4841_p12 }
  0x95   : > { %p4849_p1 = pnand %p4848_p3, %p4842_p13 }
  0x97   : > { %4852 = shalt.err (!%p4849_p1)
}
  0x98   : > { %4438 = dma.hbm_to_vmem [thread:$0]  (!%p5223_p5), %s6343_s0, 64, %s477_s30, [#allocation7]  }
  0x99   : > { %p6344_p4 = scmp.ne.s32.totalorder %s6341_s21, 0  ;;  %s5076_s25 = smov [#allocation11]  }
  0x9a   : > { %s501_s18 = sshll.u32 %s5076_s25, 4  ;;  %s5077_s29 = smov [#allocation14]   ;;  %s502_s18 = int_to_ptr.vmem [resolvable:$true] %s501_s18 }
  0x9b   : > { %s6362_s17 = smov (%p6344_p4, %s44_s17), 0  ;;  %s529_s23 = sshll.u32 %s5077_s29, 4  ;;  %s5360_s23 = int_to_ptr.vmem [resolvable:$true] %s529_s23 }
  0x9c   : > { %s4853_s12 = scalar_lea.hbm %s6300_s4, 16 }
  0x9d   : > { %p4854_p2 = scmp.ne.s32.totalorder %s6300_s4, %s4853_s12  ;;  %p4860_p6 = scmp.lt.u32.totalorder %s4853_s12, %s6300_s4 }
  0x9f   : > { %p4856_p3 = pnand %p4854_p2, %p5239_p7 }
  0xa1   : > { %p4857_p1 = pneg %p4856_p3 }
  0xa3   : > { %p4862_p8 = pnand %p4860_p6, %p4857_p1 }
  0xa5   : > { %4865 = shalt.err (!%p4862_p8)
}
  0xa6   : > { %s4866_s3 = scalar_lea.vmem %s502_s18, 16  ;;  %s4873_s19 = scalar_lea.vmem %s502_s18, 32 }
  0xa7   : > { %p4867_p9 = scmp.ne.s32.totalorder %s502_s18, %s4866_s3  ;;  %p4874_p12 = scmp.lt.s32.totalorder %s502_s18, %s502_s18 }
  0xa8   : > { %p4875_p13 = scmp.lt.s32.totalorder %s4873_s19, %s4866_s3 }
  0xa9   : > { %p4869_p10 = pnand %p4867_p9, %p5239_p7 }
  0xaa   : > { %p4876_p0 = por %p4875_p13, %p4874_p12 }
  0xab   : > { %p4870_p11 = pneg %p4869_p10 }
  0xad   : > { %p4877_p4 = pnand %p4876_p0, %p4870_p11 }
  0xaf   : > { %4880 = shalt.err (!%p4877_p4)
}
  0xb0   : > { %4444 = dma.hbm_to_vmem [thread:$0]  (!%p5223_p5), %s6300_s4, 16, %s502_s18, [#allocation10]  }
  0xb1   : > { %s4881_s26 = scalar_lea.hbm %s6304_s8, 16 }
  0xb2   : > { %p4882_p2 = scmp.ne.s32.totalorder %s6304_s8, %s4881_s26  ;;  %p4888_p6 = scmp.lt.u32.totalorder %s4881_s26, %s6304_s8 }
  0xb4   : > { %p4884_p3 = pnand %p4882_p2, %p5239_p7 }
  0xb6   : > { %p4885_p1 = pneg %p4884_p3 }
  0xb8   : > { %p4890_p8 = pnand %p4888_p6, %p4885_p1 }
  0xba   : > { %4893 = shalt.err (!%p4890_p8)
}
  0xbb   : > { %s4894_s18 = scalar_lea.vmem %s5360_s23, 16  ;;  %s4901_s3 = scalar_lea.vmem %s5360_s23, 32 }
  0xbc   : > { %p4895_p9 = scmp.ne.s32.totalorder %s5360_s23, %s4894_s18  ;;  %p4902_p12 = scmp.lt.s32.totalorder %s5360_s23, %s5360_s23 }
  0xbd   : > { %p4903_p13 = scmp.lt.s32.totalorder %s4901_s3, %s4894_s18 }
  0xbe   : > { %p4897_p10 = pnand %p4895_p9, %p5239_p7 }
  0xbf   : > { %p4904_p0 = por %p4903_p13, %p4902_p12 }
  0xc0   : > { %p4898_p11 = pneg %p4897_p10 }
  0xc2   : > { %p4905_p4 = pnand %p4904_p0, %p4898_p11 }
  0xc4   : > { %4908 = shalt.err (!%p4905_p4)
}
  0xc5   : > { %4450 = dma.hbm_to_vmem [thread:$0]  (!%p5223_p5), %s6304_s8, 16, %s5360_s23, [#allocation13]  }
  0xc6   : > { %s5078_s25 = smov [#allocation17]   ;;  %s5079_s22 = smov [#allocation20]  }
  0xc7   : > { %s551_s29 = sshll.u32 %s5078_s25, 4  ;;  %s579_s26 = sshll.u32 %s5079_s22, 4  ;;  %s552_s29 = int_to_ptr.vmem [resolvable:$true] %s551_s29  ;;  %s5404_s26 = int_to_ptr.vmem [resolvable:$true] %s579_s26 }
  0xc8   : > { %s4909_s30 = scalar_lea.hbm %s6306_s10, 16 }
  0xc9   : > { %p4910_p2 = scmp.ne.s32.totalorder %s6306_s10, %s4909_s30  ;;  %p4916_p6 = scmp.lt.u32.totalorder %s4909_s30, %s6306_s10 }
  0xcb   : > { %p4912_p3 = pnand %p4910_p2, %p5239_p7 }
  0xcd   : > { %p4913_p1 = pneg %p4912_p3 }
  0xcf   : > { %p4918_p8 = pnand %p4916_p6, %p4913_p1 }
  0xd1   : > { %4921 = shalt.err (!%p4918_p8)
}
  0xd2   : > { %s4922_s19 = scalar_lea.vmem %s552_s29, 16  ;;  %s4929_s5 = scalar_lea.vmem %s552_s29, 32 }
  0xd3   : > { %p4923_p9 = scmp.ne.s32.totalorder %s552_s29, %s4922_s19  ;;  %p4930_p12 = scmp.lt.s32.totalorder %s552_s29, %s552_s29 }
  0xd4   : > { %p4931_p13 = scmp.lt.s32.totalorder %s4929_s5, %s4922_s19 }
  0xd5   : > { %p4925_p10 = pnand %p4923_p9, %p5239_p7 }
  0xd6   : > { %p4932_p0 = por %p4931_p13, %p4930_p12 }
  0xd7   : > { %p4926_p11 = pneg %p4925_p10 }
  0xd9   : > { %p4933_p4 = pnand %p4932_p0, %p4926_p11 }
  0xdb   : > { %4936 = shalt.err (!%p4933_p4)
}
  0xdc   : > { %4456 = dma.hbm_to_vmem [thread:$0]  (!%p5223_p5), %s6306_s10, 16, %s552_s29, [#allocation16]  }
  0xdd   : > { %s4937_s30 = scalar_lea.hbm %s6310_s14, 16 }
  0xde   : > { %p4938_p2 = scmp.ne.s32.totalorder %s6310_s14, %s4937_s30  ;;  %p4944_p6 = scmp.lt.u32.totalorder %s4937_s30, %s6310_s14 }
  0xe0   : > { %p4940_p3 = pnand %p4938_p2, %p5239_p7 }
  0xe2   : > { %p4941_p1 = pneg %p4940_p3 }
  0xe4   : > { %p4946_p8 = pnand %p4944_p6, %p4941_p1 }
  0xe6   : > { %4949 = shalt.err (!%p4946_p8)
}
  0xe7   : > { %s4950_s29 = scalar_lea.vmem %s5404_s26, 16  ;;  %s4957_s19 = scalar_lea.vmem %s5404_s26, 32 }
  0xe8   : > { %p4951_p9 = scmp.ne.s32.totalorder %s5404_s26, %s4950_s29  ;;  %p4958_p12 = scmp.lt.s32.totalorder %s5404_s26, %s5404_s26 }
  0xe9   : > { %p4959_p13 = scmp.lt.s32.totalorder %s4957_s19, %s4950_s29 }
  0xea   : > { %p4953_p10 = pnand %p4951_p9, %p5239_p7 }
  0xeb   : > { %p4960_p0 = por %p4959_p13, %p4958_p12 }
  0xec   : > { %p4954_p11 = pneg %p4953_p10 }
  0xee   : > { %p4961_p4 = pnand %p4960_p0, %p4954_p11 }
  0xf0   : > { %4964 = shalt.err (!%p4961_p4)
}
  0xf1   : > { %4462 = dma.hbm_to_vmem [thread:$0]  (!%p5223_p5), %s6310_s14, 16, %s5404_s26, [#allocation19]  }
  0xf2   : > { %s5080_s22 = smov [#allocation21]   ;;  %s4965_s21 = scalar_lea.hbm %s6311_s15, 16 }
  0xf3   : > { %s590_s12 = sshll.u32 %s5080_s22, 4  ;;  %p4966_p2 = scmp.ne.s32.totalorder %s6311_s15, %s4965_s21  ;;  %s591_s12 = int_to_ptr.vmem [resolvable:$true] %s590_s12 }
  0xf4   : > { %p4972_p6 = scmp.lt.u32.totalorder %s4965_s21, %s6311_s15 }
  0xf5   : > { %p4968_p3 = pnand %p4966_p2, %p5239_p7 }
  0xf7   : > { %p4969_p1 = pneg %p4968_p3 }
  0xf9   : > { %p4974_p8 = pnand %p4972_p6, %p4969_p1 }
  0xfb   : > { %4977 = shalt.err (!%p4974_p8)
}
  0xfc   : > { %s4978_s26 = scalar_lea.vmem %s591_s12, 16  ;;  %s4985_s19 = scalar_lea.vmem %s591_s12, 32 }
  0xfd   : > { %p4979_p9 = scmp.ne.s32.totalorder %s591_s12, %s4978_s26  ;;  %p4986_p12 = scmp.lt.s32.totalorder %s591_s12, %s591_s12 }
  0xfe   : > { %p4987_p13 = scmp.lt.s32.totalorder %s4985_s19, %s4978_s26 }
  0xff   : > { %p4981_p10 = pnand %p4979_p9, %p5239_p7 }
 0x100   : > { %p4988_p0 = por %p4987_p13, %p4986_p12 }
 0x101   : > { %p4982_p11 = pneg %p4981_p10 }
 0x103   : > { %p4989_p4 = pnand %p4988_p0, %p4982_p11 }
 0x105   : > { %4992 = shalt.err (!%p4989_p4)
}
 0x106   : > { %4465 = dma.hbm_to_vmem [thread:$0]  (!%p5223_p5), %s6311_s15, 16, %s591_s12, [#allocation22]  }
 0x107   : > { %p6345_p2 = scmp.ne.s32.totalorder %s6336_s20, 0 }
 0x108   : > { %p6346_p3 = scmp.ne.s32.totalorder (!%p6345_p2), %s6335_s1, 0 }
 0x109   : > { %622 = sbr.rel (%p6345_p2) target bundleno = 9847 (0x2677), region = 92 }
 0x110   : > { %5032 = dma.done.wait (%p6346_p3), [#allocation7], 64  }
 0x111   : > { %5034 = vsyncadd (%p6346_p3), [#allocation7], 4294967232 }
 0x112   : > { %5036 = dma.done.wait (%p6346_p3), [#allocation10], 32  }
 0x113   : > { %5038 = vsyncadd (%p6346_p3), [#allocation10], 4294967264 }
 0x114   : > { %5040 = dma.done.wait (%p6346_p3), [#allocation13], 32  }
 0x115   : > { %5042 = vsyncadd (%p6346_p3), [#allocation13], 4294967264 }
 0x116   : > { %5044 = dma.done.wait (%p6346_p3), [#allocation16], 32  }
 0x117   : > { %5046 = vsyncadd (%p6346_p3), [#allocation16], 4294967264 }
 0x118   : > { %5048 = dma.done.wait (%p6346_p3), [#allocation19], 32  }
 0x119   : > { %5050 = vsyncadd (%p6346_p3), [#allocation19], 4294967264 }
 0x11a   : > { %5052 = dma.done.wait (%p6346_p3), [#allocation22], 16  }
 0x11b   : > { %5054 = vsyncadd (%p6346_p3), [#allocation22], 4294967280  ;;  %s3820_s20 = sshll.u32 %s5061_s27, 3  ;;  %s6347_s12 = sld [smem:[#allocation32_spill]] }
 0x11c   : > { %p714_p5 = scmp.lt.s32.totalorder %s3820_s20, 15  ;;  %p3822_p7 = scmp.ne.s32.totalorder %s5061_s27, 0 }
 0x11d   : > { %vm727_vm0 = vcmask (!%p3822_p7), 261120   ;;  %v5081_v0 = vmov (!%p3822_p7), 0.0  }
 0x11e   : > { %s6364_s20 = smov (!%p714_p5, %s3820_s20), 15  ;;  %726 = sbr.rel (%p3822_p7) target bundleno = 293 (0x125), region = 136 }
 0x11f   : > { %s3821_s24 = sshll.u32 %s6364_s20, 3  ;;  %728 = vst.msk [vmem:[#allocation4] sm:$0xff] (!%p3822_p7), %vm727_vm0, %v5081_v0  ;;  %729 = vst.msk [vmem:[#allocation4 + $0x8] sm:$0xff] (!%p3822_p7), %vm727_vm0, %v5081_v0 }
 0x120   : > { %730 = vst.msk [vmem:[#allocation4 + $0x10] sm:$0xff] (!%p3822_p7), %vm727_vm0, %v5081_v0  ;;  %731 = vst.msk [vmem:[#allocation4 + $0x18] sm:$0xff] (!%p3822_p7), %vm727_vm0, %v5081_v0 }
 0x121   : > { %s5496_s16 = scalar_lea.vmem %s6347_s12, %s3821_s24  ;;  %732 = vst.msk [vmem:[#allocation4 + $0x20] sm:$0xff] (!%p3822_p7), %vm727_vm0, %v5081_v0  ;;  %733 = vst.msk [vmem:[#allocation4 + $0x28] sm:$0xff] (!%p3822_p7), %vm727_vm0, %v5081_v0 }
 0x122   : > { %734 = vst.msk [vmem:[#allocation5] sm:$0xff] (!%p3822_p7), %vm727_vm0, %v5081_v0  ;;  %735 = vst.msk [vmem:[#allocation5 + $0x8] sm:$0xff] (!%p3822_p7), %vm727_vm0, %v5081_v0 }
 0x123   : > { %736 = vst.msk [vmem:[#allocation5 + $0x10] sm:$0xff] (!%p3822_p7), %vm727_vm0, %v5081_v0  ;;  %737 = vst.msk [vmem:[#allocation5 + $0x18] sm:$0xff] (!%p3822_p7), %vm727_vm0, %v5081_v0 }
 0x124   : > { %738 = vst.msk [vmem:[#allocation5 + $0x20] sm:$0xff] (!%p3822_p7), %vm727_vm0, %v5081_v0  ;;  %739 = vst.msk [vmem:[#allocation5 + $0x28] sm:$0xff] (!%p3822_p7), %vm727_vm0, %v5081_v0 }
 0x125 PF: > { %v755_v1 = vld [vmem:[#allocation6] sm:$0xf]  ;;  %vm788_vm1 = vcmask 1043456   ;;  %vm763_vm2 = vcmask 31744   ;;  %v748_v3 = vld [vmem:[%s5496_s16 + $0x8] sm:$0xff]  ;;  %s6348_s21 = sld [smem:[#allocation34_spill]]  ;;  %v740_v16 = vlaneseq }
 0x126   : > { %v747_v2 = vld [vmem:[%s5496_s16] sm:$0xff]  ;;  %4024 = vmatprep.subr.msk.mxu0 %vm788_vm1, %v755_v1  ;;  %v749_v6 = vld [vmem:[%s5496_s16 + $0x10] sm:$0xff]  ;;  %4341 = vmatprep.subr.msk.mxu1 %vm788_vm1, %v755_v1  ;;  %v750_v12 = vld [vmem:[%s5496_s16 + $0x18] sm:$0xff]  ;;  %vm917_vm3 = vcmask 261120   ;;  %s5082_s5 = smov 32   ;;  %v5083_v20 = vmov 1.0  }
 0x127   : > { %4026 = vmatprep.mubr.msk.f32.mxu0 %vm763_vm2, %v747_v2  ;;  %4025 = vmatpush3.msk.msra.mxu0 %vm788_vm1, %v755_v1  ;;  %v907_v13 = vld [vmem:[#allocation4] sm:$0xff]  ;;  %v908_v15 = vld [vmem:[#allocation4 + $0x8] sm:$0xff]  ;;  %v741_v17 = vand.u32 127, %v740_v16  ;;  %v5084_v36 = vmov 0.0   ;;  %s5085_s25 = smov 64   ;;  %s5086_s20 = smov 96  }
 0x128   : > { %4027 = vmatmul.mubr.msk.f32.vlgmr.msra.gmra.mrb[0].mxu0 %vm763_vm2, %v748_v3  ;;  %4342 = vmatpush3.msk.msra.mxu1 %vm788_vm1, %v755_v1  ;;  %v5544_v19 = vld [vmem:[#allocation9] ss:$0 sm:$0xff]  ;;  %s6351_s23 = sld [smem:[#allocation37_spill]]  ;;  %p3903_p1 = scmp.ne.s32.totalorder %s5061_s27, 1 }
 0x129   : > { %v909_v11 = vld [vmem:[#allocation5] sm:$0xff]  ;;  %4029 = vmatprep.mubr.msk.f32.mxu0 %vm763_vm2, %v749_v6  ;;  %v910_v14 = vld [vmem:[#allocation5 + $0x8] sm:$0xff]  ;;  %vm742_vm4 = vcmp.ge.s32.totalorder %v741_v17, 64  ;;  %vm743_vm5 = vcmp.lt.s32.totalorder %v741_v17, 96  ;;  %s5088_s27 = smov (!%p3903_p1), 96   ;;  %s6352_s18 = sld [smem:[#allocation38_spill]] (!%p3903_p1) }
 0x12a   : > { %1021 = vrot.lane.b32.xlu1 %v909_v11, %s5082_s5  ;;  %vm5540_vm6 = vmand %vm742_vm4, %vm743_vm5 }
 0x12b   : > { %v913_v4 = vld [vmem:[%s6348_s21] sm:$0xff]  ;;  %v914_v5 = vld [vmem:[%s6348_s21 + $0x8] sm:$0xff]  ;;  %v915_v8 = vld [vmem:[%s6348_s21 + $0x10] sm:$0xff]  ;;  %v5548_v21 = vsel %vm5540_vm6, 2.0, %v5083_v20  ;;  %v5556_v37 = vsel %vm5540_vm6, -1.0, %v5084_v36 }
 0x12c   : > { %v5511_v7 = vpack.c.bf16 %v914_v5, %v913_v4  ;;  %v916_v9 = vld [vmem:[%s6348_s21 + $0x18] sm:$0xff]  ;;  %4030 = vmatmul.mubr.msk.f32.gmra.mrb[2].mxu0 %vm763_vm2, %v750_v12 }
 0x12d   : > { %v5521_v10 = vpack.c.bf16 %v916_v9, %v915_v8  ;;  %4046 = vmatprep.mubr.msk.f32.mxu0 %vm917_vm3, %v907_v13 }
 0x12e   : > { %4222 = vmatprep.subr.bf16.mxu0 %v5511_v7  ;;  %1023 = vrot.lane.b32.xlu1 %v910_v14, %s5082_s5 }
 0x12f   : > { %4224 = vmatpush3.bf16.msra.mxu0 %v5511_v7 }
 0x130   : > { %4226 = vmatprep.subr.bf16.mxu0 %v5521_v10 }
 0x133   : > { %4228 = vmatpush3.bf16.msra.mxu0 %v5521_v10 }
 0x134   : > { %4230 = vmatprep.subr.bf16.mxu0 %v5511_v7 }
 0x136   : > { %4047 = vmatmul.mubr.msk.f32.vlgmr.msra.gmra.mrb[0].mxu0 %vm917_vm3, %v908_v15 }
 0x137   : > { %4232 = vmatpush3.bf16.msra.mxu0 %v5511_v7 }
 0x138   : > { %4234 = vmatprep.subr.bf16.mxu0 %v5521_v10 }
 0x13b   : > { %4236 = vmatpush3.bf16.msra.mxu0 %v5521_v10 }
 0x13c   : > { %4238 = vmatprep.subr.bf16.mxu0 %v5511_v7 }
 0x19c   : > { %v1022_v46 = vpop.permute.xlu1 %1021 }
 0x1a0   : > { %v1024_v48 = vpop.permute.xlu1 %1023 }
 0x209   : > { %v4048_v22 = vpop.f32.mrb[0].mxu0 }
 0x20a   : > { %v4343_v23 = vadd.f32 %v4048_v22, %v5544_v19  ;;  %v990_v24 = vpop.f32.mrb[1].mxu0 }
 0x20b   : > { %v4344_v25 = vadd.f32 %v5544_v19, %v990_v24 }
 0x20c   : > { %v1002_v26 = vmul.f32 %v4343_v23, %v5548_v21 }
 0x20d   : > { %v1001_v27 = vmul.f32 %v4344_v25, %v5548_v21 }
 0x20e   : > { %v3836_v28 = vmul.f32 -1.442695, %v1002_v26 }
 0x20f   : > { %v3835_v29 = vmul.f32 -1.442695, %v1001_v27 }
 0x210   : > { %4533 = vpow2.f32 %v3836_v28 }
 0x211   : > { %4535 = vpow2.f32 %v3835_v29 }
 0x21a   : > { %v4534_v30 = vpop.eup %4533 }
 0x21b   : > { %v4536_v31 = vpop.eup %4535  ;;  %v1010_v32 = vadd.f32 1.0, %v4534_v30  ;;  %v751_v30 = vld [vmem:[%s5496_s16 + $0x20] sm:$0xff] }
 0x21c   : > { %v1009_v33 = vadd.f32 1.0, %v4536_v31  ;;  %4032 = vmatprep.mubr.msk.f32.mxu1 %vm763_vm2, %v751_v30 }
 0x21d   : > { %4537 = vrcp.f32 %v1010_v32 }
 0x21e   : > { %4539 = vrcp.f32 %v1009_v33  ;;  %v752_v33 = vld [vmem:[%s5496_s16 + $0x28] sm:$0xff] }
 0x21f   : > { %4033 = vmatmul.mubr.msk.f32.vlgmr.msra.gmra.mrb[0].mxu1 %vm763_vm2, %v752_v33 }
 0x227   : > { %v4538_v34 = vpop.eup %4537 }
 0x228   : > { %v4540_v35 = vpop.eup %4539  ;;  %v1016_v40 = vmul.f32 %v4538_v34, %v5548_v21 }
 0x229   : > { %v1015_v38 = vmul.f32 %v4540_v35, %v5548_v21 }
 0x22a   : > { %v1018_v41 = vadd.f32 %v1016_v40, %v5556_v37 }
 0x22b   : > { %v1017_v39 = vadd.f32 %v1015_v38, %v5556_v37 }
 0x22c   : > { %v1028_v51 = vmul.f32 %v1024_v48, %v1018_v41 }
 0x22d   : > { %1031 = vrot.lane.b32.xlu0 %v1017_v39, %s5085_s25  ;;  %v1027_v47 = vmul.f32 %v1022_v46, %v1017_v39 }
 0x231   : > { %1033 = vrot.lane.b32.xlu0 %v1018_v41, %s5085_s25 }
 0x29f   : > { %v1032_v42 = vpop.permute.xlu0 %1031 }
 0x2a0   : > { %v1037_v43 = vmul.f32 %v1032_v42, %v1017_v39 }
 0x2a2   : > { %1041 = vrot.lane.b32.xlu0 %v1037_v43, %s5082_s5 }
 0x2a3   : > { %v1034_v44 = vpop.permute.xlu0 %1033 }
 0x2a4   : > { %v1038_v45 = vmul.f32 %v1034_v44, %v1018_v41 }
 0x2a6   : > { %1043 = vrot.lane.b32.xlu1 %v1038_v45, %s5082_s5 }
 0x314   : > { %v1042_v49 = vpop.permute.xlu0 %1041 }
 0x315   : > { %v1047_v50 = vadd.f32 %v1042_v49, %v1027_v47 }
 0x317   : > { %4541 = vtanh.f32 %v1047_v50 }
 0x318   : > { %v1044_v52 = vpop.permute.xlu1 %1043 }
 0x319   : > { %v1048_v53 = vadd.f32 %v1044_v52, %v1028_v51 }
 0x31b   : > { %4543 = vtanh.f32 %v1048_v53 }
 0x321   : > { %v4542_v54 = vpop.eup %4541 }
 0x322   : > { %1053 = vrot.lane.b32.xlu0 %v4542_v54, %s5085_s25 }
 0x325   : > { %v4544_v55 = vpop.eup %4543 }
 0x326   : > { %1055 = vrot.lane.b32.xlu1 %v4544_v55, %s5085_s25 }
 0x394   : > { %v1054_v56 = vpop.permute.xlu0 %1053 }
 0x395   : > { %v5568_v57 = vmul.f32 %v1054_v56, %v1017_v39 }
 0x397   : > { %1063 = vrot.lane.b32.xlu0 %v5568_v57, %s5082_s5 }
 0x398   : > { %v1056_v58 = vpop.permute.xlu1 %1055 }
 0x399   : > { %v5572_v59 = vmul.f32 %v1056_v58, %v1018_v41  ;;  %v4034_v41 = vpop.f32.mrb[0].mxu1 }
 0x39a   : > { %v878_v42 = vpop.f32.mrb[1].mxu1  ;;  %v884_v43 = vadd.f32 %v4034_v41, %v5544_v19 }
 0x39b   : > { %1065 = vrot.lane.b32.xlu1 %v5572_v59, %s5082_s5  ;;  %v879_v44 = vadd.f32 %v5544_v19, %v878_v42 }
 0x409   : > { %v5576_v60 = vpop.permute.xlu0 %1063 }
 0x40a   : > { %4057 = vmatprep.mubr.msk.f32.mxu0 %vm917_vm3, %v5576_v60 }
 0x40d   : > { %v5580_v61 = vpop.permute.xlu1 %1065 }
 0x40e   : > { %4058 = vmatmul.mubr.msk.f32.vlgmr.msra.gmra.mrb[2].mxu0 %vm917_vm3, %v5580_v61 }
 0x40f   : > { %4240 = vmatpush3.bf16.msra.mxu0 %v5511_v7 }
 0x410   : > { %4242 = vmatprep.subr.bf16.mxu0 %v5521_v10 }
 0x413   : > { %4244 = vmatpush3.bf16.msra.mxu0 %v5521_v10 }
 0x414   : > { %4246 = vmatprep.subr.bf16.mxu0 %v5511_v7 }
 0x4e1   : > { %v4059_v62 = vpop.f32.mrb[2].mxu0 }
 0x4e2   : > { %v4345_v63 = vadd.f32 %v4059_v62, %v5544_v19  ;;  %v1211_v0 = vpop.f32.mrb[3].mxu0 }
 0x4e3   : > { %v4346_v1 = vadd.f32 %v5544_v19, %v1211_v0 }
 0x4e4   : > { %v1223_v2 = vmul.f32 %v4345_v63, %v5548_v21 }
 0x4e5   : > { %v1222_v3 = vmul.f32 %v4346_v1, %v5548_v21 }
 0x4e6   : > { %v3842_v4 = vmul.f32 -1.442695, %v1223_v2 }
 0x4e7   : > { %v3841_v5 = vmul.f32 -1.442695, %v1222_v3 }
 0x4e8   : > { %4545 = vpow2.f32 %v3842_v4 }
 0x4e9   : > { %4547 = vpow2.f32 %v3841_v5 }
 0x4f2   : > { %v4546_v6 = vpop.eup %4545 }
 0x4f3   : > { %v4548_v8 = vpop.eup %4547  ;;  %v1231_v9 = vadd.f32 1.0, %v4546_v6 }
 0x4f4   : > { %v1230_v11 = vadd.f32 1.0, %v4548_v8 }
 0x4f5   : > { %4549 = vrcp.f32 %v1231_v9 }
 0x4f6   : > { %4551 = vrcp.f32 %v1230_v11 }
 0x4ff   : > { %v4550_v12 = vpop.eup %4549 }
 0x500   : > { %v4552_v13 = vpop.eup %4551  ;;  %v1237_v14 = vmul.f32 %v4550_v12, %v5548_v21 }
 0x501   : > { %v1236_v15 = vmul.f32 %v4552_v13, %v5548_v21  ;;  %v753_v13 = vld [vmem:[%s5496_s16 + $0x30] sm:$0xff] }
 0x502   : > { %v1239_v16 = vadd.f32 %v1237_v14, %v5556_v37  ;;  %4035 = vmatprep.mubr.msk.f32.mxu1 %vm763_vm2, %v753_v13 }
 0x503   : > { %v1238_v17 = vadd.f32 %v1236_v15, %v5556_v37 }
 0x504   : > { %1246 = vrot.lane.b32.xlu1 %v1239_v16, %s5085_s25  ;;  %v1241_v24 = vmul.f32 %v1239_v16, %v1048_v53 }
 0x505   : > { %1244 = vrot.lane.b32.xlu0 %v1238_v17, %s5085_s25  ;;  %v1240_v26 = vmul.f32 %v1238_v17, %v1047_v50 }
 0x576   : > { %v1247_v18 = vpop.permute.xlu1 %1246 }
 0x577   : > { %v1251_v20 = vmul.f32 %v1247_v18, %v1239_v16  ;;  %v1245_v22 = vpop.permute.xlu0 %1244 }
 0x578   : > { %v1250_v23 = vmul.f32 %v1245_v22, %v1238_v17 }
 0x579   : > { %1256 = vrot.lane.b32.xlu1 %v1251_v20, %s5082_s5 }
 0x57a   : > { %1254 = vrot.lane.b32.xlu0 %v1250_v23, %s5082_s5 }
 0x5eb   : > { %v1257_v25 = vpop.permute.xlu1 %1256 }
 0x5ec   : > { %v1261_v27 = vadd.f32 %v1257_v25, %v1241_v24  ;;  %v1255_v28 = vpop.permute.xlu0 %1254 }
 0x5ed   : > { %v1260_v29 = vadd.f32 %v1255_v28, %v1240_v26 }
 0x5ee   : > { %4553 = vtanh.f32 %v1261_v27 }
 0x5ef   : > { %4555 = vtanh.f32 %v1260_v29 }
 0x5f8   : > { %v4554_v31 = vpop.eup %4553 }
 0x5f9   : > { %v4556_v32 = vpop.eup %4555  ;;  %1268 = vrot.lane.b32.xlu1 %v4554_v31, %s5085_s25 }
 0x5fa   : > { %1266 = vrot.lane.b32.xlu0 %v4556_v32, %s5085_s25 }
 0x66b   : > { %v1269_v34 = vpop.permute.xlu1 %1268 }
 0x66c   : > { %v5606_v35 = vmul.f32 %v1269_v34, %v1239_v16  ;;  %v1267_v36 = vpop.permute.xlu0 %1266  ;;  %v754_v16 = vld [vmem:[%s5496_s16 + $0x38] sm:$0xff]  ;;  %s6353_s16 = sld [smem:[#allocation39_spill]] (!%p3903_p1) }
 0x66d   : > { %v5608_v38 = vmul.f32 %v1267_v36, %v1238_v17  ;;  %4036 = vmatmul.mubr.msk.f32.gmra.mrb[2].mxu1 %vm763_vm2, %v754_v16 }
 0x66e   : > { %1278 = vrot.lane.b32.xlu1 %v5606_v35, %s5082_s5 }
 0x66f   : > { %1276 = vrot.lane.b32.xlu0 %v5608_v38, %s5082_s5 }
 0x6e0   : > { %v5616_v40 = vpop.permute.xlu1 %1278 }
 0x6e1   : > { %v5614_v39 = vpop.permute.xlu0 %1276 }
 0x6e2   : > { %4068 = vmatprep.mubr.msk.f32.mxu0 %vm917_vm3, %v5614_v39 }
 0x6e3   : > { %4069 = vmatmul.mubr.msk.f32.vlgmr.msra.gmra.mrb[4].mxu0 %vm917_vm3, %v5616_v40 }
 0x6e4   : > { %4248 = vmatpush3.bf16.msra.mxu0 %v5511_v7 }
 0x6e5   : > { %4250 = vmatprep.subr.bf16.mxu0 %v5521_v10 }
 0x6e8   : > { %4252 = vmatpush3.bf16.msra.mxu0 %v5521_v10 }
 0x740   : > { %v4037_v25 = vpop.f32.mrb[2].mxu1 }
 0x741   : > { %v888_v26 = vpop.f32.mrb[3].mxu1 }
 0x742   : > { %v889_v28 = vadd.f32 %v5544_v19, %v888_v26 }
 0x7b6   : > { %v4070_v45 = vpop.f32.mrb[4].mxu0 }
 0x7b7   : > { %v1418_v46 = vadd.f32 %v4070_v45, %v884_v43  ;;  %v1408_v47 = vpop.f32.mrb[5].mxu0 }
 0x7b8   : > { %v1417_v48 = vadd.f32 %v1408_v47, %v879_v44 }
 0x7b9   : > { %v1420_v49 = vmul.f32 %v1418_v46, %v5548_v21 }
 0x7ba   : > { %v1419_v50 = vmul.f32 %v1417_v48, %v5548_v21 }
 0x7bb   : > { %v3846_v51 = vmul.f32 -1.442695, %v1420_v49 }
 0x7bc   : > { %v3845_v7 = vmul.f32 -1.442695, %v1419_v50 }
 0x7bd   : > { %4557 = vpow2.f32 %v3846_v51 }
 0x7be   : > { %4559 = vpow2.f32 %v3845_v7 }
 0x7c7   : > { %v4558_v52 = vpop.eup %4557 }
 0x7c8   : > { %v4560_v10 = vpop.eup %4559  ;;  %v1428_v53 = vadd.f32 1.0, %v4558_v52 }
 0x7c9   : > { %v1427_v54 = vadd.f32 1.0, %v4560_v10 }
 0x7ca   : > { %4561 = vrcp.f32 %v1428_v53 }
 0x7cb   : > { %4563 = vrcp.f32 %v1427_v54 }
 0x7d4   : > { %v4562_v55 = vpop.eup %4561 }
 0x7d5   : > { %v4564_v56 = vpop.eup %4563  ;;  %v1434_v58 = vmul.f32 %v4562_v55, %v5548_v21 }
 0x7d6   : > { %v1433_v62 = vmul.f32 %v4564_v56, %v5548_v21 }
 0x7d7   : > { %v1436_v63 = vadd.f32 %v1434_v58, %v5556_v37 }
 0x7d8   : > { %v1435_v0 = vadd.f32 %v1433_v62, %v5556_v37 }
 0x7d9   : > { %1443 = vrot.lane.b32.xlu1 %v1436_v63, %s5085_s25  ;;  %v1438_v5 = vmul.f32 %v1436_v63, %v1261_v27  ;;  %v894_v27 = vadd.f32 %v4037_v25, %v5544_v19 }
 0x7da   : > { %1441 = vrot.lane.b32.xlu0 %v1435_v0, %s5085_s25  ;;  %v1437_v8 = vmul.f32 %v1435_v0, %v1260_v29 }
 0x84b   : > { %v1444_v1 = vpop.permute.xlu1 %1443 }
 0x84c   : > { %v1448_v2 = vmul.f32 %v1444_v1, %v1436_v63  ;;  %v1442_v3 = vpop.permute.xlu0 %1441 }
 0x84d   : > { %v1447_v4 = vmul.f32 %v1442_v3, %v1435_v0 }
 0x84e   : > { %1453 = vrot.lane.b32.xlu1 %v1448_v2, %s5082_s5 }
 0x84f   : > { %1451 = vrot.lane.b32.xlu0 %v1447_v4, %s5082_s5 }
 0x8c0   : > { %v1454_v6 = vpop.permute.xlu1 %1453 }
 0x8c1   : > { %v1458_v9 = vadd.f32 %v1454_v6, %v1438_v5  ;;  %v1452_v11 = vpop.permute.xlu0 %1451  ;;  %v1069_v5 = vsel %vm917_vm3, %v5576_v60, 0.0  ;;  %v1072_v6 = vsel %vm917_vm3, %v5580_v61, 0.0 }
 0x8c2   : > { %v1457_v12 = vadd.f32 %v1452_v11, %v1437_v8  ;;  %v1282_v8 = vsel %vm917_vm3, %v5614_v39, 0.0  ;;  %v1285_v11 = vsel %vm917_vm3, %v5616_v40, 0.0 }
 0x8c3   : > { %4565 = vtanh.f32 %v1458_v9 }
 0x8c4   : > { %4567 = vtanh.f32 %v1457_v12 }
 0x8cd   : > { %v4566_v14 = vpop.eup %4565 }
 0x8ce   : > { %v4568_v15 = vpop.eup %4567  ;;  %1465 = vrot.lane.b32.xlu1 %v4566_v14, %s5085_s25 }
 0x8cf   : > { %1463 = vrot.lane.b32.xlu0 %v4568_v15, %s5085_s25 }
 0x940   : > { %v1466_v17 = vpop.permute.xlu1 %1465 }
 0x941   : > { %v5643_v18 = vmul.f32 %v1466_v17, %v1436_v63  ;;  %v1464_v20 = vpop.permute.xlu0 %1463 }
 0x942   : > { %v5645_v22 = vmul.f32 %v1464_v20, %v1435_v0 }
 0x943   : > { %1475 = vrot.lane.b32.xlu1 %v5643_v18, %s5082_s5 }
 0x944   : > { %1473 = vrot.lane.b32.xlu0 %v5645_v22, %s5082_s5 }
 0x9b5   : > { %v5651_v24 = vpop.permute.xlu1 %1475 }
 0x9b6   : > { %v1474_v23 = vpop.permute.xlu0 %1473 }
 0x9b7   : > { %4079 = vmatprep.mubr.msk.f32.mxu0 %vm917_vm3, %v1474_v23 }
 0x9b8   : > { %4080 = vmatmul.mubr.msk.f32.vlgmr.msra.gmra.mrb[6].mxu0 %vm917_vm3, %v5651_v24 }
 0xa8b   : > { %v4081_v29 = vpop.f32.mrb[6].mxu0 }
 0xa8c   : > { %v1615_v30 = vadd.f32 %v4081_v29, %v894_v27  ;;  %v1605_v31 = vpop.f32.mrb[7].mxu0 }
 0xa8d   : > { %v1614_v32 = vadd.f32 %v1605_v31, %v889_v28 }
 0xa8e   : > { %v1617_v33 = vmul.f32 %v1615_v30, %v5548_v21 }
 0xa8f   : > { %v1616_v34 = vmul.f32 %v1614_v32, %v5548_v21 }
 0xa90   : > { %v3850_v36 = vmul.f32 -1.442695, %v1617_v33 }
 0xa91   : > { %v3849_v41 = vmul.f32 -1.442695, %v1616_v34 }
 0xa92   : > { %4569 = vpow2.f32 %v3850_v36 }
 0xa93   : > { %4571 = vpow2.f32 %v3849_v41 }
 0xa9c   : > { %v4570_v42 = vpop.eup %4569 }
 0xa9d   : > { %v4572_v43 = vpop.eup %4571  ;;  %v1625_v44 = vadd.f32 1.0, %v4570_v42 }
 0xa9e   : > { %v1624_v45 = vadd.f32 1.0, %v4572_v43 }
 0xa9f   : > { %4573 = vrcp.f32 %v1625_v44 }
 0xaa0   : > { %4575 = vrcp.f32 %v1624_v45 }
 0xaa9   : > { %v4574_v46 = vpop.eup %4573 }
 0xaaa   : > { %v4576_v19 = vpop.eup %4575  ;;  %v1631_v47 = vmul.f32 %v4574_v46, %v5548_v21 }
 0xaab   : > { %v1630_v48 = vmul.f32 %v4576_v19, %v5548_v21 }
 0xaac   : > { %v1633_v49 = vadd.f32 %v1631_v47, %v5556_v37 }
 0xaad   : > { %v1632_v50 = vadd.f32 %v1630_v48, %v5556_v37 }
 0xaae   : > { %1640 = vrot.lane.b32.xlu1 %v1633_v49, %s5085_s25  ;;  %v1635_v53 = vmul.f32 %v1633_v49, %v1458_v9  ;;  %v1479_v9 = vsel %vm917_vm3, %v1474_v23, 0.0 }
 0xaaf   : > { %1638 = vrot.lane.b32.xlu0 %v1632_v50, %s5085_s25  ;;  %v1634_v55 = vmul.f32 %v1632_v50, %v1457_v12  ;;  %v1482_v12 = vsel %vm917_vm3, %v5651_v24, 0.0 }
 0xb20   : > { %v1641_v51 = vpop.permute.xlu1 %1640 }
 0xb21   : > { %v1645_v7 = vmul.f32 %v1641_v51, %v1633_v49  ;;  %v1639_v52 = vpop.permute.xlu0 %1638 }
 0xb22   : > { %v1644_v10 = vmul.f32 %v1639_v52, %v1632_v50 }
 0xb23   : > { %1650 = vrot.lane.b32.xlu1 %v1645_v7, %s5082_s5 }
 0xb24   : > { %1648 = vrot.lane.b32.xlu0 %v1644_v10, %s5082_s5 }
 0xb95   : > { %v1651_v54 = vpop.permute.xlu1 %1650 }
 0xb96   : > { %v5668_v56 = vadd.f32 %v1651_v54, %v1635_v53  ;;  %v1649_v58 = vpop.permute.xlu0 %1648 }
 0xb97   : > { %v5670_v62 = vadd.f32 %v1649_v58, %v1634_v55 }
 0xb98   : > { %4577 = vtanh.f32 %v5668_v56 }
 0xb99   : > { %4579 = vtanh.f32 %v5670_v62 }
 0xba2   : > { %v4578_v63 = vpop.eup %4577 }
 0xba3   : > { %v4580_v0 = vpop.eup %4579  ;;  %1662 = vrot.lane.b32.xlu1 %v4578_v63, %s5085_s25 }
 0xba4   : > { %1660 = vrot.lane.b32.xlu0 %v4580_v0, %s5085_s25 }
 0xc15   : > { %v1663_v1 = vpop.permute.xlu1 %1662 }
 0xc16   : > { %v1667_v2 = vmul.f32 %v1663_v1, %v1633_v49  ;;  %v1661_v3 = vpop.permute.xlu0 %1660 }
 0xc17   : > { %v1666_v4 = vmul.f32 %v1661_v3, %v1632_v50  ;;  %v3837_v3 = vld [vmem:[#allocation11] ss:$0 sm:$0xff] }
 0xc18   : > { %1672 = vrot.lane.b32.xlu1 %v1667_v2, %s5082_s5 }
 0xc19   : > { %1670 = vrot.lane.b32.xlu0 %v1666_v4, %s5082_s5 }
 0xc38   : > { %1070 = vadd.xlane.f32.xlu0 %v1069_v5 }
 0xc3c   : > { %1073 = vadd.xlane.f32.xlu1 %v1072_v6  ;;  %1283 = vadd.xlane.f32.xlu0 %v1282_v8 }
 0xc40   : > { %1480 = vadd.xlane.f32.xlu1 %v1479_v9  ;;  %1286 = vadd.xlane.f32.xlu0 %v1285_v11 }
 0xc44   : > { %1483 = vadd.xlane.f32.xlu0 %v1482_v12 }
 0xc8a   : > { %v1673_v60 = vpop.permute.xlu1 %1672 }
 0xc8b   : > { %1726 = vst.msk [vmem:[#allocation4 + $0x8] sm:$0xff] %vm917_vm3, %v1673_v60  ;;  %v1671_v61 = vpop.permute.xlu0 %1670  ;;  %v1679_v13 = vsel %vm917_vm3, %v1673_v60, 0.0 }
 0xc8c   : > { %1725 = vst.msk [vmem:[#allocation4] sm:$0xff] %vm917_vm3, %v1671_v61  ;;  %1680 = vadd.xlane.f32.xlu0 %v1679_v13  ;;  %v1676_v39 = vsel %vm917_vm3, %v1671_v61, 0.0 }
 0xc8d   : > { %1677 = vadd.xlane.f32.xlu1 %v1676_v39 }
 0xcc5   : > { %v1071_v14 = vpop.xlane.xlu0 %1070 }
 0xcc6   : > { %v1076_v40 = vmul.f32 0.03125, %v1071_v14 }
 0xcc8   : > { %v5694_v15 = vsub.f32 %v5568_v57, %v1076_v40 }
 0xcc9   : > { %v1074_v16 = vpop.xlane.xlu1 %1073  ;;  %v1284_v17 = vpop.xlane.xlu0 %1283 }
 0xcca   : > { %v1077_v20 = vmul.f32 0.03125, %v1074_v16  ;;  %v1288_v23 = vmul.f32 0.03125, %v1284_v17  ;;  %v1080_v24 = vmul.f32 %v5694_v15, %v5694_v15 }
 0xccc   : > { %v5699_v25 = vsub.f32 %v5572_v59, %v1077_v20  ;;  %v5702_v26 = vsub.f32 %v5608_v38, %v1288_v23  ;;  %1084 = vrot.lane.b32.xlu1 %v1080_v24, %s5082_s5 }
 0xccd   : > { %v1481_v27 = vpop.xlane.xlu1 %1480  ;;  %v1287_v28 = vpop.xlane.xlu0 %1286 }
 0xcce   : > { %v1485_v29 = vmul.f32 0.03125, %v1481_v27  ;;  %v1289_v57 = vmul.f32 0.03125, %v1287_v28  ;;  %v1081_v30 = vmul.f32 %v5699_v25, %v5699_v25  ;;  %v1292_v31 = vmul.f32 %v5702_v26, %v5702_v26  ;;  %v1745_v28 = vld [vmem:[%s6302_s6] sm:$0xff] }
 0xcd0   : > { %v5710_v32 = vsub.f32 %v5645_v22, %v1485_v29  ;;  %v5713_v59 = vsub.f32 %v5606_v35, %v1289_v57  ;;  %1086 = vrot.lane.b32.xlu0 %v1081_v30, %s5082_s5  ;;  %1296 = vrot.lane.b32.xlu1 %v1292_v31, %s5082_s5  ;;  %v1746_v29 = vld [vmem:[%s6302_s6 + $0x8] sm:$0xff] }
 0xcd1   : > { %v1484_v38 = vpop.xlane.xlu0 %1483  ;;  %v4253_v31 = vpack.c.bf16 %v1746_v29, %v1745_v28 }
 0xcd2   : > { %v1486_v33 = vmul.f32 0.03125, %v1484_v38  ;;  %v1489_v34 = vmul.f32 %v5710_v32, %v5710_v32  ;;  %v1293_v36 = vmul.f32 %v5713_v59, %v5713_v59 }
 0xcd3   : > { %4254 = vmatprep.subr.bf16.mxu1 %v4253_v31 }
 0xcd4   : > { %v5722_v41 = vsub.f32 %v5643_v18, %v1486_v33  ;;  %1493 = vrot.lane.b32.xlu0 %v1489_v34, %s5082_s5  ;;  %1298 = vrot.lane.b32.xlu1 %v1293_v36, %s5082_s5 }
 0xcd5   : > { %4256 = vmatpush3.bf16.msra.mxu1 %v4253_v31 }
 0xcd6   : > { %v1490_v35 = vmul.f32 %v5722_v41, %v5722_v41 }
 0xcd8   : > { %1495 = vrot.lane.b32.xlu1 %v1490_v35, %s5082_s5 }
 0xd19   : > { %v1681_v22 = vpop.xlane.xlu0 %1680 }
 0xd1a   : > { %v1683_v42 = vmul.f32 0.03125, %v1681_v22  ;;  %v1678_v43 = vpop.xlane.xlu1 %1677 }
 0xd1b   : > { %v1682_v44 = vmul.f32 0.03125, %v1678_v43  ;;  %v1747_v43 = vld [vmem:[%s6302_s6 + $0x10] sm:$0xff] }
 0xd1c   : > { %v5729_v45 = vsub.f32 %v1667_v2, %v1683_v42 }
 0xd1d   : > { %v5731_v46 = vsub.f32 %v1666_v4, %v1682_v44  ;;  %v3838_v4 = vld [vmem:[#allocation12] ss:$0 sm:$0xff]  ;;  %v1748_v44 = vld [vmem:[%s6302_s6 + $0x18] sm:$0xff] }
 0xd1e   : > { %v1687_v18 = vmul.f32 %v5729_v45, %v5729_v45 }
 0xd1f   : > { %v1686_v19 = vmul.f32 %v5731_v46, %v5731_v46 }
 0xd20   : > { %1692 = vrot.lane.b32.xlu1 %v1687_v18, %s5082_s5 }
 0xd21   : > { %1690 = vrot.lane.b32.xlu0 %v1686_v19, %s5082_s5 }
 0xd3e   : > { %v1085_v47 = vpop.permute.xlu1 %1084 }
 0xd3f   : > { %v1090_v48 = vsel %vm917_vm3, %v1085_v47, 0.0 }
 0xd40   : > { %1091 = vadd.xlane.f32.xlu0 %v1090_v48  ;;  %v4257_v48 = vpack.c.bf16 %v1748_v44, %v1747_v43 }
 0xd42   : > { %v1297_v49 = vpop.permute.xlu1 %1296  ;;  %v1087_v50 = vpop.permute.xlu0 %1086  ;;  %4258 = vmatprep.subr.bf16.mxu1 %v4257_v48 }
 0xd43   : > { %v1302_v51 = vsel %vm917_vm3, %v1297_v49, 0.0  ;;  %v1093_v7 = vsel %vm917_vm3, %v1087_v50, 0.0  ;;  %4260 = vmatpush3.bf16.msra.mxu1 %v4257_v48 }
 0xd44   : > { %1303 = vadd.xlane.f32.xlu0 %v1302_v51  ;;  %1094 = vadd.xlane.f32.xlu1 %v1093_v7 }
 0xd46   : > { %v1299_v52 = vpop.permute.xlu1 %1298  ;;  %v1494_v10 = vpop.permute.xlu0 %1493 }
 0xd47   : > { %v1305_v53 = vsel %vm917_vm3, %v1299_v52, 0.0  ;;  %v1499_v54 = vsel %vm917_vm3, %v1494_v10, 0.0 }
 0xd48   : > { %1306 = vadd.xlane.f32.xlu0 %v1305_v53  ;;  %1500 = vadd.xlane.f32.xlu1 %v1499_v54 }
 0xd4a   : > { %v1496_v55 = vpop.permute.xlu1 %1495 }
 0xd4b   : > { %v1502_v58 = vsel %vm917_vm3, %v1496_v55, 0.0 }
 0xd4c   : > { %1503 = vadd.xlane.f32.xlu0 %v1502_v58 }
 0xd92   : > { %v1693_v63 = vpop.permute.xlu1 %1692 }
 0xd93   : > { %v1691_v0 = vpop.permute.xlu0 %1690  ;;  %v1699_v1 = vsel %vm917_vm3, %v1693_v63, 0.0 }
 0xd94   : > { %1700 = vadd.xlane.f32.xlu0 %v1699_v1  ;;  %v1696_v2 = vsel %vm917_vm3, %v1691_v0, 0.0 }
 0xd95   : > { %1697 = vadd.xlane.f32.xlu1 %v1696_v2 }
 0xda6   : > { %1109 = vrot.lane.b32.xlu1 %v3837_v3, %s5086_s20 }
 0xdaa   : > { %1119 = vrot.lane.b32.xlu0 %v3838_v4, %s5086_s20 }
 0xdcd   : > { %v1092_v5 = vpop.xlane.xlu0 %1091 }
 0xdce   : > { %v1096_v9 = vmul.f32 0.03125, %v1092_v5 }
 0xdd0   : > { %v1098_v39 = vadd.f32 1e-05, %v1096_v9 }
 0xdd1   : > { %v1095_v6 = vpop.xlane.xlu1 %1094  ;;  %v1304_v8 = vpop.xlane.xlu0 %1303 }
 0xdd2   : > { %v1308_v12 = vmul.f32 0.03125, %v1304_v8  ;;  %v1097_v60 = vmul.f32 0.03125, %v1095_v6  ;;  %4581 = vrsqrt.f32 %v1098_v39 }
 0xdd4   : > { %v1310_v14 = vadd.f32 1e-05, %v1308_v12  ;;  %v1099_v40 = vadd.f32 1e-05, %v1097_v60 }
 0xdd5   : > { %v1501_v11 = vpop.xlane.xlu1 %1500  ;;  %v1307_v61 = vpop.xlane.xlu0 %1306 }
 0xdd6   : > { %v1505_v13 = vmul.f32 0.03125, %v1501_v11  ;;  %v1309_v17 = vmul.f32 0.03125, %v1307_v61  ;;  %4583 = vrsqrt.f32 %v1310_v14 }
 0xdd7   : > { %4585 = vrsqrt.f32 %v1099_v40 }
 0xdd8   : > { %v1507_v16 = vadd.f32 1e-05, %v1505_v13  ;;  %v1311_v23 = vadd.f32 1e-05, %v1309_v17  ;;  %v1905_v17 = vld [vmem:[%s6303_s7 + $0x10] sm:$0xff] }
 0xdd9   : > { %v1504_v20 = vpop.xlane.xlu0 %1503 }
 0xdda   : > { %4587 = vrsqrt.f32 %v1507_v16  ;;  %v1506_v24 = vmul.f32 0.03125, %v1504_v20  ;;  %v1906_v20 = vld [vmem:[%s6303_s7 + $0x18] sm:$0xff] }
 0xddb   : > { %4589 = vrsqrt.f32 %v1311_v23  ;;  %v5798_v23 = vpack.c.bf16 %v1906_v20, %v1905_v17 }
 0xddc   : > { %v1508_v27 = vadd.f32 1e-05, %v1506_v24  ;;  %v4582_v57 = vpop.eup %4581 }
 0xddd   : > { %v1102_v19 = vmul.f32 %v4582_v57, %v5694_v15 }
 0xdde   : > { %4591 = vrsqrt.f32 %v1508_v27 }
 0xde0   : > { %v4584_v38 = vpop.eup %4583 }
 0xde1   : > { %v4586_v36 = vpop.eup %4585  ;;  %v1314_v47 = vmul.f32 %v4584_v38, %v5702_v26  ;;  %v1903_v26 = vld [vmem:[%s6303_s7] sm:$0xff] }
 0xde2   : > { %v1103_v51 = vmul.f32 %v4586_v36, %v5699_v25  ;;  %v1904_v25 = vld [vmem:[%s6303_s7 + $0x8] sm:$0xff] }
 0xde3   : > { %v5774_v63 = vpack.c.bf16 %v1904_v25, %v1903_v26  ;;  %v1900_v26 = vld [vmem:[#allocation5 + $0x18] sm:$0xff]  ;;  %v1899_v25 = vld [vmem:[#allocation5 + $0x10] sm:$0xff] }
 0xde4   : > { %v4588_v22 = vpop.eup %4587 }
 0xde5   : > { %v1511_v10 = vmul.f32 %v4588_v22, %v5710_v32  ;;  %v4590_v53 = vpop.eup %4589  ;;  %4262 = vmatprep.subr.bf16.mxu1 %v5774_v63  ;;  %v5820_v22 = vld [vmem:[#allocation14] ss:$0 sm:$0xff] }
 0xde6   : > { %v1315_v32 = vmul.f32 %v4590_v53, %v5713_v59 }
 0xde8   : > { %v4592_v0 = vpop.eup %4591 }
 0xde9   : > { %v1512_v4 = vmul.f32 %v4592_v0, %v5722_v41 }
 0xe21   : > { %v1701_v30 = vpop.xlane.xlu0 %1700 }
 0xe22   : > { %v1703_v33 = vmul.f32 0.03125, %v1701_v30  ;;  %v1698_v34 = vpop.xlane.xlu1 %1697 }
 0xe23   : > { %v1702_v35 = vmul.f32 0.03125, %v1698_v34  ;;  %v1896_v34 = vld [vmem:[#allocation4 + $0x10] sm:$0xff] }
 0xe24   : > { %v1705_v42 = vadd.f32 1e-05, %v1703_v33 }
 0xe25   : > { %v1704_v18 = vadd.f32 1e-05, %v1702_v35  ;;  %v1120_v50 = vpop.permute.xlu0 %1119  ;;  %v1897_v35 = vld [vmem:[#allocation4 + $0x18] sm:$0xff] }
 0xe26   : > { %4593 = vrsqrt.f32 %v1705_v42  ;;  %v1110_v49 = vpop.permute.xlu1 %1109 }
 0xe27   : > { %4595 = vrsqrt.f32 %v1704_v18  ;;  %v1112_v7 = vmul.f32 %v1110_v49, %v1102_v19  ;;  %v1316_v52 = vmul.f32 %v1314_v47, %v1110_v49  ;;  %v1113_v58 = vmul.f32 %v1110_v49, %v1103_v51 }
 0xe28   : > { %v1513_v15 = vmul.f32 %v1511_v10, %v1110_v49  ;;  %v1317_v3 = vmul.f32 %v1315_v32, %v1110_v49  ;;  %v1514_v9 = vmul.f32 %v1512_v4, %v1110_v49 }
 0xe29   : > { %v1122_v54 = vadd.f32 %v1120_v50, %v1112_v7  ;;  %v1318_v55 = vadd.f32 %v1316_v52, %v1120_v50  ;;  %v1123_v1 = vadd.f32 %v1120_v50, %v1113_v58 }
 0xe2a   : > { %v1515_v2 = vadd.f32 %v1513_v15, %v1120_v50  ;;  %v1319_v8 = vadd.f32 %v1317_v3, %v1120_v50  ;;  %v1516_v60 = vadd.f32 %v1514_v9, %v1120_v50 }
 0xe2b   : > { %1126 = vrot.lane.b32.xlu1 %v1122_v54, %s5082_s5  ;;  %1322 = vrot.lane.b32.xlu0 %v1318_v55, %s5082_s5 }
 0xe2f   : > { %1128 = vrot.lane.b32.xlu1 %v1123_v1, %s5082_s5  ;;  %1519 = vrot.lane.b32.xlu0 %v1515_v2, %s5082_s5 }
 0xe30   : > { %v4594_v5 = vpop.eup %4593 }
 0xe31   : > { %v4596_v6 = vpop.eup %4595  ;;  %v1709_v59 = vmul.f32 %v4594_v5, %v5729_v45 }
 0xe32   : > { %v1708_v11 = vmul.f32 %v4596_v6, %v5731_v46 }
 0xe33   : > { %1324 = vrot.lane.b32.xlu1 %v1319_v8, %s5082_s5  ;;  %v1711_v61 = vmul.f32 %v1709_v59, %v1110_v49 }
 0xe34   : > { %v1710_v12 = vmul.f32 %v1708_v11, %v1110_v49 }
 0xe35   : > { %v1713_v39 = vadd.f32 %v1711_v61, %v1120_v50 }
 0xe36   : > { %v1712_v13 = vadd.f32 %v1710_v12, %v1120_v50 }
 0xe37   : > { %1521 = vrot.lane.b32.xlu1 %v1516_v60, %s5082_s5 }
 0xe38   : > { %1716 = vrot.lane.b32.xlu0 %v1712_v13, %s5082_s5 }
 0xe3b   : > { %1718 = vrot.lane.b32.xlu1 %v1713_v39, %s5082_s5 }
 0xe9d   : > { %v1127_v41 = vpop.permute.xlu1 %1126  ;;  %v1323_v14 = vpop.permute.xlu0 %1322 }
 0xe9e   : > { %1132 = vst.msk [vmem:[#allocation3] sm:$0xff] %vm917_vm3, %v1127_v41  ;;  %1329 = vst.msk [vmem:[#allocation3 + $0x10] sm:$0xff] %vm917_vm3, %v1323_v14 }
 0xea1   : > { %v1129_v45 = vpop.permute.xlu1 %1128  ;;  %v1520_v46 = vpop.permute.xlu0 %1519 }
 0xea2   : > { %1133 = vst.msk [vmem:[#allocation3 + $0x8] sm:$0xff] %vm917_vm3, %v1129_v45  ;;  %1526 = vst.msk [vmem:[#allocation3 + $0x20] sm:$0xff] %vm917_vm3, %v1520_v46 }
 0xea5   : > { %v1325_v40 = vpop.permute.xlu1 %1324  ;;  %v1737_v16 = vld [vmem:[#allocation3] sm:$0xff]  ;;  %v1739_v29 = vld [vmem:[#allocation3 + $0x10] sm:$0xff] }
 0xea6   : > { %1330 = vst.msk [vmem:[#allocation3 + $0x18] sm:$0xff] %vm917_vm3, %v1325_v40  ;;  %4090 = vmatprep.mubr.msk.f32.mxu1 %vm917_vm3, %v1737_v16 }
 0xea9   : > { %v1522_v24 = vpop.permute.xlu1 %1521  ;;  %v1738_v27 = vld [vmem:[#allocation3 + $0x8] sm:$0xff]  ;;  %v1741_v31 = vld [vmem:[#allocation3 + $0x20] sm:$0xff] }
 0xeaa   : > { %1527 = vst.msk [vmem:[#allocation3 + $0x28] sm:$0xff] %vm917_vm3, %v1522_v24  ;;  %4091 = vmatmul.mubr.msk.f32.vlgmr.msra.gmra.mrb[4].mxu1 %vm917_vm3, %v1738_v27  ;;  %v1717_v28 = vpop.permute.xlu0 %1716 }
 0xeab   : > { %1723 = vst.msk [vmem:[#allocation3 + $0x30] sm:$0xff] %vm917_vm3, %v1717_v28  ;;  %4093 = vmatprep.mubr.msk.f32.mxu1 %vm917_vm3, %v1739_v29  ;;  %4264 = vmatpush3.bf16.msra.mxu1 %v5774_v63 }
 0xeac   : > { %4266 = vmatprep.subr.bf16.mxu1 %v5798_v23 }
 0xead   : > { %v1719_v57 = vpop.permute.xlu1 %1718  ;;  %v1740_v30 = vld [vmem:[#allocation3 + $0x18] sm:$0xff] }
 0xeae   : > { %1724 = vst.msk [vmem:[#allocation3 + $0x38] sm:$0xff] %vm917_vm3, %v1719_v57  ;;  %4094 = vmatmul.mubr.msk.f32.gmra.mrb[6].mxu1 %vm917_vm3, %v1740_v30 }
 0xeaf   : > { %4096 = vmatprep.mubr.msk.f32.mxu1 %vm917_vm3, %v1741_v31  ;;  %4268 = vmatpush3.bf16.msra.mxu1 %v5798_v23 }
 0xeb0   : > { %4270 = vmatprep.subr.bf16.mxu1 %v5774_v63 }
 0xeb1   : > { %v1742_v38 = vld [vmem:[#allocation3 + $0x28] sm:$0xff] }
 0xeb2   : > { %4097 = vmatmul.mubr.msk.f32.gmra.mrb[8].mxu1 %vm917_vm3, %v1742_v38  ;;  %v1743_v33 = vld [vmem:[#allocation3 + $0x30] sm:$0xff] }
 0xeb3   : > { %4099 = vmatprep.mubr.msk.f32.mxu1 %vm917_vm3, %v1743_v33 }
 0xeb5   : > { %v1744_v36 = vld [vmem:[#allocation3 + $0x38] sm:$0xff] }
 0xeb6   : > { %4100 = vmatmul.mubr.msk.f32.gmra.mrb[10].mxu1 %vm917_vm3, %v1744_v36 }
 0xeb7   : > { %4110 = vmatprep.mubr.msk.f32.mxu1 %vm917_vm3, %v1896_v34 }
 0xeba   : > { %4111 = vmatmul.mubr.msk.f32.vlgmr.msra.gmra.mrb[4].mxu1 %vm917_vm3, %v1897_v35 }
 0xebb   : > { %4272 = vmatpush3.bf16.msra.mxu1 %v5774_v63 }
 0xebc   : > { %4274 = vmatprep.subr.bf16.mxu1 %v5798_v23 }
 0xebf   : > { %4276 = vmatpush3.bf16.msra.mxu1 %v5798_v23 }
 0xec0   : > { %4278 = vmatprep.subr.bf16.mxu1 %v5774_v63 }
 0xf8d   : > { %v4112_v42 = vpop.f32.mrb[4].mxu1 }
 0xf8e   : > { %v4355_v43 = vadd.f32 %v4112_v42, %v5820_v22  ;;  %v1979_v44 = vpop.f32.mrb[5].mxu1 }
 0xf8f   : > { %v4356_v18 = vadd.f32 %v5820_v22, %v1979_v44 }
 0xf90   : > { %v1991_v19 = vmul.f32 %v4355_v43, %v5548_v21 }
 0xf91   : > { %v1990_v47 = vmul.f32 %v4356_v18, %v5548_v21 }
 0xf92   : > { %v3863_v48 = vmul.f32 -1.442695, %v1991_v19 }
 0xf93   : > { %v3862_v49 = vmul.f32 -1.442695, %v1990_v47 }
 0xf94   : > { %4597 = vpow2.f32 %v3863_v48 }
 0xf95   : > { %4599 = vpow2.f32 %v3862_v49 }
 0xf9e   : > { %v4598_v50 = vpop.eup %4597 }
 0xf9f   : > { %v4600_v51 = vpop.eup %4599  ;;  %v1999_v7 = vadd.f32 1.0, %v4598_v50 }
 0xfa0   : > { %v1998_v52 = vadd.f32 1.0, %v4600_v51 }
 0xfa1   : > { %4601 = vrcp.f32 %v1999_v7 }
 0xfa2   : > { %4603 = vrcp.f32 %v1998_v52 }
 0xfab   : > { %v4602_v10 = vpop.eup %4601 }
 0xfac   : > { %v4604_v53 = vpop.eup %4603  ;;  %v2005_v54 = vmul.f32 %v4602_v10, %v5548_v21 }
 0xfad   : > { %v2004_v55 = vmul.f32 %v4604_v53, %v5548_v21 }
 0xfae   : > { %v2007_v58 = vadd.f32 %v2005_v54, %v5556_v37 }
 0xfaf   : > { %v2006_v15 = vadd.f32 %v2004_v55, %v5556_v37 }
 0xfb0   : > { %2022 = vrot.lane.b32.xlu1 %v2007_v58, %s5085_s25 }
 0xfb1   : > { %2020 = vrot.lane.b32.xlu0 %v2006_v15, %s5085_s25 }
 0xfb4   : > { %2012 = vrot.lane.b32.xlu1 %v1900_v26, %s5082_s5 }
 0xfb5   : > { %2010 = vrot.lane.b32.xlu0 %v1899_v25, %s5082_s5 }
0x1022   : > { %v2023_v32 = vpop.permute.xlu1 %2022 }
0x1023   : > { %v2027_v0 = vmul.f32 %v2023_v32, %v2007_v58  ;;  %v2021_v1 = vpop.permute.xlu0 %2020 }
0x1024   : > { %v2026_v2 = vmul.f32 %v2021_v1, %v2006_v15 }
0x1025   : > { %2032 = vrot.lane.b32.xlu1 %v2027_v0, %s5082_s5 }
0x1026   : > { %2030 = vrot.lane.b32.xlu0 %v2026_v2, %s5082_s5  ;;  %v2013_v3 = vpop.permute.xlu1 %2012 }
0x1027   : > { %v2011_v4 = vpop.permute.xlu0 %2010  ;;  %v2017_v5 = vmul.f32 %v2013_v3, %v2007_v58 }
0x1028   : > { %v2016_v6 = vmul.f32 %v2011_v4, %v2006_v15 }
0x1097   : > { %v2033_v8 = vpop.permute.xlu1 %2032 }
0x1098   : > { %v2037_v9 = vadd.f32 %v2033_v8, %v2017_v5  ;;  %v2031_v59 = vpop.permute.xlu0 %2030 }
0x1099   : > { %v2036_v11 = vadd.f32 %v2031_v59, %v2016_v6 }
0x109a   : > { %4605 = vtanh.f32 %v2037_v9 }
0x109b   : > { %4607 = vtanh.f32 %v2036_v11 }
0x10a4   : > { %v4606_v12 = vpop.eup %4605 }
0x10a5   : > { %v4608_v60 = vpop.eup %4607  ;;  %2044 = vrot.lane.b32.xlu1 %v4606_v12, %s5085_s25 }
0x10a6   : > { %2042 = vrot.lane.b32.xlu0 %v4608_v60, %s5085_s25 }
0x1117   : > { %v2045_v61 = vpop.permute.xlu1 %2044 }
0x1118   : > { %v5838_v13 = vmul.f32 %v2045_v61, %v2007_v58  ;;  %v2043_v39 = vpop.permute.xlu0 %2042 }
0x1119   : > { %v5840_v41 = vmul.f32 %v2043_v39, %v2006_v15 }
0x111a   : > { %2054 = vrot.lane.b32.xlu1 %v5838_v13, %s5082_s5 }
0x111b   : > { %2052 = vrot.lane.b32.xlu0 %v5840_v41, %s5082_s5 }
0x118c   : > { %v2055_v45 = vpop.permute.xlu1 %2054 }
0x118d   : > { %v2053_v14 = vpop.permute.xlu0 %2052  ;;  %v2061_v26 = vsel %vm917_vm3, %v2055_v45, 0.0 }
0x118e   : > { %4121 = vmatprep.mubr.msk.f32.mxu1 %vm917_vm3, %v2053_v14  ;;  %v2058_v15 = vsel %vm917_vm3, %v2053_v14, 0.0 }
0x118f   : > { %4122 = vmatmul.mubr.msk.f32.vlgmr.msra.gmra.mrb[6].mxu1 %vm917_vm3, %v2055_v45 }
0x1190   : > { %4280 = vmatpush3.bf16.msra.mxu1 %v5774_v63 }
0x1191   : > { %4282 = vmatprep.subr.bf16.mxu1 %v5798_v23 }
0x1194   : > { %4284 = vmatpush3.bf16.msra.mxu1 %v5798_v23 }
0x1195   : > { %4286 = vmatprep.subr.bf16.mxu1 %v5774_v63 }
0x1262   : > { %v4123_v46 = vpop.f32.mrb[6].mxu1 }
0x1263   : > { %v4357_v40 = vadd.f32 %v4123_v46, %v5820_v22  ;;  %v2198_v16 = vpop.f32.mrb[7].mxu1 }
0x1264   : > { %v4358_v17 = vadd.f32 %v5820_v22, %v2198_v16 }
0x1265   : > { %v2210_v20 = vmul.f32 %v4357_v40, %v5548_v21 }
0x1266   : > { %v2209_v24 = vmul.f32 %v4358_v17, %v5548_v21 }
0x1267   : > { %v3869_v27 = vmul.f32 -1.442695, %v2210_v20 }
0x1268   : > { %v3868_v28 = vmul.f32 -1.442695, %v2209_v24 }
0x1269   : > { %4609 = vpow2.f32 %v3869_v27 }
0x126a   : > { %4611 = vpow2.f32 %v3868_v28 }
0x1273   : > { %v4610_v29 = vpop.eup %4609 }
0x1274   : > { %v4612_v57 = vpop.eup %4611  ;;  %v2218_v30 = vadd.f32 1.0, %v4610_v29 }
0x1275   : > { %v2217_v31 = vadd.f32 1.0, %v4612_v57 }
0x1276   : > { %4613 = vrcp.f32 %v2218_v30 }
0x1277   : > { %4615 = vrcp.f32 %v2217_v31 }
0x1280   : > { %v4614_v38 = vpop.eup %4613 }
0x1281   : > { %v4616_v33 = vpop.eup %4615  ;;  %v2224_v34 = vmul.f32 %v4614_v38, %v5548_v21 }
0x1282   : > { %v2223_v36 = vmul.f32 %v4616_v33, %v5548_v21  ;;  %v3865_v33 = vld [vmem:[#allocation17] ss:$0 sm:$0xff] }
0x1283   : > { %v2226_v35 = vadd.f32 %v2224_v34, %v5556_v37  ;;  %v3864_v34 = vld [vmem:[#allocation15] ss:$0 sm:$0xff] }
0x1284   : > { %v2225_v42 = vadd.f32 %v2223_v36, %v5556_v37 }
0x1285   : > { %2233 = vrot.lane.b32.xlu1 %v2226_v35, %s5085_s25  ;;  %v2228_v47 = vmul.f32 %v2226_v35, %v2037_v9 }
0x1286   : > { %2231 = vrot.lane.b32.xlu0 %v2225_v42, %s5085_s25  ;;  %v2227_v49 = vmul.f32 %v2225_v42, %v2036_v11 }
0x12f7   : > { %v2234_v43 = vpop.permute.xlu1 %2233 }
0x12f8   : > { %v2238_v44 = vmul.f32 %v2234_v43, %v2226_v35  ;;  %v2232_v18 = vpop.permute.xlu0 %2231 }
0x12f9   : > { %v2237_v19 = vmul.f32 %v2232_v18, %v2225_v42 }
0x12fa   : > { %2243 = vrot.lane.b32.xlu1 %v2238_v44, %s5082_s5 }
0x12fb   : > { %2241 = vrot.lane.b32.xlu0 %v2237_v19, %s5082_s5 }
0x136c   : > { %v2244_v48 = vpop.permute.xlu1 %2243 }
0x136d   : > { %v5864_v50 = vadd.f32 %v2244_v48, %v2228_v47  ;;  %v2242_v51 = vpop.permute.xlu0 %2241 }
0x136e   : > { %v5866_v7 = vadd.f32 %v2242_v51, %v2227_v49 }
0x136f   : > { %4617 = vtanh.f32 %v5864_v50 }
0x1370   : > { %4619 = vtanh.f32 %v5866_v7 }
0x1379   : > { %v4618_v52 = vpop.eup %4617 }
0x137a   : > { %v4620_v10 = vpop.eup %4619  ;;  %2255 = vrot.lane.b32.xlu1 %v4618_v52, %s5085_s25 }
0x137b   : > { %2253 = vrot.lane.b32.xlu0 %v4620_v10, %s5085_s25 }
0x13ec   : > { %v2256_v53 = vpop.permute.xlu1 %2255 }
0x13ed   : > { %v5872_v54 = vmul.f32 %v2256_v53, %v2226_v35  ;;  %v2254_v55 = vpop.permute.xlu0 %2253 }
0x13ee   : > { %v5874_v58 = vmul.f32 %v2254_v55, %v2225_v42 }
0x13ef   : > { %2265 = vrot.lane.b32.xlu1 %v5872_v54, %s5082_s5 }
0x13f0   : > { %2263 = vrot.lane.b32.xlu0 %v5874_v58, %s5082_s5 }
0x140f   : > { %2059 = vadd.xlane.f32.xlu0 %v2058_v15 }
0x1413   : > { %2062 = vadd.xlane.f32.xlu1 %v2061_v26 }
0x1461   : > { %v5884_v32 = vpop.permute.xlu1 %2265 }
0x1462   : > { %v5882_v25 = vpop.permute.xlu0 %2263 }
0x1463   : > { %4132 = vmatprep.mubr.msk.f32.mxu1 %vm917_vm3, %v5882_v25 }
0x1464   : > { %4133 = vmatmul.mubr.msk.f32.vlgmr.msra.gmra.mrb[8].mxu1 %vm917_vm3, %v5884_v32 }
0x1465   : > { %4288 = vmatpush3.bf16.msra.mxu1 %v5774_v63 }
0x1466   : > { %4290 = vmatprep.subr.bf16.mxu1 %v5798_v23 }
0x1469   : > { %4292 = vmatpush3.bf16.msra.mxu1 %v5798_v23 }
0x149c   : > { %v2060_v12 = vpop.xlane.xlu0 %2059 }
0x149d   : > { %v2064_v39 = vmul.f32 0.03125, %v2060_v12  ;;  %v2887_v12 = vld [vmem:[%s6351_s23 + $0x10] sm:$0xff] }
0x149f   : > { %v2066_v17 = vsub.f32 %v5840_v41, %v2064_v39  ;;  %v2878_v39 = vld [vmem:[#allocation4 + $0x20] sm:$0xff] }
0x14a0   : > { %v2063_v23 = vpop.xlane.xlu1 %2062  ;;  %4174 = vmatprep.mubr.msk.f32.mxu0 %vm917_vm3, %v2878_v39 }
0x14a1   : > { %v2065_v60 = vmul.f32 0.03125, %v2063_v23  ;;  %v2068_v27 = vmul.f32 %v2066_v17, %v2066_v17  ;;  %v5959_v23 = vld [vmem:[#allocation21] ss:$0 sm:$0xff] }
0x14a3   : > { %v2067_v40 = vsub.f32 %v5838_v13, %v2065_v60  ;;  %v2888_v60 = vld [vmem:[%s6351_s23 + $0x18] sm:$0xff] }
0x14a5   : > { %v2069_v24 = vmul.f32 %v2067_v40, %v2067_v40 }
0x1537   : > { %v4134_v0 = vpop.f32.mrb[8].mxu1 }
0x1538   : > { %v4359_v1 = vadd.f32 %v4134_v0, %v5820_v22  ;;  %v2393_v2 = vpop.f32.mrb[9].mxu1 }
0x1539   : > { %v4360_v3 = vadd.f32 %v5820_v22, %v2393_v2 }
0x153a   : > { %v2405_v4 = vmul.f32 %v4359_v1, %v5548_v21 }
0x153b   : > { %v2404_v5 = vmul.f32 %v4360_v3, %v5548_v21 }
0x153c   : > { %v3873_v6 = vmul.f32 -1.442695, %v2405_v4 }
0x153d   : > { %v3872_v8 = vmul.f32 -1.442695, %v2404_v5  ;;  %v2727_v5 = vld [vmem:[%s6307_s11] sm:$0xff] }
0x153e   : > { %4621 = vpow2.f32 %v3873_v6  ;;  %v2728_v6 = vld [vmem:[%s6307_s11 + $0x8] sm:$0xff] }
0x153f   : > { %4623 = vpow2.f32 %v3872_v8  ;;  %v4293_v8 = vpack.c.bf16 %v2728_v6, %v2727_v5 }
0x1541   : > { %4294 = vmatprep.subr.bf16.mxu1 %v4293_v8 }
0x1548   : > { %v4622_v9 = vpop.eup %4621 }
0x1549   : > { %v4624_v63 = vpop.eup %4623  ;;  %v2413_v59 = vadd.f32 1.0, %v4622_v9  ;;  %v2885_v9 = vld [vmem:[%s6351_s23] sm:$0xff] }
0x154a   : > { %v2412_v11 = vadd.f32 1.0, %v4624_v63  ;;  %v2886_v63 = vld [vmem:[%s6351_s23 + $0x8] sm:$0xff] }
0x154b   : > { %4625 = vrcp.f32 %v2413_v59  ;;  %v5955_v59 = vpack.c.bf16 %v2886_v63, %v2885_v9 }
0x154c   : > { %4627 = vrcp.f32 %v2412_v11  ;;  %v5957_v11 = vld [vmem:[#allocation20] ss:$0 sm:$0xff] }
0x154d   : > { %4302 = vmatprep.subr.bf16.mxu0 %v5955_v59 }
0x154e   : > { %4304 = vmatpush3.bf16.msra.mxu0 %v5955_v59 }
0x1555   : > { %v4626_v61 = vpop.eup %4625 }
0x1556   : > { %v4628_v14 = vpop.eup %4627  ;;  %v2419_v45 = vmul.f32 %v4626_v61, %v5548_v21  ;;  %v5969_v61 = vpack.c.bf16 %v2888_v60, %v2887_v12 }
0x1557   : > { %v2418_v46 = vmul.f32 %v4628_v14, %v5548_v21 }
0x1558   : > { %v5901_v16 = vadd.f32 %v2419_v45, %v5556_v37  ;;  %4306 = vmatprep.subr.bf16.mxu0 %v5969_v61  ;;  %v2879_v45 = vld [vmem:[#allocation4 + $0x28] sm:$0xff] }
0x1559   : > { %v5905_v20 = vadd.f32 %v2418_v46, %v5556_v37  ;;  %4308 = vmatpush3.bf16.msra.mxu0 %v5969_v61 }
0x155a   : > { %2428 = vrot.lane.b32.xlu1 %v5901_v16, %s5085_s25  ;;  %v2423_v36 = vmul.f32 %v5901_v16, %v5864_v50  ;;  %4310 = vmatprep.subr.bf16.mxu0 %v5955_v59 }
0x155b   : > { %2426 = vrot.lane.b32.xlu0 %v5905_v20, %s5085_s25  ;;  %v2422_v42 = vmul.f32 %v5905_v20, %v5866_v7 }
0x155c   : > { %4175 = vmatmul.mubr.msk.f32.vlgmr.msra.gmra.mrb[8].mxu0 %vm917_vm3, %v2879_v45  ;;  %v2881_v45 = vld [vmem:[#allocation5 + $0x20] sm:$0xff] }
0x155d   : > { %4312 = vmatpush3.bf16.msra.mxu0 %v5955_v59 }
0x155e   : > { %2074 = vrot.lane.b32.xlu1 %v2069_v24, %s5082_s5  ;;  %4314 = vmatprep.subr.bf16.mxu0 %v5969_v61 }
0x155f   : > { %2072 = vrot.lane.b32.xlu0 %v2068_v27, %s5082_s5 }
0x1561   : > { %4316 = vmatpush3.bf16.msra.mxu0 %v5969_v61 }
0x1562   : > { %4318 = vmatprep.subr.bf16.mxu0 %v5955_v59 }
0x15cc   : > { %v2429_v13 = vpop.permute.xlu1 %2428 }
0x15cd   : > { %v2433_v28 = vmul.f32 %v2429_v13, %v5901_v16  ;;  %v2427_v29 = vpop.permute.xlu0 %2426  ;;  %v2729_v13 = vld [vmem:[%s6307_s11 + $0x10] sm:$0xff] }
0x15ce   : > { %v2432_v41 = vmul.f32 %v2427_v29, %v5905_v20 }
0x15cf   : > { %2438 = vrot.lane.b32.xlu1 %v2433_v28, %s5082_s5  ;;  %v2730_v28 = vld [vmem:[%s6307_s11 + $0x18] sm:$0xff] }
0x15d0   : > { %2436 = vrot.lane.b32.xlu0 %v2432_v41, %s5082_s5  ;;  %v2075_v31 = vpop.permute.xlu1 %2074  ;;  %v4297_v29 = vpack.c.bf16 %v2730_v28, %v2729_v13 }
0x15d1   : > { %v2073_v57 = vpop.permute.xlu0 %2072  ;;  %v2081_v38 = vsel %vm917_vm3, %v2075_v31, 0.0 }
0x15d2   : > { %v2078_v30 = vsel %vm917_vm3, %v2073_v57, 0.0 }
0x15ef   : > { %2079 = vadd.xlane.f32.xlu0 %v2078_v30 }
0x15f3   : > { %2082 = vadd.xlane.f32.xlu1 %v2081_v38 }
0x1604   : > { %2107 = vrot.lane.b32.xlu1 %v3865_v33, %s5086_s20 }
0x1605   : > { %2097 = vrot.lane.b32.xlu0 %v3864_v34, %s5086_s20  ;;  %v6016_v34 = vld [vmem:[#allocation18] ss:$0 sm:$0xff] }
0x162f   : > { %v4176_v30 = vpop.f32.mrb[8].mxu0 }
0x1630   : > { %v2961_v31 = vpop.f32.mrb[9].mxu0 }
0x1641   : > { %v2439_v35 = vpop.permute.xlu1 %2438 }
0x1642   : > { %v5925_v43 = vadd.f32 %v2439_v35, %v2423_v36  ;;  %v2437_v44 = vpop.permute.xlu0 %2436 }
0x1643   : > { %v5927_v18 = vadd.f32 %v2437_v44, %v2422_v42 }
0x1644   : > { %4629 = vtanh.f32 %v5925_v43 }
0x1645   : > { %4631 = vtanh.f32 %v5927_v18 }
0x164e   : > { %v4630_v19 = vpop.eup %4629 }
0x164f   : > { %v4632_v47 = vpop.eup %4631  ;;  %2450 = vrot.lane.b32.xlu1 %v4630_v19, %s5085_s25 }
0x1650   : > { %2448 = vrot.lane.b32.xlu0 %v4632_v47, %s5085_s25 }
0x167c   : > { %v2080_v48 = vpop.xlane.xlu0 %2079 }
0x167d   : > { %v2084_v49 = vmul.f32 0.03125, %v2080_v48 }
0x167f   : > { %v2086_v50 = vadd.f32 1e-05, %v2084_v49 }
0x1680   : > { %v2083_v51 = vpop.xlane.xlu1 %2082  ;;  %v5933_v53 = vpop.permute.xlu0 %2097 }
0x1681   : > { %4633 = vrsqrt.f32 %v2086_v50  ;;  %v2085_v7 = vmul.f32 0.03125, %v2083_v51 }
0x1683   : > { %v2087_v52 = vadd.f32 1e-05, %v2085_v7 }
0x1684   : > { %v5935_v15 = vpop.permute.xlu1 %2107 }
0x1685   : > { %4635 = vrsqrt.f32 %v2087_v52 }
0x168b   : > { %v4634_v10 = vpop.eup %4633 }
0x168c   : > { %v2090_v55 = vmul.f32 %v4634_v10, %v2066_v17 }
0x168e   : > { %v2100_v26 = vmul.f32 %v5933_v53, %v2090_v55 }
0x168f   : > { %v4636_v0 = vpop.eup %4635 }
0x1690   : > { %v2110_v1 = vadd.f32 %v5935_v15, %v2100_v26  ;;  %v2091_v2 = vmul.f32 %v4636_v0, %v2067_v40 }
0x1692   : > { %2114 = vrot.lane.b32.xlu0 %v2110_v1, %s5082_s5  ;;  %v2101_v3 = vmul.f32 %v5933_v53, %v2091_v2 }
0x1694   : > { %v2111_v4 = vadd.f32 %v5935_v15, %v2101_v3 }
0x1696   : > { %2116 = vrot.lane.b32.xlu1 %v2111_v4, %s5082_s5 }
0x16c1   : > { %v2451_v14 = vpop.permute.xlu1 %2450 }
0x16c2   : > { %v5976_v46 = vmul.f32 %v2451_v14, %v5901_v16  ;;  %v2449_v40 = vpop.permute.xlu0 %2448  ;;  %v2269_v16 = vsel %vm917_vm3, %v5882_v25, 0.0  ;;  %v2882_v14 = vld [vmem:[#allocation5 + $0x28] sm:$0xff] }
0x16c3   : > { %v5980_v17 = vmul.f32 %v2449_v40, %v5905_v20  ;;  %v2272_v20 = vsel %vm917_vm3, %v5884_v32, 0.0 }
0x16c4   : > { %2460 = vrot.lane.b32.xlu1 %v5976_v46, %s5082_s5 }
0x16c5   : > { %2458 = vrot.lane.b32.xlu0 %v5980_v17, %s5082_s5 }
0x16e4   : > { %2270 = vadd.xlane.f32.xlu0 %v2269_v16 }
0x16e8   : > { %2273 = vadd.xlane.f32.xlu1 %v2272_v20 }
0x1704   : > { %v2115_v24 = vpop.permute.xlu0 %2114 }
0x1705   : > { %2120 = vst.msk [vmem:[#allocation3] sm:$0xff] %vm917_vm3, %v2115_v24 }
0x1708   : > { %v2117_v27 = vpop.permute.xlu1 %2116 }
0x1709   : > { %2121 = vst.msk [vmem:[#allocation3 + $0x8] sm:$0xff] %vm917_vm3, %v2117_v27 }
0x170c   : > { %v2719_v32 = vld [vmem:[#allocation3] sm:$0xff] }
0x1710   : > { %v2720_v57 = vld [vmem:[#allocation3 + $0x8] sm:$0xff] }
0x1736   : > { %v6004_v41 = vpop.permute.xlu1 %2460 }
0x1737   : > { %v6002_v25 = vpop.permute.xlu0 %2458 }
0x1738   : > { %4143 = vmatprep.mubr.msk.f32.mxu1 %vm917_vm3, %v6002_v25 }
0x1739   : > { %4144 = vmatmul.mubr.msk.f32.vlgmr.msra.gmra.mrb[10].mxu1 %vm917_vm3, %v6004_v41 }
0x173a   : > { %4296 = vmatpush3.bf16.msra.mxu1 %v4293_v8  ;;  %4154 = vmatprep.mubr.msk.f32.mxu1 %vm917_vm3, %v2719_v32 }
0x173b   : > { %4298 = vmatprep.subr.bf16.mxu1 %v4297_v29 }
0x173e   : > { %4300 = vmatpush3.bf16.msra.mxu1 %v4297_v29 }
0x1741   : > { %4155 = vmatmul.mubr.msk.f32.vlgmr.msra.gmra.mrb[12].mxu1 %vm917_vm3, %v2720_v57 }
0x1771   : > { %v2271_v0 = vpop.xlane.xlu0 %2270 }
0x1772   : > { %v2275_v3 = vmul.f32 0.03125, %v2271_v0 }
0x1774   : > { %v2277_v63 = vsub.f32 %v5874_v58, %v2275_v3 }
0x1775   : > { %v2274_v26 = vpop.xlane.xlu1 %2273 }
0x1776   : > { %v2276_v1 = vmul.f32 0.03125, %v2274_v26  ;;  %v2279_v39 = vmul.f32 %v2277_v63, %v2277_v63 }
0x1778   : > { %v2278_v8 = vsub.f32 %v5872_v54, %v2276_v1 }
0x177a   : > { %v2280_v60 = vmul.f32 %v2278_v8, %v2278_v8 }
0x180c   : > { %v6012_v38 = vpop.f32.mrb[10].mxu1 }
0x180d   : > { %v6014_v33 = vpop.f32.mrb[11].mxu1 }
0x1814   : > { %v4156_v36 = vpop.f32.mrb[12].mxu1 }
0x1815   : > { %v2834_v35 = vadd.f32 %v4156_v36, %v6016_v34  ;;  %v2828_v42 = vpop.f32.mrb[13].mxu1 }
0x1816   : > { %v2829_v44 = vadd.f32 %v6016_v34, %v2828_v42 }
0x1817   : > { %v2971_v19 = vadd.f32 %v4176_v30, %v2834_v35 }
0x1818   : > { %v2970_v47 = vadd.f32 %v2961_v31, %v2829_v44 }
0x1819   : > { %v2973_v48 = vmul.f32 %v2971_v19, %v5548_v21 }
0x181a   : > { %v2972_v49 = vmul.f32 %v2970_v47, %v5548_v21 }
0x181b   : > { %v3890_v50 = vmul.f32 -1.442695, %v2973_v48 }
0x181c   : > { %v3889_v51 = vmul.f32 -1.442695, %v2972_v49 }
0x181d   : > { %4637 = vpow2.f32 %v3890_v50 }
0x181e   : > { %4639 = vpow2.f32 %v3889_v51 }
0x1827   : > { %v4638_v7 = vpop.eup %4637 }
0x1828   : > { %v4640_v52 = vpop.eup %4639  ;;  %v2981_v10 = vadd.f32 1.0, %v4638_v7 }
0x1829   : > { %v2980_v55 = vadd.f32 1.0, %v4640_v52 }
0x182a   : > { %4641 = vrcp.f32 %v2981_v10 }
0x182b   : > { %4643 = vrcp.f32 %v2980_v55 }
0x1834   : > { %v4642_v2 = vpop.eup %4641 }
0x1835   : > { %v4644_v4 = vpop.eup %4643  ;;  %v2987_v5 = vmul.f32 %v4642_v2, %v5548_v21 }
0x1836   : > { %v2986_v6 = vmul.f32 %v4644_v4, %v5548_v21 }
0x1837   : > { %v2989_v9 = vadd.f32 %v2987_v5, %v5556_v37 }
0x1838   : > { %v2988_v12 = vadd.f32 %v2986_v6, %v5556_v37 }
0x1839   : > { %3004 = vrot.lane.b32.xlu1 %v2989_v9, %s5085_s25 }
0x183a   : > { %3002 = vrot.lane.b32.xlu0 %v2988_v12, %s5085_s25 }
0x183d   : > { %2285 = vrot.lane.b32.xlu1 %v2280_v60, %s5082_s5 }
0x183e   : > { %2283 = vrot.lane.b32.xlu0 %v2279_v39, %s5082_s5 }
0x1841   : > { %2994 = vrot.lane.b32.xlu1 %v2882_v14, %s5082_s5 }
0x1842   : > { %2992 = vrot.lane.b32.xlu0 %v2881_v45, %s5082_s5 }
0x18ab   : > { %v3005_v54 = vpop.permute.xlu1 %3004 }
0x18ac   : > { %v3009_v58 = vmul.f32 %v3005_v54, %v2989_v9  ;;  %v3003_v40 = vpop.permute.xlu0 %3002 }
0x18ad   : > { %v3008_v16 = vmul.f32 %v3003_v40, %v2988_v12 }
0x18ae   : > { %3014 = vrot.lane.b32.xlu1 %v3009_v58, %s5082_s5 }
0x18af   : > { %3012 = vrot.lane.b32.xlu0 %v3008_v16, %s5082_s5  ;;  %v2286_v27 = vpop.permute.xlu1 %2285 }
0x18b0   : > { %v2284_v20 = vpop.permute.xlu0 %2283  ;;  %v2292_v13 = vsel %vm917_vm3, %v2286_v27, 0.0 }
0x18b1   : > { %v2289_v24 = vsel %vm917_vm3, %v2284_v20, 0.0 }
0x18b3   : > { %v2995_v28 = vpop.permute.xlu1 %2994 }
0x18b4   : > { %v2993_v29 = vpop.permute.xlu0 %2992  ;;  %v2999_v32 = vmul.f32 %v2995_v28, %v2989_v9 }
0x18b5   : > { %v2998_v57 = vmul.f32 %v2993_v29, %v2988_v12 }
0x18ce   : > { %2290 = vadd.xlane.f32.xlu0 %v2289_v24 }
0x18d2   : > { %2293 = vadd.xlane.f32.xlu1 %v2292_v13 }
0x1920   : > { %v3015_v30 = vpop.permute.xlu1 %3014 }
0x1921   : > { %v6038_v31 = vadd.f32 %v3015_v30, %v2999_v32  ;;  %v3013_v36 = vpop.permute.xlu0 %3012 }
0x1922   : > { %v6040_v35 = vadd.f32 %v3013_v36, %v2998_v57 }
0x1923   : > { %4645 = vtanh.f32 %v6038_v31 }
0x1924   : > { %4647 = vtanh.f32 %v6040_v35 }
0x192d   : > { %v4646_v42 = vpop.eup %4645 }
0x192e   : > { %v4648_v44 = vpop.eup %4647  ;;  %3026 = vrot.lane.b32.xlu1 %v4646_v42, %s5085_s25 }
0x192f   : > { %3024 = vrot.lane.b32.xlu0 %v4648_v44, %s5085_s25 }
0x195b   : > { %v2291_v19 = vpop.xlane.xlu0 %2290 }
0x195c   : > { %v2295_v47 = vmul.f32 0.03125, %v2291_v19 }
0x195e   : > { %v2297_v48 = vadd.f32 1e-05, %v2295_v47 }
0x195f   : > { %v2294_v49 = vpop.xlane.xlu1 %2293 }
0x1960   : > { %4649 = vrsqrt.f32 %v2297_v48  ;;  %v2296_v50 = vmul.f32 0.03125, %v2294_v49 }
0x1962   : > { %v2298_v51 = vadd.f32 1e-05, %v2296_v50 }
0x1964   : > { %4651 = vrsqrt.f32 %v2298_v51 }
0x196a   : > { %v4650_v7 = vpop.eup %4649 }
0x196b   : > { %v2301_v52 = vmul.f32 %v4650_v7, %v2277_v63  ;;  %v2464_v63 = vsel %vm917_vm3, %v6002_v25, 0.0 }
0x196d   : > { %v2303_v10 = vmul.f32 %v2301_v52, %v5933_v53 }
0x196e   : > { %v4652_v55 = vpop.eup %4651 }
0x196f   : > { %v2305_v26 = vadd.f32 %v2303_v10, %v5935_v15  ;;  %v2302_v0 = vmul.f32 %v4652_v55, %v2278_v8  ;;  %v2467_v8 = vsel %vm917_vm3, %v6004_v41, 0.0 }
0x1971   : > { %2309 = vrot.lane.b32.xlu0 %v2305_v26, %s5082_s5  ;;  %v2304_v1 = vmul.f32 %v2302_v0, %v5933_v53 }
0x1973   : > { %v2306_v2 = vadd.f32 %v2304_v1, %v5935_v15 }
0x1975   : > { %2311 = vrot.lane.b32.xlu1 %v2306_v2, %s5082_s5 }
0x19a0   : > { %v3027_v3 = vpop.permute.xlu1 %3026 }
0x19a1   : > { %v3031_v4 = vmul.f32 %v3027_v3, %v2989_v9  ;;  %v3025_v5 = vpop.permute.xlu0 %3024 }
0x19a2   : > { %v3030_v6 = vmul.f32 %v3025_v5, %v2988_v12 }
0x19a3   : > { %3038 = vrot.lane.b32.xlu1 %v3031_v4, %s5082_s5 }
0x19a4   : > { %3036 = vrot.lane.b32.xlu0 %v3030_v6, %s5082_s5 }
0x19c3   : > { %2465 = vadd.xlane.f32.xlu0 %v2464_v63 }
0x19c7   : > { %2468 = vadd.xlane.f32.xlu1 %v2467_v8 }
0x19e3   : > { %v2310_v60 = vpop.permute.xlu0 %2309 }
0x19e4   : > { %2315 = vst.msk [vmem:[#allocation3 + $0x10] sm:$0xff] %vm917_vm3, %v2310_v60 }
0x19e7   : > { %v2312_v39 = vpop.permute.xlu1 %2311 }
0x19e8   : > { %2316 = vst.msk [vmem:[#allocation3 + $0x18] sm:$0xff] %vm917_vm3, %v2312_v39 }
0x19eb   : > { %v2721_v9 = vld [vmem:[#allocation3 + $0x10] sm:$0xff] }
0x19ec   : > { %4157 = vmatprep.mubr.msk.f32.mxu1 %vm917_vm3, %v2721_v9 }
0x19ef   : > { %v2722_v12 = vld [vmem:[#allocation3 + $0x18] sm:$0xff] }
0x19f0   : > { %4158 = vmatmul.mubr.msk.f32.gmra.mrb[14].mxu1 %vm917_vm3, %v2722_v12 }
0x1a15   : > { %v3039_v45 = vpop.permute.xlu1 %3038 }
0x1a16   : > { %v3037_v14 = vpop.permute.xlu0 %3036 }
0x1a17   : > { %4185 = vmatprep.mubr.msk.f32.mxu0 %vm917_vm3, %v3037_v14 }
0x1a18   : > { %4186 = vmatmul.mubr.msk.f32.vlgmr.msra.gmra.mrb[10].mxu0 %vm917_vm3, %v3039_v45 }
0x1a19   : > { %4320 = vmatpush3.bf16.msra.mxu0 %v5955_v59 }
0x1a1a   : > { %4322 = vmatprep.subr.bf16.mxu0 %v5969_v61 }
0x1a1d   : > { %4324 = vmatpush3.bf16.msra.mxu0 %v5969_v61 }
0x1a1e   : > { %4326 = vmatprep.subr.bf16.mxu0 %v5955_v59 }
0x1a50   : > { %v2466_v44 = vpop.xlane.xlu0 %2465 }
0x1a51   : > { %v2470_v48 = vmul.f32 0.03125, %v2466_v44 }
0x1a53   : > { %v2472_v10 = vsub.f32 %v5980_v17, %v2470_v48 }
0x1a54   : > { %v2469_v42 = vpop.xlane.xlu1 %2468 }
0x1a55   : > { %v2471_v19 = vmul.f32 0.03125, %v2469_v42  ;;  %v2474_v0 = vmul.f32 %v2472_v10, %v2472_v10 }
0x1a57   : > { %v2473_v7 = vsub.f32 %v5976_v46, %v2471_v19 }
0x1a59   : > { %v2475_v26 = vmul.f32 %v2473_v7, %v2473_v7 }
0x1ac3   : > { %v4159_v25 = vpop.f32.mrb[14].mxu1 }
0x1ac4   : > { %v2838_v41 = vpop.f32.mrb[15].mxu1  ;;  %v2844_v54 = vadd.f32 %v4159_v25, %v6016_v34 }
0x1ac5   : > { %v2839_v58 = vadd.f32 %v6016_v34, %v2838_v41 }
0x1aeb   : > { %v4187_v40 = vpop.f32.mrb[10].mxu0 }
0x1aec   : > { %v3120_v16 = vadd.f32 %v4187_v40, %v2844_v54  ;;  %v3110_v20 = vpop.f32.mrb[11].mxu0 }
0x1aed   : > { %v3119_v24 = vadd.f32 %v3110_v20, %v2839_v58 }
0x1aee   : > { %v3122_v27 = vmul.f32 %v3120_v16, %v5548_v21 }
0x1aef   : > { %v3121_v13 = vmul.f32 %v3119_v24, %v5548_v21 }
0x1af0   : > { %v3894_v28 = vmul.f32 -1.442695, %v3122_v27 }
0x1af1   : > { %v3893_v29 = vmul.f32 -1.442695, %v3121_v13 }
0x1af2   : > { %4653 = vpow2.f32 %v3894_v28 }
0x1af3   : > { %4655 = vpow2.f32 %v3893_v29 }
0x1afc   : > { %v4654_v32 = vpop.eup %4653 }
0x1afd   : > { %v4656_v57 = vpop.eup %4655  ;;  %v3130_v30 = vadd.f32 1.0, %v4654_v32  ;;  %v4361_v32 = vadd.f32 %v6012_v38, %v5820_v22 }
0x1afe   : > { %v3129_v36 = vadd.f32 1.0, %v4656_v57  ;;  %v4362_v57 = vadd.f32 %v5820_v22, %v6014_v33 }
0x1aff   : > { %4657 = vrcp.f32 %v3130_v30  ;;  %v2600_v30 = vmul.f32 %v4361_v32, %v5548_v21 }
0x1b00   : > { %4659 = vrcp.f32 %v3129_v36  ;;  %v2599_v36 = vmul.f32 %v4362_v57, %v5548_v21 }
0x1b01   : > { %v3877_v42 = vmul.f32 -1.442695, %v2600_v30 }
0x1b02   : > { %v3876_v44 = vmul.f32 -1.442695, %v2599_v36 }
0x1b09   : > { %v4658_v47 = vpop.eup %4657 }
0x1b0a   : > { %v4660_v49 = vpop.eup %4659  ;;  %v3136_v50 = vmul.f32 %v4658_v47, %v5548_v21 }
0x1b0b   : > { %v3135_v51 = vmul.f32 %v4660_v49, %v5548_v21 }
0x1b0c   : > { %v6076_v52 = vadd.f32 %v3136_v50, %v5556_v37 }
0x1b0d   : > { %v6080_v55 = vadd.f32 %v3135_v51, %v5556_v37 }
0x1b0e   : > { %3145 = vrot.lane.b32.xlu1 %v6076_v52, %s5085_s25  ;;  %v3140_v63 = vmul.f32 %v6076_v52, %v6038_v31 }
0x1b0f   : > { %3143 = vrot.lane.b32.xlu0 %v6080_v55, %s5085_s25  ;;  %v3139_v60 = vmul.f32 %v6080_v55, %v6040_v35 }
0x1b12   : > { %2480 = vrot.lane.b32.xlu1 %v2475_v26, %s5082_s5 }
0x1b13   : > { %2478 = vrot.lane.b32.xlu0 %v2474_v0, %s5082_s5 }
0x1b80   : > { %v3146_v46 = vpop.permute.xlu1 %3145 }
0x1b81   : > { %v3150_v1 = vmul.f32 %v3146_v46, %v6076_v52  ;;  %v3144_v2 = vpop.permute.xlu0 %3143 }
0x1b82   : > { %v3149_v17 = vmul.f32 %v3144_v2, %v6080_v55 }
0x1b83   : > { %3155 = vrot.lane.b32.xlu1 %v3150_v1, %s5082_s5 }
0x1b84   : > { %3153 = vrot.lane.b32.xlu0 %v3149_v17, %s5082_s5  ;;  %v2481_v5 = vpop.permute.xlu1 %2480 }
0x1b85   : > { %v2479_v3 = vpop.permute.xlu0 %2478  ;;  %v2487_v6 = vsel %vm917_vm3, %v2481_v5, 0.0 }
0x1b86   : > { %v2484_v4 = vsel %vm917_vm3, %v2479_v3, 0.0 }
0x1ba3   : > { %2485 = vadd.xlane.f32.xlu0 %v2484_v4 }
0x1ba7   : > { %2488 = vadd.xlane.f32.xlu1 %v2487_v6 }
0x1bf5   : > { %v3156_v8 = vpop.permute.xlu1 %3155 }
0x1bf6   : > { %v6098_v39 = vadd.f32 %v3156_v8, %v3140_v63  ;;  %v3154_v9 = vpop.permute.xlu0 %3153 }
0x1bf7   : > { %v6100_v12 = vadd.f32 %v3154_v9, %v3139_v60 }
0x1bf8   : > { %4661 = vtanh.f32 %v6098_v39 }
0x1bf9   : > { %4663 = vtanh.f32 %v6100_v12 }
0x1c02   : > { %v4662_v14 = vpop.eup %4661 }
0x1c03   : > { %v4664_v45 = vpop.eup %4663  ;;  %3167 = vrot.lane.b32.xlu1 %v4662_v14, %s5085_s25 }
0x1c04   : > { %3165 = vrot.lane.b32.xlu0 %v4664_v45, %s5085_s25 }
0x1c30   : > { %v2486_v31 = vpop.xlane.xlu0 %2485 }
0x1c31   : > { %v2490_v25 = vmul.f32 0.03125, %v2486_v31 }
0x1c33   : > { %v2492_v41 = vadd.f32 1e-05, %v2490_v25 }
0x1c34   : > { %v2489_v54 = vpop.xlane.xlu1 %2488 }
0x1c35   : > { %4665 = vrsqrt.f32 %v2492_v41  ;;  %v2491_v35 = vmul.f32 0.03125, %v2489_v54 }
0x1c37   : > { %v2493_v58 = vadd.f32 1e-05, %v2491_v35 }
0x1c39   : > { %4667 = vrsqrt.f32 %v2493_v58 }
0x1c3a   : > { %4669 = vpow2.f32 %v3877_v42 }
0x1c3b   : > { %4671 = vpow2.f32 %v3876_v44 }
0x1c3f   : > { %v4666_v40 = vpop.eup %4665 }
0x1c40   : > { %v2496_v16 = vmul.f32 %v4666_v40, %v2472_v10 }
0x1c42   : > { %v2498_v20 = vmul.f32 %v2496_v16, %v5933_v53 }
0x1c43   : > { %v4668_v24 = vpop.eup %4667 }
0x1c44   : > { %v2500_v27 = vadd.f32 %v2498_v20, %v5935_v15  ;;  %v2497_v13 = vmul.f32 %v4668_v24, %v2473_v7  ;;  %v4670_v19 = vpop.eup %4669 }
0x1c45   : > { %v4672_v47 = vpop.eup %4671  ;;  %v2608_v48 = vadd.f32 1.0, %v4670_v19 }
0x1c46   : > { %2504 = vrot.lane.b32.xlu0 %v2500_v27, %s5082_s5  ;;  %v2499_v28 = vmul.f32 %v2497_v13, %v5933_v53  ;;  %v2607_v49 = vadd.f32 1.0, %v4672_v47 }
0x1c47   : > { %4673 = vrcp.f32 %v2608_v48 }
0x1c48   : > { %v2501_v29 = vadd.f32 %v2499_v28, %v5935_v15  ;;  %4675 = vrcp.f32 %v2607_v49 }
0x1c4a   : > { %2506 = vrot.lane.b32.xlu1 %v2501_v29, %s5082_s5 }
0x1c51   : > { %v4674_v50 = vpop.eup %4673 }
0x1c52   : > { %v4676_v51 = vpop.eup %4675  ;;  %v2614_v33 = vmul.f32 %v4674_v50, %v5548_v21 }
0x1c53   : > { %v2613_v26 = vmul.f32 %v4676_v51, %v5548_v21 }
0x1c54   : > { %v2616_v0 = vadd.f32 %v2614_v33, %v5556_v37 }
0x1c55   : > { %v2615_v46 = vadd.f32 %v2613_v26, %v5556_v37 }
0x1c56   : > { %v2618_v8 = vmul.f32 %v2616_v0, %v5925_v43 }
0x1c57   : > { %v2617_v9 = vmul.f32 %v2615_v46, %v5927_v18 }
0x1c75   : > { %v3168_v38 = vpop.permute.xlu1 %3167 }
0x1c76   : > { %v3172_v7 = vmul.f32 %v3168_v38, %v6076_v52  ;;  %v3166_v22 = vpop.permute.xlu0 %3165 }
0x1c77   : > { %v3171_v10 = vmul.f32 %v3166_v22, %v6080_v55 }
0x1c78   : > { %3179 = vrot.lane.b32.xlu1 %v3172_v7, %s5082_s5 }
0x1c79   : > { %3177 = vrot.lane.b32.xlu0 %v3171_v10, %s5082_s5 }
0x1c7c   : > { %2623 = vrot.lane.b32.xlu1 %v2616_v0, %s5085_s25 }
0x1c7d   : > { %2621 = vrot.lane.b32.xlu0 %v2615_v46, %s5085_s25 }
0x1cb8   : > { %v2505_v52 = vpop.permute.xlu0 %2504 }
0x1cb9   : > { %2510 = vst.msk [vmem:[#allocation3 + $0x20] sm:$0xff] %vm917_vm3, %v2505_v52 }
0x1cbc   : > { %v2507_v1 = vpop.permute.xlu1 %2506 }
0x1cbd   : > { %2511 = vst.msk [vmem:[#allocation3 + $0x28] sm:$0xff] %vm917_vm3, %v2507_v1 }
0x1cc0   : > { %v2723_v55 = vld [vmem:[#allocation3 + $0x20] sm:$0xff] }
0x1cc1   : > { %4160 = vmatprep.mubr.msk.f32.mxu1 %vm917_vm3, %v2723_v55 }
0x1cc4   : > { %v2724_v2 = vld [vmem:[#allocation3 + $0x28] sm:$0xff] }
0x1cc5   : > { %4161 = vmatmul.mubr.msk.f32.gmra.mrb[16].mxu1 %vm917_vm3, %v2724_v2 }
0x1cea   : > { %v3180_v17 = vpop.permute.xlu1 %3179 }
0x1ceb   : > { %v3178_v3 = vpop.permute.xlu0 %3177 }
0x1cec   : > { %4196 = vmatprep.mubr.msk.f32.mxu0 %vm917_vm3, %v3178_v3 }
0x1ced   : > { %4197 = vmatmul.mubr.msk.f32.vlgmr.msra.gmra.mrb[12].mxu0 %vm917_vm3, %v3180_v17 }
0x1cee   : > { %v2624_v4 = vpop.permute.xlu1 %2623  ;;  %4328 = vmatpush3.bf16.msra.mxu0 %v5955_v59 }
0x1cef   : > { %v2628_v5 = vmul.f32 %v2624_v4, %v2616_v0  ;;  %v2622_v6 = vpop.permute.xlu0 %2621  ;;  %4330 = vmatprep.subr.bf16.mxu0 %v5969_v61 }
0x1cf0   : > { %v2627_v63 = vmul.f32 %v2622_v6, %v2615_v46 }
0x1cf1   : > { %2633 = vrot.lane.b32.xlu1 %v2628_v5, %s5082_s5 }
0x1cf2   : > { %2631 = vrot.lane.b32.xlu0 %v2627_v63, %s5082_s5  ;;  %4332 = vmatpush3.bf16.msra.mxu0 %v5969_v61 }
0x1d63   : > { %v2634_v60 = vpop.permute.xlu1 %2633 }
0x1d64   : > { %v6141_v14 = vadd.f32 %v2634_v60, %v2618_v8  ;;  %v2632_v45 = vpop.permute.xlu0 %2631 }
0x1d65   : > { %v6143_v59 = vadd.f32 %v2632_v45, %v2617_v9 }
0x1d66   : > { %4677 = vtanh.f32 %v6141_v14 }
0x1d67   : > { %4679 = vtanh.f32 %v6143_v59 }
0x1d70   : > { %v4678_v31 = vpop.eup %4677 }
0x1d71   : > { %v4680_v25 = vpop.eup %4679  ;;  %2645 = vrot.lane.b32.xlu1 %v4678_v31, %s5085_s25 }
0x1d72   : > { %2643 = vrot.lane.b32.xlu0 %v4680_v25, %s5085_s25 }
0x1d98   : > { %v4162_v61 = vpop.f32.mrb[16].mxu1 }
0x1d99   : > { %v2848_v43 = vpop.f32.mrb[17].mxu1  ;;  %v2854_v41 = vadd.f32 %v4162_v61, %v6016_v34 }
0x1d9a   : > { %v2849_v18 = vadd.f32 %v6016_v34, %v2848_v43 }
0x1dc0   : > { %v4198_v54 = vpop.f32.mrb[12].mxu0 }
0x1dc1   : > { %v3261_v35 = vadd.f32 %v4198_v54, %v2854_v41  ;;  %v3251_v58 = vpop.f32.mrb[13].mxu0 }
0x1dc2   : > { %v3260_v40 = vadd.f32 %v3251_v58, %v2849_v18 }
0x1dc3   : > { %v3263_v13 = vmul.f32 %v3261_v35, %v5548_v21 }
0x1dc4   : > { %v3262_v29 = vmul.f32 %v3260_v40, %v5548_v21 }
0x1dc5   : > { %v3898_v28 = vmul.f32 -1.442695, %v3263_v13 }
0x1dc6   : > { %v3897_v32 = vmul.f32 -1.442695, %v3262_v29 }
0x1dc7   : > { %4681 = vpow2.f32 %v3898_v28 }
0x1dc8   : > { %4683 = vpow2.f32 %v3897_v32 }
0x1dd1   : > { %v4682_v57 = vpop.eup %4681 }
0x1dd2   : > { %v3271_v30 = vadd.f32 1.0, %v4682_v57  ;;  %v4684_v36 = vpop.eup %4683 }
0x1dd3   : > { %v3270_v47 = vadd.f32 1.0, %v4684_v36 }
0x1dd4   : > { %4685 = vrcp.f32 %v3271_v30 }
0x1dd5   : > { %4687 = vrcp.f32 %v3270_v47 }
0x1dde   : > { %v4686_v49 = vpop.eup %4685 }
0x1ddf   : > { %v3277_v50 = vmul.f32 %v4686_v49, %v5548_v21  ;;  %v4688_v51 = vpop.eup %4687 }
0x1de0   : > { %v3276_v7 = vmul.f32 %v4688_v51, %v5548_v21 }
0x1de1   : > { %v3279_v38 = vadd.f32 %v3277_v50, %v5556_v37 }
0x1de2   : > { %v3278_v22 = vadd.f32 %v3276_v7, %v5556_v37 }
0x1de3   : > { %v2646_v16 = vpop.permute.xlu1 %2645  ;;  %v3281_v60 = vmul.f32 %v3279_v38, %v6098_v39 }
0x1de4   : > { %v2650_v20 = vmul.f32 %v2646_v16, %v2616_v0  ;;  %v2644_v24 = vpop.permute.xlu0 %2643  ;;  %v3280_v25 = vmul.f32 %v3278_v22, %v6100_v12 }
0x1de5   : > { %v2649_v27 = vmul.f32 %v2644_v24, %v2615_v46 }
0x1de6   : > { %2655 = vrot.lane.b32.xlu1 %v2650_v20, %s5082_s5 }
0x1de7   : > { %2653 = vrot.lane.b32.xlu0 %v2649_v27, %s5082_s5 }
0x1e58   : > { %v2656_v42 = vpop.permute.xlu1 %2655 }
0x1e59   : > { %2708 = vst.msk [vmem:[#allocation4 + $0x18] sm:$0xff] %vm917_vm3, %v2656_v42  ;;  %v2654_v44 = vpop.permute.xlu0 %2653  ;;  %v2662_v19 = vsel %vm917_vm3, %v2656_v42, 0.0 }
0x1e5a   : > { %2707 = vst.msk [vmem:[#allocation4 + $0x10] sm:$0xff] %vm917_vm3, %v2654_v44  ;;  %2663 = vadd.xlane.f32.xlu1 %v2662_v19  ;;  %v2659_v48 = vsel %vm917_vm3, %v2654_v44, 0.0 }
0x1e5b   : > { %2660 = vadd.xlane.f32.xlu0 %v2659_v48 }
0x1e6b   : > { %3286 = vrot.lane.b32.xlu1 %v3279_v38, %s5085_s25 }
0x1e71   : > { %3284 = vrot.lane.b32.xlu0 %v3278_v22, %s5085_s25 }
0x1ee7   : > { %v2664_v33 = vpop.xlane.xlu1 %2663 }
0x1ee8   : > { %v2666_v10 = vmul.f32 0.03125, %v2664_v33  ;;  %v2661_v26 = vpop.xlane.xlu0 %2660 }
0x1ee9   : > { %v2665_v0 = vmul.f32 0.03125, %v2661_v26 }
0x1eea   : > { %v2668_v46 = vsub.f32 %v2650_v20, %v2666_v10 }
0x1eeb   : > { %v2667_v52 = vsub.f32 %v2649_v27, %v2665_v0  ;;  %v3287_v2 = vpop.permute.xlu1 %3286 }
0x1eec   : > { %v2670_v1 = vmul.f32 %v2668_v46, %v2668_v46  ;;  %v3285_v17 = vpop.permute.xlu0 %3284  ;;  %v3291_v3 = vmul.f32 %v3287_v2, %v3279_v38 }
0x1eed   : > { %v2669_v55 = vmul.f32 %v2667_v52, %v2667_v52  ;;  %v3290_v4 = vmul.f32 %v3285_v17, %v3278_v22 }
0x1eee   : > { %2675 = vrot.lane.b32.xlu1 %v2670_v1, %s5082_s5 }
0x1eef   : > { %2673 = vrot.lane.b32.xlu0 %v2669_v55, %s5082_s5 }
0x1ef2   : > { %3296 = vrot.lane.b32.xlu1 %v3291_v3, %s5082_s5 }
0x1ef3   : > { %3294 = vrot.lane.b32.xlu0 %v3290_v4, %s5082_s5 }
0x1f60   : > { %v2676_v5 = vpop.permute.xlu1 %2675 }
0x1f61   : > { %v2682_v6 = vsel %vm917_vm3, %v2676_v5, 0.0  ;;  %v2674_v63 = vpop.permute.xlu0 %2673 }
0x1f62   : > { %v2679_v8 = vsel %vm917_vm3, %v2674_v63, 0.0  ;;  %2683 = vadd.xlane.f32.xlu1 %v2682_v6 }
0x1f63   : > { %2680 = vadd.xlane.f32.xlu0 %v2679_v8 }
0x1f64   : > { %v3297_v9 = vpop.permute.xlu1 %3296 }
0x1f65   : > { %v6172_v45 = vadd.f32 %v3297_v9, %v3281_v60  ;;  %v3295_v31 = vpop.permute.xlu0 %3294 }
0x1f66   : > { %v6176_v61 = vadd.f32 %v3295_v31, %v3280_v25 }
0x1f67   : > { %4689 = vtanh.f32 %v6172_v45 }
0x1f68   : > { %4691 = vtanh.f32 %v6176_v61 }
0x1f71   : > { %v4690_v43 = vpop.eup %4689 }
0x1f72   : > { %v4692_v41 = vpop.eup %4691 }
0x1f73   : > { %3308 = vrot.lane.b32.xlu1 %v4690_v43, %s5085_s25 }
0x1f79   : > { %3306 = vrot.lane.b32.xlu0 %v4692_v41, %s5085_s25 }
0x1fef   : > { %v2684_v18 = vpop.xlane.xlu1 %2683 }
0x1ff0   : > { %v2686_v39 = vmul.f32 0.03125, %v2684_v18  ;;  %v2681_v54 = vpop.xlane.xlu0 %2680 }
0x1ff1   : > { %v2685_v35 = vmul.f32 0.03125, %v2681_v54 }
0x1ff2   : > { %v2688_v58 = vadd.f32 1e-05, %v2686_v39 }
0x1ff3   : > { %v2687_v40 = vadd.f32 1e-05, %v2685_v35  ;;  %v3309_v29 = vpop.permute.xlu1 %3308 }
0x1ff4   : > { %4693 = vrsqrt.f32 %v2688_v58  ;;  %v3307_v57 = vpop.permute.xlu0 %3306  ;;  %v3313_v30 = vmul.f32 %v3309_v29, %v3279_v38 }
0x1ff5   : > { %4695 = vrsqrt.f32 %v2687_v40  ;;  %v3312_v36 = vmul.f32 %v3307_v57, %v3278_v22 }
0x1ffe   : > { %v4694_v16 = vpop.eup %4693 }
0x1fff   : > { %v4696_v12 = vpop.eup %4695  ;;  %v2692_v20 = vmul.f32 %v4694_v16, %v2668_v46 }
0x2000   : > { %v2691_v24 = vmul.f32 %v4696_v12, %v2667_v52 }
0x2001   : > { %v2694_v27 = vmul.f32 %v2692_v20, %v5933_v53 }
0x2002   : > { %v2693_v13 = vmul.f32 %v2691_v24, %v5933_v53 }
0x2003   : > { %v2696_v28 = vadd.f32 %v2694_v27, %v5935_v15 }
0x2004   : > { %v2695_v32 = vadd.f32 %v2693_v13, %v5935_v15 }
0x2005   : > { %2701 = vrot.lane.b32.xlu1 %v2696_v28, %s5082_s5 }
0x2006   : > { %2699 = vrot.lane.b32.xlu0 %v2695_v32, %s5082_s5 }
0x2009   : > { %3320 = vrot.lane.b32.xlu1 %v3313_v30, %s5082_s5 }
0x200a   : > { %3318 = vrot.lane.b32.xlu0 %v3312_v36, %s5082_s5 }
0x2077   : > { %v2702_v42 = vpop.permute.xlu1 %2701 }
0x2078   : > { %2706 = vst.msk [vmem:[#allocation3 + $0x38] sm:$0xff] %vm917_vm3, %v2702_v42  ;;  %v2700_v53 = vpop.permute.xlu0 %2699 }
0x2079   : > { %2705 = vst.msk [vmem:[#allocation3 + $0x30] sm:$0xff] %vm917_vm3, %v2700_v53 }
0x207b   : > { %v3321_v19 = vpop.permute.xlu1 %3320 }
0x207c   : > { %v3319_v44 = vpop.permute.xlu0 %3318 }
0x207d   : > { %4207 = vmatprep.mubr.msk.f32.mxu0 %vm917_vm3, %v3319_v44 }
0x207e   : > { %4208 = vmatmul.mubr.msk.f32.vlgmr.msra.gmra.mrb[14].mxu0 %vm917_vm3, %v3321_v19 }
0x207f   : > { %v2726_v47 = vld [vmem:[#allocation3 + $0x38] sm:$0xff] }
0x2080   : > { %v2725_v15 = vld [vmem:[#allocation3 + $0x30] sm:$0xff] }
0x2081   : > { %4163 = vmatprep.mubr.msk.f32.mxu1 %vm917_vm3, %v2725_v15  ;;  %v3532_v15 = vld [vmem:[%s6352_s18] sm:$0xff] (!%p3903_p1) }
0x2082   : > { %4164 = vmatmul.mubr.msk.f32.gmra.mrb[18].mxu1 %vm917_vm3, %v2726_v47  ;;  %v3533_v47 = vld [vmem:[%s6352_s18 + $0x8] sm:$0xff] (!%p3903_p1) }
0x2151   : > { %v4209_v48 = vpop.f32.mrb[14].mxu0 }
0x2152   : > { %v3392_v49 = vpop.f32.mrb[15].mxu0 }
0x2155   : > { %v4165_v50 = vpop.f32.mrb[18].mxu1 }
0x2156   : > { %v2864_v51 = vadd.f32 %v4165_v50, %v6016_v34  ;;  %v2858_v38 = vpop.f32.mrb[19].mxu1 }
0x2157   : > { %v2859_v7 = vadd.f32 %v6016_v34, %v2858_v38 }
0x2158   : > { %v3402_v22 = vadd.f32 %v4209_v48, %v2864_v51  ;;  %v4333_v48 = vpack.c.bf16 (!%p3903_p1), %v3533_v47, %v3532_v15 }
0x2159   : > { %v3401_v33 = vadd.f32 %v3392_v49, %v2859_v7 }
0x215a   : > { %v3404_v10 = vmul.f32 %v3402_v22, %v5548_v21  ;;  %4334 = vmatprep.subr.bf16.mxu0 (!%p3903_p1), %v4333_v48 }
0x215b   : > { %v3403_v26 = vmul.f32 %v3401_v33, %v5548_v21  ;;  %4336 = vmatpush3.bf16.msra.mxu0 (!%p3903_p1), %v4333_v48 }
0x215c   : > { %v3902_v0 = vmul.f32 -1.442695, %v3404_v10 }
0x215d   : > { %v3901_v46 = vmul.f32 -1.442695, %v3403_v26 }
0x215e   : > { %4697 = vpow2.f32 %v3902_v0 }
0x215f   : > { %4699 = vpow2.f32 %v3901_v46 }
0x2168   : > { %v4698_v52 = vpop.eup %4697 }
0x2169   : > { %v4700_v1 = vpop.eup %4699  ;;  %v3412_v55 = vadd.f32 1.0, %v4698_v52 }
0x216a   : > { %v3411_v2 = vadd.f32 1.0, %v4700_v1 }
0x216b   : > { %4701 = vrcp.f32 %v3412_v55 }
0x216c   : > { %4703 = vrcp.f32 %v3411_v2 }
0x2175   : > { %v4702_v17 = vpop.eup %4701 }
0x2176   : > { %v4704_v3 = vpop.eup %4703  ;;  %v3418_v34 = vmul.f32 %v4702_v17, %v5548_v21 }
0x2177   : > { %v3417_v4 = vmul.f32 %v4704_v3, %v5548_v21 }
0x2178   : > { %v3420_v5 = vadd.f32 %v3418_v34, %v5556_v37 }
0x2179   : > { %v3419_v6 = vadd.f32 %v3417_v4, %v5556_v37 }
0x217a   : > { %3427 = vrot.lane.b32.xlu1 %v3420_v5, %s5085_s25  ;;  %v3422_v21 = vmul.f32 %v3420_v5, %v6172_v45 }
0x217b   : > { %3425 = vrot.lane.b32.xlu0 %v3419_v6, %s5085_s25  ;;  %v3421_v31 = vmul.f32 %v3419_v6, %v6176_v61 }
0x21ec   : > { %v3428_v63 = vpop.permute.xlu1 %3427 }
0x21ed   : > { %v3432_v8 = vmul.f32 %v3428_v63, %v3420_v5  ;;  %v3426_v60 = vpop.permute.xlu0 %3425 }
0x21ee   : > { %v3431_v9 = vmul.f32 %v3426_v60, %v3419_v6 }
0x21ef   : > { %3437 = vrot.lane.b32.xlu1 %v3432_v8, %s5082_s5 }
0x21f0   : > { %3435 = vrot.lane.b32.xlu0 %v3431_v9, %s5082_s5 }
0x21f3   : > { %1731 = vrot.lane.b32.xlu1 %v5668_v56, %s5086_s20 }
0x21f4   : > { %1729 = vrot.lane.b32.xlu0 %v5670_v62, %s5086_s20 }
0x21f7   : > { %2713 = vrot.lane.b32.xlu1 %v6141_v14, %s5086_s20 }
0x21f8   : > { %2711 = vrot.lane.b32.xlu0 %v6143_v59, %s5086_s20 }
0x2261   : > { %v3438_v37 = vpop.permute.xlu1 %3437 }
0x2262   : > { %v3442_v25 = vadd.f32 %v3438_v37, %v3422_v21  ;;  %v3436_v43 = vpop.permute.xlu0 %3435 }
0x2263   : > { %v3441_v41 = vadd.f32 %v3436_v43, %v3421_v31 }
0x2264   : > { %4705 = vtanh.f32 %v3442_v25 }
0x2265   : > { %4707 = vtanh.f32 %v3441_v41  ;;  %v1732_v56 = vpop.permute.xlu1 %1731 }
0x2266   : > { %1736 = vst.msk [vmem:[#allocation5 + $0x8] sm:$0xff] %vm917_vm3, %v1732_v56  ;;  %v1730_v62 = vpop.permute.xlu0 %1729 }
0x2267   : > { %1735 = vst.msk [vmem:[#allocation5] sm:$0xff] %vm917_vm3, %v1730_v62 }
0x2269   : > { %v2714_v14 = vpop.permute.xlu1 %2713 }
0x226a   : > { %2718 = vst.msk [vmem:[#allocation5 + $0x18] sm:$0xff] %vm917_vm3, %v2714_v14  ;;  %v2712_v59 = vpop.permute.xlu0 %2711 }
0x226b   : > { %2717 = vst.msk [vmem:[#allocation5 + $0x10] sm:$0xff] %vm917_vm3, %v2712_v59 }
0x226e   : > { %v4706_v45 = vpop.eup %4705 }
0x226f   : > { %v4708_v18 = vpop.eup %4707  ;;  %3449 = vrot.lane.b32.xlu1 %v4706_v45, %s5085_s25 }
0x2270   : > { %3447 = vrot.lane.b32.xlu0 %v4708_v18, %s5085_s25 }
0x22e1   : > { %v3450_v61 = vpop.permute.xlu1 %3449 }
0x22e2   : > { %v3454_v39 = vmul.f32 %v3450_v61, %v3420_v5  ;;  %v3448_v54 = vpop.permute.xlu0 %3447  ;;  %v3906_v5 = vld [vmem:[%s6353_s16] ss:$0 sm:$0xff] (!%p3903_p1) }
0x22e3   : > { %v3453_v35 = vmul.f32 %v3448_v54, %v3419_v6 }
0x22e4   : > { %3459 = vrot.lane.b32.xlu1 %v3454_v39, %s5082_s5 }
0x22e5   : > { %3457 = vrot.lane.b32.xlu0 %v3453_v35, %s5082_s5  ;;  %s5087_s5 = smov (!%p3903_p1), 32  }
0x22e8   : > { %3469 = vrot.lane.b32.xlu1 %v3442_v25, %s5086_s20 }
0x22e9   : > { %3467 = vrot.lane.b32.xlu0 %v3441_v41, %s5086_s20 }
0x2356   : > { %v3460_v58 = vpop.permute.xlu1 %3459  ;;  %3477 = sbr.rel (%p3903_p1) target bundleno = 9811 (0x2653), region = 140 }
0x2357   : > { %3464 = vst.msk [vmem:[#allocation4 + $0x28] sm:$0xff] %vm917_vm3, %v3460_v58  ;;  %v3458_v40 = vpop.permute.xlu0 %3457  ;;  %v3481_v24 = vsel (!%p3903_p1), %vm917_vm3, %v3460_v58, 0.0 }
0x2358   : > { %3463 = vst.msk [vmem:[#allocation4 + $0x20] sm:$0xff] %vm917_vm3, %v3458_v40  ;;  %v3478_v20 = vsel (!%p3903_p1), %vm917_vm3, %v3458_v40, 0.0 }
0x2359   : > { %3479 = vadd.xlane.f32.xlu0 (!%p3903_p1), %v3478_v20 }
0x235a   : > { %v3470_v16 = vpop.permute.xlu1 %3469 }
0x235b   : > { %3474 = vst.msk [vmem:[#allocation5 + $0x28] sm:$0xff] %vm917_vm3, %v3470_v16  ;;  %v3468_v12 = vpop.permute.xlu0 %3467 }
0x235c   : > { %3473 = vst.msk [vmem:[#allocation5 + $0x20] sm:$0xff] %vm917_vm3, %v3468_v12 }
0x235d   : > { %3482 = vadd.xlane.f32.xlu0 %v3481_v24 }
0x23e6   : > { %v3480_v27 = vpop.xlane.xlu0 %3479 }
0x23e7   : > { %v3484_v13 = vmul.f32 0.03125, %v3480_v27 }
0x23e9   : > { %v3486_v28 = vsub.f32 %v3453_v35, %v3484_v13 }
0x23ea   : > { %v3483_v29 = vpop.xlane.xlu0 %3482 }
0x23eb   : > { %v3485_v32 = vmul.f32 0.03125, %v3483_v29  ;;  %v3488_v57 = vmul.f32 %v3486_v28, %v3486_v28 }
0x23ed   : > { %v3487_v30 = vsub.f32 %v3454_v39, %v3485_v32  ;;  %3492 = vrot.lane.b32.xlu1 %v3488_v57, %s5087_s5 }
0x23ef   : > { %v3489_v36 = vmul.f32 %v3487_v30, %v3487_v30 }
0x23f1   : > { %3494 = vrot.lane.b32.xlu1 %v3489_v36, %s5087_s5 }
0x245f   : > { %v3493_v42 = vpop.permute.xlu1 %3492 }
0x2460   : > { %v3498_v53 = vsel %vm917_vm3, %v3493_v42, 0.0 }
0x2461   : > { %3499 = vadd.xlane.f32.xlu0 %v3498_v53 }
0x2463   : > { %v3495_v44 = vpop.permute.xlu1 %3494 }
0x2464   : > { %v3501_v19 = vsel %vm917_vm3, %v3495_v44, 0.0 }
0x2465   : > { %3502 = vadd.xlane.f32.xlu1 %v3501_v19 }
0x2477   : > { %3517 = vrot.lane.b32.xlu0 %v5957_v11, %s5088_s27  ;;  %v3534_v11 = vld [vmem:[%s6352_s18 + $0x10] sm:$0xff] }
0x247b   : > { %3527 = vrot.lane.b32.xlu0 %v5959_v23, %s5088_s27  ;;  %v3535_v23 = vld [vmem:[%s6352_s18 + $0x18] sm:$0xff] }
0x247c   : > { %v4337_v33 = vpack.c.bf16 %v3535_v23, %v3534_v11 }
0x247e   : > { %4338 = vmatprep.subr.bf16.mxu0 %v4337_v33 }
0x247f   : > { %4340 = vmatpush3.bf16.msra.mxu0 %v4337_v33 }
0x24ee   : > { %v3500_v49 = vpop.xlane.xlu0 %3499 }
0x24ef   : > { %v3504_v50 = vmul.f32 0.03125, %v3500_v49 }
0x24f1   : > { %v3506_v51 = vadd.f32 1e-05, %v3504_v50 }
0x24f2   : > { %v3503_v38 = vpop.xlane.xlu1 %3502  ;;  %v3518_v10 = vpop.permute.xlu0 %3517 }
0x24f3   : > { %4709 = vrsqrt.f32 %v3506_v51  ;;  %v3505_v7 = vmul.f32 0.03125, %v3503_v38 }
0x24f5   : > { %v3507_v22 = vadd.f32 1e-05, %v3505_v7 }
0x24f6   : > { %v3528_v46 = vpop.permute.xlu0 %3527 }
0x24f7   : > { %4711 = vrsqrt.f32 %v3507_v22 }
0x24fd   : > { %v4710_v26 = vpop.eup %4709 }
0x24fe   : > { %v3510_v0 = vmul.f32 %v4710_v26, %v3486_v28 }
0x2500   : > { %v3520_v52 = vmul.f32 %v3518_v10, %v3510_v0 }
0x2501   : > { %v4712_v1 = vpop.eup %4711 }
0x2502   : > { %v3511_v55 = vmul.f32 %v4712_v1, %v3487_v30  ;;  %v3530_v2 = vadd.f32 %v3528_v46, %v3520_v52 }
0x2504   : > { %v3521_v17 = vmul.f32 %v3518_v10, %v3511_v55  ;;  %3545 = vrot.lane.b32.xlu0 %v3530_v2, %s5087_s5 }
0x2506   : > { %v3531_v3 = vadd.f32 %v3528_v46, %v3521_v17 }
0x2508   : > { %3547 = vrot.lane.b32.xlu0 %v3531_v3, %s5087_s5 }
0x2576   : > { %v3546_v34 = vpop.permute.xlu0 %3545 }
0x2577   : > { %4218 = vmatprep.mubr.msk.f32.mxu0 %vm917_vm3, %v3546_v34 }
0x257a   : > { %v3548_v4 = vpop.permute.xlu0 %3547 }
0x257b   : > { %4219 = vmatmul.mubr.msk.f32.vlgmr.msra.gmra.mrb[0].mxu0 %vm917_vm3, %v3548_v4 }
0x264e   : > { %v4220_v6 = vpop.f32.mrb[0].mxu0 }
0x264f   : > { %v3625_v63 = vadd.f32 %v4220_v6, %v3906_v5  ;;  %v3619_v8 = vpop.f32.mrb[1].mxu0 }
0x2650   : > { %v3620_v60 = vadd.f32 %v3906_v5, %v3619_v8 }
0x2651   : > { %3629 = vst [vmem:[#allocation23 + $0x8] sm:$0xff] %v3625_v63 }
0x2652   : > { %3628 = vst [vmem:[#allocation23] sm:$0xff] %v3620_v60 }
0x2653 PF: > { %s6354_s1 = sld [smem:[#allocation31_spill]]  ;;  %s5089_s27 = smov [#allocation23]  }
0x2654   : > { %s3639_s25 = sshll.u32 %s5089_s27, 4  ;;  %s3640_s25 = int_to_ptr.vmem [resolvable:$true] %s3639_s25 }
0x2655   : > { %s4993_s20 = scalar_lea.vmem %s3640_s25, 256  ;;  %p5000_p11 = scmp.lt.s32.totalorder %s3640_s25, %s3640_s25 }
0x2656   : > { %p4994_p8 = scmp.ne.s32.totalorder %s3640_s25, %s4993_s20  ;;  %p5001_p12 = scmp.lt.s32.totalorder %s4993_s20, %s4993_s20 }
0x2658   : > { %p5002_p13 = por %p5001_p12, %p5000_p11 }
0x2659   : > { %s6355_s30 = sadd.s32 4294967295, %s6354_s1  }
0x265a   : > { %p6261_p6 = scmp.eq.s32.totalorder %s6355_s30, 1 }
0x265c   : > { %p4995_p9 = pnand %p4994_p8, %p6261_p6 }
0x265e   : > { %p4996_p10 = pneg %p4995_p9 }
0x2660   : > { %p5003_p0 = pnand %p5002_p13, %p4996_p10 }
0x2662   : > { %5006 = shalt.err (!%p5003_p0)
}
0x2663   : > { %s6357_s26 = sld [smem:[#allocation40_spill]] }
0x2669   : > { %s5007_s19 = scalar_lea.hbm %s6357_s26, 256 }
0x266a   : > { %p5008_p4 = scmp.ne.s32.totalorder %s6357_s26, %s5007_s19  ;;  %p5013_p5 = scmp.lt.u32.totalorder %s5007_s19, %s6357_s26 }
0x266c   : > { %p5009_p2 = pnand %p5008_p4, %p6261_p6 }
0x266e   : > { %p5010_p3 = pneg %p5009_p2 }
0x2670   : > { %p5015_p7 = pnand %p5013_p5, %p5010_p3 }
0x2672   : > { %5018 = shalt.err (!%p5015_p7)
}
0x2673   : > { %s5090_s16 = smov 128   ;;  %s5091_s1 = smov 8  }
0x2674   : > { %4432 = dma.vmem_to_hbm [thread:$0]  (%p6261_p6), %s3640_s25, 256, %s6357_s26, [#allocation8], %s5090_s16, %s5090_s16, %s5091_s1  }
0x2675   : > { %5056 = dma.done.wait (%p6261_p6), [#allocation8], 256  }
0x2676   : > { %5058 = vsyncadd (%p6261_p6), [#allocation8], 4294967040 }
0x2677 PF: > { %s6358_s20 = sld [smem:[#allocation31_spill]]  ;;  %s6359_s27 = smov %s5065_s28 }
0x2678   : > { %s6360_s28 = smov %s6362_s17 }
0x267d   : > { %s35_s29 = sadd.s32 1, %s6358_s20  }
0x267e   : > { %p32_p1 = scmp.ge.s32.totalorder %s35_s29, 4  }
0x2680   :  { %34 = sbr.rel (!%p32_p1) target bundleno = 18 (0x12), region = 179 }
0x2687   :  { %3655 = vsyncpa [#allocation7], 1 }
0x2688   :  { %3657 = vsyncpa [#allocation7 + $0x1], 1 }
0x2689   :  { %3658 = vsyncpa [#allocation10], 1 }
0x268a   :  { %3659 = vsyncpa [#allocation13], 1 }
0x268b   :  { %3660 = vsyncpa [#allocation16], 1 }
0x268c   :  { %3661 = vsyncpa [#allocation19], 1 }
0x268d   :  { %3662 = vsyncpa [#allocation22], 1 }
0x268e   :  { %3663 = vsyncpa [#allocation8], 1 }
0x268f   :  { %3665 = vsyncpa [#allocation8 + $0x1], 1 }

</bundles_post_ra>
